<compile_context>
chip_gen: v7x
topology: tpu7x:2x2x1
jax: 0.10.0
libtpu: 0.0.40
codegen_flags: <defaults>
</compile_context>

<pallas_src>
import functools

import numpy as np
import jax
import jax.numpy as jnp
from jax.experimental import pallas as pl
from jax.experimental.pallas import tpu as pltpu

COMPUTE_DTYPE = jnp.bfloat16      # MXU operand dtype; accumulation stays f32


def _round_up(x, m):
    return (x + m - 1) // m * m


# ------------------------------ Pallas kernel -------------------------------

def _convnet_kernel(x_ref, t1_ref, b1_ref, t2_ref, b2_ref,
                    wf1_ref, bf1_ref, wf2_ref, bf2_ref, wf3_ref, bf3_ref,
                    out_ref,
                    accr0_ref, accr1_ref, accr2_ref, accr3_ref,
                    *, TB, H4, KH1, RQ1, N1, KH2, RH2, N2):
    """Fully fused conv1+pool -> conv2+pool -> fc1 -> fc2 -> fc3, one batch tile.

    x_ref   : (4*H4*TB, W*C1)   rows ordered (row-residue m, row q, sample b),
                                columns channel-minor (w, c).
    t1_ref  : (KH1, W*C1, N1)   banded conv1 weights, N1 = OW1*OC1, columns
                                ordered (w-parity, w', oc) so the W max-pool is
                                a max of two contiguous half-slabs.
    t2_ref  : (KH2, P1*C2, N2)  banded conv2 weights, same column trick.
    wf*_ref : FC weights/biases, output dims zero-padded to 128 lanes.
    out_ref : (TB, 128) f32     logits (columns >= 5 are zero padding).
    accr*_ref: (RQ1*TB, N1) f32 VMEM accumulators, one per conv1 row residue.
    """
    cdt = t2_ref.dtype
    RES = H4 * TB                             # rows per residue group of x_ref
    accs = (accr0_ref, accr1_ref, accr2_ref, accr3_ref)

    # ---- conv1: per output-row residue r, accumulate KH1 banded matmuls.
    #      Every dot has M = RQ1*TB rows (whole batch tile stacked along M).
    for r in range(4):
        for i in range(KH1):
            m, off = (r + i) % 4, (r + i) // 4
            start = m * RES + off * TB
            s = x_ref[start:start + RQ1 * TB, :]                  # (RQ1*TB, W*C1)
            d = jnp.dot(s, t1_ref[i], preferred_element_type=jnp.float32)
            if i == 0:
                accs[r][...] = d
            else:
                accs[r][...] = accs[r][...] + d

    half1 = N1 // 2
    b1 = b1_ref[...]

    def pool1_w(r):                           # max-pool over W: contiguous halves
        a = accs[r][...]
        return jnp.maximum(a[:, :half1], a[:, half1:])

    # max-pool over H = max over residue pairs (rows stay (q, b)-ordered)
    act_e = jnp.maximum(jnp.maximum(pool1_w(0), pool1_w(1)) + b1, 0.0)
    act_o = jnp.maximum(jnp.maximum(pool1_w(2), pool1_w(3)) + b1, 0.0)
    act = (act_e.astype(cdt), act_o.astype(cdt))        # each (RQ1*TB, P1*C2)

    # ---- conv2: per output-row parity dy, accumulate KH2 banded matmuls ----
    half2 = N2 // 2

    def conv2_parity(dy):
        acc = None
        for i in range(KH2):
            m, off = (dy + i) % 2, (dy + i) // 2
            lhs = act[m][off * TB:(off + RH2) * TB, :]            # (RH2*TB, P1*C2)
            d = jnp.dot(lhs, t2_ref[i], preferred_element_type=jnp.float32)
            acc = d if acc is None else acc + d
        return jnp.maximum(acc[:, :half2], acc[:, half2:])        # pool over W

    pooled = jnp.maximum(jnp.maximum(conv2_parity(0), conv2_parity(1))
                         + b2_ref[...], 0.0)            # (RH2*TB, half2), rows (t, b)

    # ---- fc1 as a sum over the RH2 pooled-row blocks (avoids any in-kernel
    #      transpose: each block is already (samples, w*c)), then fc2, fc3.
    feat = pooled.astype(cdt)
    h = None
    for t in range(RH2):
        blk = feat[t * TB:(t + 1) * TB, :]                        # (TB, half2)
        d = jnp.dot(blk, wf1_ref[t * half2:(t + 1) * half2, :],
                    preferred_element_type=jnp.float32)           # (TB, 128)
        h = d if h is None else h + d
    h = jnp.maximum(h + bf1_ref[...], 0.0).astype(cdt)
    h = jnp.dot(h, wf2_ref[...], preferred_element_type=jnp.float32)
    h = jnp.maximum(h + bf2_ref[...], 0.0).astype(cdt)
    out_ref[...] = (jnp.dot(h, wf3_ref[...], preferred_element_type=jnp.float32)
                    + bf3_ref[...]).astype(out_ref.dtype)


# -------------------- weight packing (wrapper-side, one-time) ---------------

def _shift_matrix(w_in, ow, kw):
    s = np.zeros((kw, w_in, ow), np.float32)
    for j in range(kw):
        s[j, np.arange(ow) + j, np.arange(ow)] = 1.0
    return s


def _conv_toeplitz(w, w_in, pool):
    """Conv weight (OC, C, KH, KW) -> (KH, w_in*C, OW*OC) banded matmul slabs.

    Rows are channel-minor (w_in, c) so they match NHWC-style activation rows;
    output columns are ordered (w-parity, w', oc) so the max-pool over W is a
    max of two contiguous half-slabs.
    """
    OC, C, KH, KW = w.shape
    OW = w_in - KW + 1
    OWh = OW // pool
    shift = _shift_matrix(w_in, OW, KW)                 # (KW, w_in, OW)
    t = jnp.einsum('kvw,ocik->ivcwo', shift, w)         # (KH, w_in, C, OW, OC)
    t = t.reshape(KH, w_in, C, OWh, pool, OC).transpose(0, 1, 2, 4, 3, 5)
    return t.reshape(KH, w_in * C, OW * OC)


def pack_params(p, compute_dtype=COMPUTE_DTYPE, img_hw=32):
    OC1, C1, KH1, KW1 = p["w1"].shape                   # (6, 3, 5, 5)
    OC2, C2, KH2, KW2 = p["w2"].shape                   # (16, 6, 5, 5)
    OW1 = img_hw - KW1 + 1                              # 28
    P1 = OW1 // 2                                       # 14 (conv2 input size)
    OW2 = P1 - KW2 + 1                                  # 10
    P2 = OW2 // 2                                       # 5
    NF = 128                                            # lane-dense FC width

    t1 = _conv_toeplitz(p["w1"], img_hw, 2).astype(compute_dtype)   # (5, 96, 168)
    t2 = _conv_toeplitz(p["w2"], P1, 2).astype(compute_dtype)       # (5, 84, 160)
    b1row = jnp.tile(p["b1"], P1).reshape(1, P1 * OC1).astype(jnp.float32)
    b2row = jnp.tile(p["b2"], P2).reshape(1, P2 * OC2).astype(jnp.float32)

    # Fold PyTorch's (C, H, W) flatten order into a column permutation of fc1
    # so the conv kernel's (h, w, c)-ordered pooled output feeds it directly.
    hh, ww, cc = np.meshgrid(np.arange(P2), np.arange(P2), np.arange(OC2),
                             indexing="ij")
    torch_idx = (cc * (P2 * P2) + hh * P2 + ww).reshape(-1)
    w1p = p["wf1"][:, torch_idx].T                       # (400, 120)

    def pad2(a, rows, cols):
        return jnp.pad(a, ((0, rows - a.shape[0]), (0, cols - a.shape[1])))

    return {
        "t1": t1, "b1row": b1row, "t2": t2, "b2row": b2row,
        "wf1": pad2(w1p, w1p.shape[0], NF).astype(compute_dtype),        # (400, 128)
        "bf1": pad2(p["bf1"].reshape(1, -1), 1, NF).astype(jnp.float32),
        "wf2": pad2(p["wf2"].T, NF, NF).astype(compute_dtype),           # (128, 128)
        "bf2": pad2(p["bf2"].reshape(1, -1), 1, NF).astype(jnp.float32),
        "wf3": pad2(p["wf3"].T, NF, NF).astype(compute_dtype),           # (128, 128)
        "bf3": pad2(p["bf3"].reshape(1, -1), 1, NF).astype(jnp.float32),
    }


# ------------------------------ forward pass --------------------------------

def convnet_forward(x_nchw, q, *, tb=16, num_classes=5):
    B, C1, H, W = x_nchw.shape
    cdt = q["t1"].dtype
    KH1, WC1, N1 = q["t1"].shape
    KH2, P1C2, N2 = q["t2"].shape
    assert WC1 == W * C1
    OH1 = H - KH1 + 1                                   # 28
    assert H % 4 == 0 and OH1 % 4 == 0
    H4 = H // 4                                         # 8
    RQ1 = OH1 // 4                                      # 7 conv1 rows / residue
    P1 = OH1 // 2                                       # 14 pooled rows
    OH2 = P1 - KH2 + 1                                  # 10
    RH2 = OH2 // 2                                      # 5 pooled rows
    half2 = N2 // 2                                     # 80 = 5*16
    NF = q["wf1"].shape[1]                              # 128
    assert RH2 * half2 == q["wf1"].shape[0]

    # batch tile: samples are stacked along the matmul M dimension in-kernel.
    TB = int(min(tb, _round_up(B, 2)))                  # always even
    Bp = _round_up(B, TB)
    G = Bp // TB

    x = x_nchw.astype(cdt)
    if Bp != B:
        x = jnp.pad(x, ((0, Bp - B), (0, 0), (0, 0), (0, 0)))

    # One wrapper-side transpose: NCHW -> rows ordered (residue m, row q,
    # sample b) with channel-minor columns.  Every in-kernel slice is then a
    # contiguous 2-D slice, and the whole tile is one DMA per grid step.
    xr = x.transpose(0, 2, 3, 1)                        # (Bp, H, W, C)
    xr = xr.reshape(G, TB, H4, 4, W * C1)               # h -> (q, m)
    xr = xr.transpose(0, 3, 2, 1, 4)                    # (G, m, q, b, w*c)
    xr = xr.reshape(G, 4 * H4 * TB, W * C1)

    kernel = functools.partial(
        _convnet_kernel, TB=TB, H4=H4, KH1=KH1, RQ1=RQ1, N1=N1,
        KH2=KH2, RH2=RH2, N2=N2)

    flops = 2 * Bp * (4 * KH1 * RQ1 * WC1 * N1
                      + 2 * KH2 * RH2 * P1C2 * N2
                      + RH2 * half2 * NF + NF * NF + NF * NF)
    wbytes = sum(int(np.prod(q[k].shape)) * q[k].dtype.itemsize
                 for k in ("t1", "b1row", "t2", "b2row",
                           "wf1", "bf1", "wf2", "bf2", "wf3", "bf3"))
    cost = pl.CostEstimate(
        flops=int(flops), transcendentals=0,
        bytes_accessed=int(xr.size * xr.dtype.itemsize + Bp * NF * 4 + wbytes))

    out = pl.pallas_call(
        kernel,
        out_shape=jax.ShapeDtypeStruct((G, TB, NF), jnp.float32),
        grid=(G,),
        in_specs=[
            pl.BlockSpec((None, 4 * H4 * TB, WC1), lambda g: (g, 0, 0)),
            pl.BlockSpec(q["t1"].shape, lambda g: (0, 0, 0)),
            pl.BlockSpec(q["b1row"].shape, lambda g: (0, 0)),
            pl.BlockSpec(q["t2"].shape, lambda g: (0, 0, 0)),
            pl.BlockSpec(q["b2row"].shape, lambda g: (0, 0)),
            pl.BlockSpec(q["wf1"].shape, lambda g: (0, 0)),
            pl.BlockSpec(q["bf1"].shape, lambda g: (0, 0)),
            pl.BlockSpec(q["wf2"].shape, lambda g: (0, 0)),
            pl.BlockSpec(q["bf2"].shape, lambda g: (0, 0)),
            pl.BlockSpec(q["wf3"].shape, lambda g: (0, 0)),
            pl.BlockSpec(q["bf3"].shape, lambda g: (0, 0)),
        ],
        out_specs=pl.BlockSpec((None, TB, NF), lambda g: (g, 0, 0)),
        scratch_shapes=[pltpu.VMEM((RQ1 * TB, N1), jnp.float32)] * 4,
        compiler_params=pltpu.CompilerParams(dimension_semantics=("parallel",)),
        cost_estimate=cost,
    )(xr, q["t1"], q["b1row"], q["t2"], q["b2row"],
      q["wf1"], q["bf1"], q["wf2"], q["bf2"], q["wf3"], q["bf3"])

    logits = out.reshape(G * TB, NF)
    return logits[:B, :num_classes]


# ------------------------------ init & reference ----------------------------

def init_params(key):
    """Deterministic synthetic weights with nn.Conv2d / nn.Linear shapes."""
    ks = jax.random.split(key, 10)

    def u(k, shape, fan_in):
        bound = 1.0 / jnp.sqrt(fan_in)
        return jax.random.uniform(k, shape, jnp.float32, -bound, bound)

    return {
        "w1": u(ks[0], (6, 3, 5, 5), 3 * 5 * 5),
        "b1": u(ks[1], (6,), 3 * 5 * 5),
        "w2": u(ks[2], (16, 6, 5, 5), 6 * 5 * 5),
        "b2": u(ks[3], (16,), 6 * 5 * 5),
        "wf1": u(ks[4], (120, 400), 400),   # nn.Linear stores (out, in)
        "bf1": u(ks[5], (120,), 400),
        "wf2": u(ks[6], (84, 120), 120),
        "bf2": u(ks[7], (84,), 120),
        "wf3": u(ks[8], (5, 84), 84),
        "bf3": u(ks[9], (5,), 84),
    }


def convnet_reference(x, p):
    """Plain-XLA reference with PyTorch semantics (for a sanity check)."""
    dn = ("NCHW", "OIHW", "NCHW")
    y = jax.lax.conv_general_dilated(x, p["w1"], (1, 1), "VALID",
                                     dimension_numbers=dn)
    y = jax.nn.relu(y + p["b1"][None, :, None, None])
    y = jax.lax.reduce_window(y, -jnp.inf, jax.lax.max,
                              (1, 1, 2, 2), (1, 1, 2, 2), "VALID")
    y = jax.lax.conv_general_dilated(y, p["w2"], (1, 1), "VALID",
                                     dimension_numbers=dn)
    y = jax.nn.relu(y + p["b2"][None, :, None, None])
    y = jax.lax.reduce_window(y, -jnp.inf, jax.lax.max,
                              (1, 1, 2, 2), (1, 1, 2, 2), "VALID")
    y = y.reshape(y.shape[0], -1)
    y = jax.nn.relu(y @ p["wf1"].T + p["bf1"])
    y = jax.nn.relu(y @ p["wf2"].T + p["bf2"])
    return y @ p["wf3"].T + p["bf3"]


if __name__ == "__main__":
    key = jax.random.PRNGKey(0)
    k_x, k_p = jax.random.split(key)
    x = jax.random.normal(k_x, (2, 3, 32, 32), jnp.float32)   # batch=2, CIFAR-size
    params = init_params(k_p)
    packed = pack_params(params)

    out = jax.jit(convnet_forward)(x, packed)
    jax.block_until_ready(out)
    assert out.shape == (2, 5) and out.dtype == jnp.float32

    # sanity check against the XLA reference (bf16 MXU operands, f32 accum)
    with jax.default_matmul_precision("float32"):
        ref = convnet_reference(x, params)
    rel_err = float(jnp.linalg.norm(out - ref) / (jnp.linalg.norm(ref) + 1e-12))
    assert rel_err < 2e-2, f"relative error too high: {rel_err}"

    print("KERNEL_OK")
</pallas_src>

<mosaic_0001>
module attributes {stable_mosaic.version = 11 : i64} {
  func.func @_convnet_kernel(%arg0: i32, %arg1: memref<1x64x96xbf16, #tpu.memory_space<vmem>>, %arg2: memref<5x96x168xbf16, #tpu.memory_space<vmem>>, %arg3: memref<1x84xf32, #tpu.memory_space<vmem>>, %arg4: memref<5x84x160xbf16, #tpu.memory_space<vmem>>, %arg5: memref<1x80xf32, #tpu.memory_space<vmem>>, %arg6: memref<400x128xbf16, #tpu.memory_space<vmem>>, %arg7: memref<1x128xf32, #tpu.memory_space<vmem>>, %arg8: memref<128x128xbf16, #tpu.memory_space<vmem>>, %arg9: memref<1x128xf32, #tpu.memory_space<vmem>>, %arg10: memref<128x128xbf16, #tpu.memory_space<vmem>>, %arg11: memref<1x128xf32, #tpu.memory_space<vmem>>, %arg12: memref<1x2x128xf32, #tpu.memory_space<vmem>>, %arg13: memref<14x168xf32, #tpu.memory_space<vmem>>, %arg14: memref<14x168xf32, #tpu.memory_space<vmem>>, %arg15: memref<14x168xf32, #tpu.memory_space<vmem>>, %arg16: memref<14x168xf32, #tpu.memory_space<vmem>>) attributes {dimension_semantics = [#tpu.dimension_semantics<parallel>], iteration_bounds = array<i64: 1>, scalar_prefetch = 0 : i64, scratch_operands = 4 : i64, tpu.core_type = #tpu.core_type<tc>, window_params = [{transform_indices = @transform_0, window_bounds = array<i64: 1, 64, 96>}, {pipeline_mode = #tpu.pipeline_mode<synchronous>, transform_indices = @transform_1, window_bounds = array<i64: 5, 96, 168>}, {pipeline_mode = #tpu.pipeline_mode<synchronous>, transform_indices = @transform_2, window_bounds = array<i64: 1, 84>}, {pipeline_mode = #tpu.pipeline_mode<synchronous>, transform_indices = @transform_3, window_bounds = array<i64: 5, 84, 160>}, {pipeline_mode = #tpu.pipeline_mode<synchronous>, transform_indices = @transform_4, window_bounds = array<i64: 1, 80>}, {pipeline_mode = #tpu.pipeline_mode<synchronous>, transform_indices = @transform_5, window_bounds = array<i64: 400, 128>}, {pipeline_mode = #tpu.pipeline_mode<synchronous>, transform_indices = @transform_6, window_bounds = array<i64: 1, 128>}, {pipeline_mode = #tpu.pipeline_mode<synchronous>, transform_indices = @transform_7, window_bounds = array<i64: 128, 128>}, {pipeline_mode = #tpu.pipeline_mode<synchronous>, transform_indices = @transform_8, window_bounds = array<i64: 1, 128>}, {pipeline_mode = #tpu.pipeline_mode<synchronous>, transform_indices = @transform_9, window_bounds = array<i64: 128, 128>}, {pipeline_mode = #tpu.pipeline_mode<synchronous>, transform_indices = @transform_10, window_bounds = array<i64: 1, 128>}, {transform_indices = @transform_11, window_bounds = array<i64: 1, 2, 128>}]} {
    %c0 = arith.constant 0 : index
    %c0_0 = arith.constant 0 : index
    %c0_1 = arith.constant 0 : index
    %0 = vector.load %arg1[%c0, %c0_0, %c0_1] : memref<1x64x96xbf16, #tpu.memory_space<vmem>>, vector<1x14x96xbf16>
    %1 = vector.shape_cast %0 : vector<1x14x96xbf16> to vector<14x96xbf16>
    %c0_2 = arith.constant 0 : index
    %c0_3 = arith.constant 0 : index
    %c0_4 = arith.constant 0 : index
    %2 = vector.load %arg2[%c0_2, %c0_3, %c0_4] : memref<5x96x168xbf16, #tpu.memory_space<vmem>>, vector<1x96x168xbf16>
    %3 = vector.shape_cast %2 : vector<1x96x168xbf16> to vector<96x168xbf16>
    %cst = arith.constant dense<0.000000e+00> : vector<14x168xf32>
    %4 = tpu.matmul %1, %3, %cst {dimension_numbers = #tpu.dot_dimension_numbers<[1], [0], [0], [1], [0, 0, 1, 1], [], []>} : vector<14x96xbf16>, vector<96x168xbf16>, vector<14x168xf32> -> vector<14x168xf32>
    %c0_5 = arith.constant 0 : index
    %c0_6 = arith.constant 0 : index
    %5 = vector.load %arg13[%c0_5, %c0_6] : memref<14x168xf32, #tpu.memory_space<vmem>>, vector<14x168xf32>
    tpu.vector_store %arg13[%c0_5, %c0_6], %4 {strides = array<i32>} : memref<14x168xf32, #tpu.memory_space<vmem>>, vector<14x168xf32>,
    %c0_7 = arith.constant 0 : index
    %c16 = arith.constant 16 : index
    %c0_8 = arith.constant 0 : index
    %6 = vector.load %arg1[%c0_7, %c16, %c0_8] : memref<1x64x96xbf16, #tpu.memory_space<vmem>>, vector<1x14x96xbf16>
    %7 = vector.shape_cast %6 : vector<1x14x96xbf16> to vector<14x96xbf16>
    %c1 = arith.constant 1 : index
    %c0_9 = arith.constant 0 : index
    %c0_10 = arith.constant 0 : index
    %8 = vector.load %arg2[%c1, %c0_9, %c0_10] : memref<5x96x168xbf16, #tpu.memory_space<vmem>>, vector<1x96x168xbf16>
    %9 = vector.shape_cast %8 : vector<1x96x168xbf16> to vector<96x168xbf16>
    %cst_11 = arith.constant dense<0.000000e+00> : vector<14x168xf32>
    %10 = tpu.matmul %7, %9, %cst_11 {dimension_numbers = #tpu.dot_dimension_numbers<[1], [0], [0], [1], [0, 0, 1, 1], [], []>} : vector<14x96xbf16>, vector<96x168xbf16>, vector<14x168xf32> -> vector<14x168xf32>
    %c0_12 = arith.constant 0 : index
    %c0_13 = arith.constant 0 : index
    %11 = vector.load %arg13[%c0_12, %c0_13] : memref<14x168xf32, #tpu.memory_space<vmem>>, vector<14x168xf32>
    %12 = arith.addf %11, %10 : vector<14x168xf32>
    %c0_14 = arith.constant 0 : index
    %c0_15 = arith.constant 0 : index
    %13 = vector.load %arg13[%c0_14, %c0_15] : memref<14x168xf32, #tpu.memory_space<vmem>>, vector<14x168xf32>
    tpu.vector_store %arg13[%c0_14, %c0_15], %12 {strides = array<i32>} : memref<14x168xf32, #tpu.memory_space<vmem>>, vector<14x168xf32>,
    %c0_16 = arith.constant 0 : index
    %c32 = arith.constant 32 : index
    %c0_17 = arith.constant 0 : index
    %14 = vector.load %arg1[%c0_16, %c32, %c0_17] : memref<1x64x96xbf16, #tpu.memory_space<vmem>>, vector<1x14x96xbf16>
    %15 = vector.shape_cast %14 : vector<1x14x96xbf16> to vector<14x96xbf16>
    %c2 = arith.constant 2 : index
    %c0_18 = arith.constant 0 : index
    %c0_19 = arith.constant 0 : index
    %16 = vector.load %arg2[%c2, %c0_18, %c0_19] : memref<5x96x168xbf16, #tpu.memory_space<vmem>>, vector<1x96x168xbf16>
    %17 = vector.shape_cast %16 : vector<1x96x168xbf16> to vector<96x168xbf16>
    %cst_20 = arith.constant dense<0.000000e+00> : vector<14x168xf32>
    %18 = tpu.matmul %15, %17, %cst_20 {dimension_numbers = #tpu.dot_dimension_numbers<[1], [0], [0], [1], [0, 0, 1, 1], [], []>} : vector<14x96xbf16>, vector<96x168xbf16>, vector<14x168xf32> -> vector<14x168xf32>
    %c0_21 = arith.constant 0 : index
    %c0_22 = arith.constant 0 : index
    %19 = vector.load %arg13[%c0_21, %c0_22] : memref<14x168xf32, #tpu.memory_space<vmem>>, vector<14x168xf32>
    %20 = arith.addf %19, %18 : vector<14x168xf32>
    %c0_23 = arith.constant 0 : index
    %c0_24 = arith.constant 0 : index
    %21 = vector.load %arg13[%c0_23, %c0_24] : memref<14x168xf32, #tpu.memory_space<vmem>>, vector<14x168xf32>
    tpu.vector_store %arg13[%c0_23, %c0_24], %20 {strides = array<i32>} : memref<14x168xf32, #tpu.memory_space<vmem>>, vector<14x168xf32>,
    %c0_25 = arith.constant 0 : index
    %c48 = arith.constant 48 : index
    %c0_26 = arith.constant 0 : index
    %22 = vector.load %arg1[%c0_25, %c48, %c0_26] : memref<1x64x96xbf16, #tpu.memory_space<vmem>>, vector<1x14x96xbf16>
    %23 = vector.shape_cast %22 : vector<1x14x96xbf16> to vector<14x96xbf16>
    %c3 = arith.constant 3 : index
    %c0_27 = arith.constant 0 : index
    %c0_28 = arith.constant 0 : index
    %24 = vector.load %arg2[%c3, %c0_27, %c0_28] : memref<5x96x168xbf16, #tpu.memory_space<vmem>>, vector<1x96x168xbf16>
    %25 = vector.shape_cast %24 : vector<1x96x168xbf16> to vector<96x168xbf16>
    %cst_29 = arith.constant dense<0.000000e+00> : vector<14x168xf32>
    %26 = tpu.matmul %23, %25, %cst_29 {dimension_numbers = #tpu.dot_dimension_numbers<[1], [0], [0], [1], [0, 0, 1, 1], [], []>} : vector<14x96xbf16>, vector<96x168xbf16>, vector<14x168xf32> -> vector<14x168xf32>
    %c0_30 = arith.constant 0 : index
    %c0_31 = arith.constant 0 : index
    %27 = vector.load %arg13[%c0_30, %c0_31] : memref<14x168xf32, #tpu.memory_space<vmem>>, vector<14x168xf32>
    %28 = arith.addf %27, %26 : vector<14x168xf32>
    %c0_32 = arith.constant 0 : index
    %c0_33 = arith.constant 0 : index
    %29 = vector.load %arg13[%c0_32, %c0_33] : memref<14x168xf32, #tpu.memory_space<vmem>>, vector<14x168xf32>
    tpu.vector_store %arg13[%c0_32, %c0_33], %28 {strides = array<i32>} : memref<14x168xf32, #tpu.memory_space<vmem>>, vector<14x168xf32>,
    %c0_34 = arith.constant 0 : index
    %c2_35 = arith.constant 2 : index
    %c0_36 = arith.constant 0 : index
    %30 = vector.load %arg1[%c0_34, %c2_35, %c0_36] : memref<1x64x96xbf16, #tpu.memory_space<vmem>>, vector<1x14x96xbf16>
    %31 = vector.shape_cast %30 : vector<1x14x96xbf16> to vector<14x96xbf16>
    %c4 = arith.constant 4 : index
    %c0_37 = arith.constant 0 : index
    %c0_38 = arith.constant 0 : index
    %32 = vector.load %arg2[%c4, %c0_37, %c0_38] : memref<5x96x168xbf16, #tpu.memory_space<vmem>>, vector<1x96x168xbf16>
    %33 = vector.shape_cast %32 : vector<1x96x168xbf16> to vector<96x168xbf16>
    %cst_39 = arith.constant dense<0.000000e+00> : vector<14x168xf32>
    %34 = tpu.matmul %31, %33, %cst_39 {dimension_numbers = #tpu.dot_dimension_numbers<[1], [0], [0], [1], [0, 0, 1, 1], [], []>} : vector<14x96xbf16>, vector<96x168xbf16>, vector<14x168xf32> -> vector<14x168xf32>
    %c0_40 = arith.constant 0 : index
    %c0_41 = arith.constant 0 : index
    %35 = vector.load %arg13[%c0_40, %c0_41] : memref<14x168xf32, #tpu.memory_space<vmem>>, vector<14x168xf32>
    %36 = arith.addf %35, %34 : vector<14x168xf32>
    %c0_42 = arith.constant 0 : index
    %c0_43 = arith.constant 0 : index
    %37 = vector.load %arg13[%c0_42, %c0_43] : memref<14x168xf32, #tpu.memory_space<vmem>>, vector<14x168xf32>
    tpu.vector_store %arg13[%c0_42, %c0_43], %36 {strides = array<i32>} : memref<14x168xf32, #tpu.memory_space<vmem>>, vector<14x168xf32>,
    %c0_44 = arith.constant 0 : index
    %c16_45 = arith.constant 16 : index
    %c0_46 = arith.constant 0 : index
    %38 = vector.load %arg1[%c0_44, %c16_45, %c0_46] : memref<1x64x96xbf16, #tpu.memory_space<vmem>>, vector<1x14x96xbf16>
    %39 = vector.shape_cast %38 : vector<1x14x96xbf16> to vector<14x96xbf16>
    %c0_47 = arith.constant 0 : index
    %c0_48 = arith.constant 0 : index
    %c0_49 = arith.constant 0 : index
    %40 = vector.load %arg2[%c0_47, %c0_48, %c0_49] : memref<5x96x168xbf16, #tpu.memory_space<vmem>>, vector<1x96x168xbf16>
    %41 = vector.shape_cast %40 : vector<1x96x168xbf16> to vector<96x168xbf16>
    %cst_50 = arith.constant dense<0.000000e+00> : vector<14x168xf32>
    %42 = tpu.matmul %39, %41, %cst_50 {dimension_numbers = #tpu.dot_dimension_numbers<[1], [0], [0], [1], [0, 0, 1, 1], [], []>} : vector<14x96xbf16>, vector<96x168xbf16>, vector<14x168xf32> -> vector<14x168xf32>
    %c0_51 = arith.constant 0 : index
    %c0_52 = arith.constant 0 : index
    %43 = vector.load %arg14[%c0_51, %c0_52] : memref<14x168xf32, #tpu.memory_space<vmem>>, vector<14x168xf32>
    tpu.vector_store %arg14[%c0_51, %c0_52], %42 {strides = array<i32>} : memref<14x168xf32, #tpu.memory_space<vmem>>, vector<14x168xf32>,
    %c0_53 = arith.constant 0 : index
    %c32_54 = arith.constant 32 : index
    %c0_55 = arith.constant 0 : index
    %44 = vector.load %arg1[%c0_53, %c32_54, %c0_55] : memref<1x64x96xbf16, #tpu.memory_space<vmem>>, vector<1x14x96xbf16>
    %45 = vector.shape_cast %44 : vector<1x14x96xbf16> to vector<14x96xbf16>
    %c1_56 = arith.constant 1 : index
    %c0_57 = arith.constant 0 : index
    %c0_58 = arith.constant 0 : index
    %46 = vector.load %arg2[%c1_56, %c0_57, %c0_58] : memref<5x96x168xbf16, #tpu.memory_space<vmem>>, vector<1x96x168xbf16>
    %47 = vector.shape_cast %46 : vector<1x96x168xbf16> to vector<96x168xbf16>
    %cst_59 = arith.constant dense<0.000000e+00> : vector<14x168xf32>
    %48 = tpu.matmul %45, %47, %cst_59 {dimension_numbers = #tpu.dot_dimension_numbers<[1], [0], [0], [1], [0, 0, 1, 1], [], []>} : vector<14x96xbf16>, vector<96x168xbf16>, vector<14x168xf32> -> vector<14x168xf32>
    %c0_60 = arith.constant 0 : index
    %c0_61 = arith.constant 0 : index
    %49 = vector.load %arg14[%c0_60, %c0_61] : memref<14x168xf32, #tpu.memory_space<vmem>>, vector<14x168xf32>
    %50 = arith.addf %49, %48 : vector<14x168xf32>
    %c0_62 = arith.constant 0 : index
    %c0_63 = arith.constant 0 : index
    %51 = vector.load %arg14[%c0_62, %c0_63] : memref<14x168xf32, #tpu.memory_space<vmem>>, vector<14x168xf32>
    tpu.vector_store %arg14[%c0_62, %c0_63], %50 {strides = array<i32>} : memref<14x168xf32, #tpu.memory_space<vmem>>, vector<14x168xf32>,
    %c0_64 = arith.constant 0 : index
    %c48_65 = arith.constant 48 : index
    %c0_66 = arith.constant 0 : index
    %52 = vector.load %arg1[%c0_64, %c48_65, %c0_66] : memref<1x64x96xbf16, #tpu.memory_space<vmem>>, vector<1x14x96xbf16>
    %53 = vector.shape_cast %52 : vector<1x14x96xbf16> to vector<14x96xbf16>
    %c2_67 = arith.constant 2 : index
    %c0_68 = arith.constant 0 : index
    %c0_69 = arith.constant 0 : index
    %54 = vector.load %arg2[%c2_67, %c0_68, %c0_69] : memref<5x96x168xbf16, #tpu.memory_space<vmem>>, vector<1x96x168xbf16>
    %55 = vector.shape_cast %54 : vector<1x96x168xbf16> to vector<96x168xbf16>
    %cst_70 = arith.constant dense<0.000000e+00> : vector<14x168xf32>
    %56 = tpu.matmul %53, %55, %cst_70 {dimension_numbers = #tpu.dot_dimension_numbers<[1], [0], [0], [1], [0, 0, 1, 1], [], []>} : vector<14x96xbf16>, vector<96x168xbf16>, vector<14x168xf32> -> vector<14x168xf32>
    %c0_71 = arith.constant 0 : index
    %c0_72 = arith.constant 0 : index
    %57 = vector.load %arg14[%c0_71, %c0_72] : memref<14x168xf32, #tpu.memory_space<vmem>>, vector<14x168xf32>
    %58 = arith.addf %57, %56 : vector<14x168xf32>
    %c0_73 = arith.constant 0 : index
    %c0_74 = arith.constant 0 : index
    %59 = vector.load %arg14[%c0_73, %c0_74] : memref<14x168xf32, #tpu.memory_space<vmem>>, vector<14x168xf32>
    tpu.vector_store %arg14[%c0_73, %c0_74], %58 {strides = array<i32>} : memref<14x168xf32, #tpu.memory_space<vmem>>, vector<14x168xf32>,
    %c0_75 = arith.constant 0 : index
    %c2_76 = arith.constant 2 : index
    %c0_77 = arith.constant 0 : index
    %60 = vector.load %arg1[%c0_75, %c2_76, %c0_77] : memref<1x64x96xbf16, #tpu.memory_space<vmem>>, vector<1x14x96xbf16>
    %61 = vector.shape_cast %60 : vector<1x14x96xbf16> to vector<14x96xbf16>
    %c3_78 = arith.constant 3 : index
    %c0_79 = arith.constant 0 : index
    %c0_80 = arith.constant 0 : index
    %62 = vector.load %arg2[%c3_78, %c0_79, %c0_80] : memref<5x96x168xbf16, #tpu.memory_space<vmem>>, vector<1x96x168xbf16>
    %63 = vector.shape_cast %62 : vector<1x96x168xbf16> to vector<96x168xbf16>
    %cst_81 = arith.constant dense<0.000000e+00> : vector<14x168xf32>
    %64 = tpu.matmul %61, %63, %cst_81 {dimension_numbers = #tpu.dot_dimension_numbers<[1], [0], [0], [1], [0, 0, 1, 1], [], []>} : vector<14x96xbf16>, vector<96x168xbf16>, vector<14x168xf32> -> vector<14x168xf32>
    %c0_82 = arith.constant 0 : index
    %c0_83 = arith.constant 0 : index
    %65 = vector.load %arg14[%c0_82, %c0_83] : memref<14x168xf32, #tpu.memory_space<vmem>>, vector<14x168xf32>
    %66 = arith.addf %65, %64 : vector<14x168xf32>
    %c0_84 = arith.constant 0 : index
    %c0_85 = arith.constant 0 : index
    %67 = vector.load %arg14[%c0_84, %c0_85] : memref<14x168xf32, #tpu.memory_space<vmem>>, vector<14x168xf32>
    tpu.vector_store %arg14[%c0_84, %c0_85], %66 {strides = array<i32>} : memref<14x168xf32, #tpu.memory_space<vmem>>, vector<14x168xf32>,
    %c0_86 = arith.constant 0 : index
    %c18 = arith.constant 18 : index
    %c0_87 = arith.constant 0 : index
    %68 = vector.load %arg1[%c0_86, %c18, %c0_87] : memref<1x64x96xbf16, #tpu.memory_space<vmem>>, vector<1x14x96xbf16>
    %69 = vector.shape_cast %68 : vector<1x14x96xbf16> to vector<14x96xbf16>
    %c4_88 = arith.constant 4 : index
    %c0_89 = arith.constant 0 : index
    %c0_90 = arith.constant 0 : index
    %70 = vector.load %arg2[%c4_88, %c0_89, %c0_90] : memref<5x96x168xbf16, #tpu.memory_space<vmem>>, vector<1x96x168xbf16>
    %71 = vector.shape_cast %70 : vector<1x96x168xbf16> to vector<96x168xbf16>
    %cst_91 = arith.constant dense<0.000000e+00> : vector<14x168xf32>
    %72 = tpu.matmul %69, %71, %cst_91 {dimension_numbers = #tpu.dot_dimension_numbers<[1], [0], [0], [1], [0, 0, 1, 1], [], []>} : vector<14x96xbf16>, vector<96x168xbf16>, vector<14x168xf32> -> vector<14x168xf32>
    %c0_92 = arith.constant 0 : index
    %c0_93 = arith.constant 0 : index
    %73 = vector.load %arg14[%c0_92, %c0_93] : memref<14x168xf32, #tpu.memory_space<vmem>>, vector<14x168xf32>
    %74 = arith.addf %73, %72 : vector<14x168xf32>
    %c0_94 = arith.constant 0 : index
    %c0_95 = arith.constant 0 : index
    %75 = vector.load %arg14[%c0_94, %c0_95] : memref<14x168xf32, #tpu.memory_space<vmem>>, vector<14x168xf32>
    tpu.vector_store %arg14[%c0_94, %c0_95], %74 {strides = array<i32>} : memref<14x168xf32, #tpu.memory_space<vmem>>, vector<14x168xf32>,
    %c0_96 = arith.constant 0 : index
    %c32_97 = arith.constant 32 : index
    %c0_98 = arith.constant 0 : index
    %76 = vector.load %arg1[%c0_96, %c32_97, %c0_98] : memref<1x64x96xbf16, #tpu.memory_space<vmem>>, vector<1x14x96xbf16>
    %77 = vector.shape_cast %76 : vector<1x14x96xbf16> to vector<14x96xbf16>
    %c0_99 = arith.constant 0 : index
    %c0_100 = arith.constant 0 : index
    %c0_101 = arith.constant 0 : index
    %78 = vector.load %arg2[%c0_99, %c0_100, %c0_101] : memref<5x96x168xbf16, #tpu.memory_space<vmem>>, vector<1x96x168xbf16>
    %79 = vector.shape_cast %78 : vector<1x96x168xbf16> to vector<96x168xbf16>
    %cst_102 = arith.constant dense<0.000000e+00> : vector<14x168xf32>
    %80 = tpu.matmul %77, %79, %cst_102 {dimension_numbers = #tpu.dot_dimension_numbers<[1], [0], [0], [1], [0, 0, 1, 1], [], []>} : vector<14x96xbf16>, vector<96x168xbf16>, vector<14x168xf32> -> vector<14x168xf32>
    %c0_103 = arith.constant 0 : index
    %c0_104 = arith.constant 0 : index
    %81 = vector.load %arg15[%c0_103, %c0_104] : memref<14x168xf32, #tpu.memory_space<vmem>>, vector<14x168xf32>
    tpu.vector_store %arg15[%c0_103, %c0_104], %80 {strides = array<i32>} : memref<14x168xf32, #tpu.memory_space<vmem>>, vector<14x168xf32>,
    %c0_105 = arith.constant 0 : index
    %c48_106 = arith.constant 48 : index
    %c0_107 = arith.constant 0 : index
    %82 = vector.load %arg1[%c0_105, %c48_106, %c0_107] : memref<1x64x96xbf16, #tpu.memory_space<vmem>>, vector<1x14x96xbf16>
    %83 = vector.shape_cast %82 : vector<1x14x96xbf16> to vector<14x96xbf16>
    %c1_108 = arith.constant 1 : index
    %c0_109 = arith.constant 0 : index
    %c0_110 = arith.constant 0 : index
    %84 = vector.load %arg2[%c1_108, %c0_109, %c0_110] : memref<5x96x168xbf16, #tpu.memory_space<vmem>>, vector<1x96x168xbf16>
    %85 = vector.shape_cast %84 : vector<1x96x168xbf16> to vector<96x168xbf16>
    %cst_111 = arith.constant dense<0.000000e+00> : vector<14x168xf32>
    %86 = tpu.matmul %83, %85, %cst_111 {dimension_numbers = #tpu.dot_dimension_numbers<[1], [0], [0], [1], [0, 0, 1, 1], [], []>} : vector<14x96xbf16>, vector<96x168xbf16>, vector<14x168xf32> -> vector<14x168xf32>
    %c0_112 = arith.constant 0 : index
    %c0_113 = arith.constant 0 : index
    %87 = vector.load %arg15[%c0_112, %c0_113] : memref<14x168xf32, #tpu.memory_space<vmem>>, vector<14x168xf32>
    %88 = arith.addf %87, %86 : vector<14x168xf32>
    %c0_114 = arith.constant 0 : index
    %c0_115 = arith.constant 0 : index
    %89 = vector.load %arg15[%c0_114, %c0_115] : memref<14x168xf32, #tpu.memory_space<vmem>>, vector<14x168xf32>
    tpu.vector_store %arg15[%c0_114, %c0_115], %88 {strides = array<i32>} : memref<14x168xf32, #tpu.memory_space<vmem>>, vector<14x168xf32>,
    %c0_116 = arith.constant 0 : index
    %c2_117 = arith.constant 2 : index
    %c0_118 = arith.constant 0 : index
    %90 = vector.load %arg1[%c0_116, %c2_117, %c0_118] : memref<1x64x96xbf16, #tpu.memory_space<vmem>>, vector<1x14x96xbf16>
    %91 = vector.shape_cast %90 : vector<1x14x96xbf16> to vector<14x96xbf16>
    %c2_119 = arith.constant 2 : index
    %c0_120 = arith.constant 0 : index
    %c0_121 = arith.constant 0 : index
    %92 = vector.load %arg2[%c2_119, %c0_120, %c0_121] : memref<5x96x168xbf16, #tpu.memory_space<vmem>>, vector<1x96x168xbf16>
    %93 = vector.shape_cast %92 : vector<1x96x168xbf16> to vector<96x168xbf16>
    %cst_122 = arith.constant dense<0.000000e+00> : vector<14x168xf32>
    %94 = tpu.matmul %91, %93, %cst_122 {dimension_numbers = #tpu.dot_dimension_numbers<[1], [0], [0], [1], [0, 0, 1, 1], [], []>} : vector<14x96xbf16>, vector<96x168xbf16>, vector<14x168xf32> -> vector<14x168xf32>
    %c0_123 = arith.constant 0 : index
    %c0_124 = arith.constant 0 : index
    %95 = vector.load %arg15[%c0_123, %c0_124] : memref<14x168xf32, #tpu.memory_space<vmem>>, vector<14x168xf32>
    %96 = arith.addf %95, %94 : vector<14x168xf32>
    %c0_125 = arith.constant 0 : index
    %c0_126 = arith.constant 0 : index
    %97 = vector.load %arg15[%c0_125, %c0_126] : memref<14x168xf32, #tpu.memory_space<vmem>>, vector<14x168xf32>
    tpu.vector_store %arg15[%c0_125, %c0_126], %96 {strides = array<i32>} : memref<14x168xf32, #tpu.memory_space<vmem>>, vector<14x168xf32>,
    %c0_127 = arith.constant 0 : index
    %c18_128 = arith.constant 18 : index
    %c0_129 = arith.constant 0 : index
    %98 = vector.load %arg1[%c0_127, %c18_128, %c0_129] : memref<1x64x96xbf16, #tpu.memory_space<vmem>>, vector<1x14x96xbf16>
    %99 = vector.shape_cast %98 : vector<1x14x96xbf16> to vector<14x96xbf16>
    %c3_130 = arith.constant 3 : index
    %c0_131 = arith.constant 0 : index
    %c0_132 = arith.constant 0 : index
    %100 = vector.load %arg2[%c3_130, %c0_131, %c0_132] : memref<5x96x168xbf16, #tpu.memory_space<vmem>>, vector<1x96x168xbf16>
    %101 = vector.shape_cast %100 : vector<1x96x168xbf16> to vector<96x168xbf16>
    %cst_133 = arith.constant dense<0.000000e+00> : vector<14x168xf32>
    %102 = tpu.matmul %99, %101, %cst_133 {dimension_numbers = #tpu.dot_dimension_numbers<[1], [0], [0], [1], [0, 0, 1, 1], [], []>} : vector<14x96xbf16>, vector<96x168xbf16>, vector<14x168xf32> -> vector<14x168xf32>
    %c0_134 = arith.constant 0 : index
    %c0_135 = arith.constant 0 : index
    %103 = vector.load %arg15[%c0_134, %c0_135] : memref<14x168xf32, #tpu.memory_space<vmem>>, vector<14x168xf32>
    %104 = arith.addf %103, %102 : vector<14x168xf32>
    %c0_136 = arith.constant 0 : index
    %c0_137 = arith.constant 0 : index
    %105 = vector.load %arg15[%c0_136, %c0_137] : memref<14x168xf32, #tpu.memory_space<vmem>>, vector<14x168xf32>
    tpu.vector_store %arg15[%c0_136, %c0_137], %104 {strides = array<i32>} : memref<14x168xf32, #tpu.memory_space<vmem>>, vector<14x168xf32>,
    %c0_138 = arith.constant 0 : index
    %c34 = arith.constant 34 : index
    %c0_139 = arith.constant 0 : index
    %106 = vector.load %arg1[%c0_138, %c34, %c0_139] : memref<1x64x96xbf16, #tpu.memory_space<vmem>>, vector<1x14x96xbf16>
    %107 = vector.shape_cast %106 : vector<1x14x96xbf16> to vector<14x96xbf16>
    %c4_140 = arith.constant 4 : index
    %c0_141 = arith.constant 0 : index
    %c0_142 = arith.constant 0 : index
    %108 = vector.load %arg2[%c4_140, %c0_141, %c0_142] : memref<5x96x168xbf16, #tpu.memory_space<vmem>>, vector<1x96x168xbf16>
    %109 = vector.shape_cast %108 : vector<1x96x168xbf16> to vector<96x168xbf16>
    %cst_143 = arith.constant dense<0.000000e+00> : vector<14x168xf32>
    %110 = tpu.matmul %107, %109, %cst_143 {dimension_numbers = #tpu.dot_dimension_numbers<[1], [0], [0], [1], [0, 0, 1, 1], [], []>} : vector<14x96xbf16>, vector<96x168xbf16>, vector<14x168xf32> -> vector<14x168xf32>
    %c0_144 = arith.constant 0 : index
    %c0_145 = arith.constant 0 : index
    %111 = vector.load %arg15[%c0_144, %c0_145] : memref<14x168xf32, #tpu.memory_space<vmem>>, vector<14x168xf32>
    %112 = arith.addf %111, %110 : vector<14x168xf32>
    %c0_146 = arith.constant 0 : index
    %c0_147 = arith.constant 0 : index
    %113 = vector.load %arg15[%c0_146, %c0_147] : memref<14x168xf32, #tpu.memory_space<vmem>>, vector<14x168xf32>
    tpu.vector_store %arg15[%c0_146, %c0_147], %112 {strides = array<i32>} : memref<14x168xf32, #tpu.memory_space<vmem>>, vector<14x168xf32>,
    %c0_148 = arith.constant 0 : index
    %c48_149 = arith.constant 48 : index
    %c0_150 = arith.constant 0 : index
    %114 = vector.load %arg1[%c0_148, %c48_149, %c0_150] : memref<1x64x96xbf16, #tpu.memory_space<vmem>>, vector<1x14x96xbf16>
    %115 = vector.shape_cast %114 : vector<1x14x96xbf16> to vector<14x96xbf16>
    %c0_151 = arith.constant 0 : index
    %c0_152 = arith.constant 0 : index
    %c0_153 = arith.constant 0 : index
    %116 = vector.load %arg2[%c0_151, %c0_152, %c0_153] : memref<5x96x168xbf16, #tpu.memory_space<vmem>>, vector<1x96x168xbf16>
    %117 = vector.shape_cast %116 : vector<1x96x168xbf16> to vector<96x168xbf16>
    %cst_154 = arith.constant dense<0.000000e+00> : vector<14x168xf32>
    %118 = tpu.matmul %115, %117, %cst_154 {dimension_numbers = #tpu.dot_dimension_numbers<[1], [0], [0], [1], [0, 0, 1, 1], [], []>} : vector<14x96xbf16>, vector<96x168xbf16>, vector<14x168xf32> -> vector<14x168xf32>
    %c0_155 = arith.constant 0 : index
    %c0_156 = arith.constant 0 : index
    %119 = vector.load %arg16[%c0_155, %c0_156] : memref<14x168xf32, #tpu.memory_space<vmem>>, vector<14x168xf32>
    tpu.vector_store %arg16[%c0_155, %c0_156], %118 {strides = array<i32>} : memref<14x168xf32, #tpu.memory_space<vmem>>, vector<14x168xf32>,
    %c0_157 = arith.constant 0 : index
    %c2_158 = arith.constant 2 : index
    %c0_159 = arith.constant 0 : index
    %120 = vector.load %arg1[%c0_157, %c2_158, %c0_159] : memref<1x64x96xbf16, #tpu.memory_space<vmem>>, vector<1x14x96xbf16>
    %121 = vector.shape_cast %120 : vector<1x14x96xbf16> to vector<14x96xbf16>
    %c1_160 = arith.constant 1 : index
    %c0_161 = arith.constant 0 : index
    %c0_162 = arith.constant 0 : index
    %122 = vector.load %arg2[%c1_160, %c0_161, %c0_162] : memref<5x96x168xbf16, #tpu.memory_space<vmem>>, vector<1x96x168xbf16>
    %123 = vector.shape_cast %122 : vector<1x96x168xbf16> to vector<96x168xbf16>
    %cst_163 = arith.constant dense<0.000000e+00> : vector<14x168xf32>
    %124 = tpu.matmul %121, %123, %cst_163 {dimension_numbers = #tpu.dot_dimension_numbers<[1], [0], [0], [1], [0, 0, 1, 1], [], []>} : vector<14x96xbf16>, vector<96x168xbf16>, vector<14x168xf32> -> vector<14x168xf32>
    %c0_164 = arith.constant 0 : index
    %c0_165 = arith.constant 0 : index
    %125 = vector.load %arg16[%c0_164, %c0_165] : memref<14x168xf32, #tpu.memory_space<vmem>>, vector<14x168xf32>
    %126 = arith.addf %125, %124 : vector<14x168xf32>
    %c0_166 = arith.constant 0 : index
    %c0_167 = arith.constant 0 : index
    %127 = vector.load %arg16[%c0_166, %c0_167] : memref<14x168xf32, #tpu.memory_space<vmem>>, vector<14x168xf32>
    tpu.vector_store %arg16[%c0_166, %c0_167], %126 {strides = array<i32>} : memref<14x168xf32, #tpu.memory_space<vmem>>, vector<14x168xf32>,
    %c0_168 = arith.constant 0 : index
    %c18_169 = arith.constant 18 : index
    %c0_170 = arith.constant 0 : index
    %128 = vector.load %arg1[%c0_168, %c18_169, %c0_170] : memref<1x64x96xbf16, #tpu.memory_space<vmem>>, vector<1x14x96xbf16>
    %129 = vector.shape_cast %128 : vector<1x14x96xbf16> to vector<14x96xbf16>
    %c2_171 = arith.constant 2 : index
    %c0_172 = arith.constant 0 : index
    %c0_173 = arith.constant 0 : index
    %130 = vector.load %arg2[%c2_171, %c0_172, %c0_173] : memref<5x96x168xbf16, #tpu.memory_space<vmem>>, vector<1x96x168xbf16>
    %131 = vector.shape_cast %130 : vector<1x96x168xbf16> to vector<96x168xbf16>
    %cst_174 = arith.constant dense<0.000000e+00> : vector<14x168xf32>
    %132 = tpu.matmul %129, %131, %cst_174 {dimension_numbers = #tpu.dot_dimension_numbers<[1], [0], [0], [1], [0, 0, 1, 1], [], []>} : vector<14x96xbf16>, vector<96x168xbf16>, vector<14x168xf32> -> vector<14x168xf32>
    %c0_175 = arith.constant 0 : index
    %c0_176 = arith.constant 0 : index
    %133 = vector.load %arg16[%c0_175, %c0_176] : memref<14x168xf32, #tpu.memory_space<vmem>>, vector<14x168xf32>
    %134 = arith.addf %133, %132 : vector<14x168xf32>
    %c0_177 = arith.constant 0 : index
    %c0_178 = arith.constant 0 : index
    %135 = vector.load %arg16[%c0_177, %c0_178] : memref<14x168xf32, #tpu.memory_space<vmem>>, vector<14x168xf32>
    tpu.vector_store %arg16[%c0_177, %c0_178], %134 {strides = array<i32>} : memref<14x168xf32, #tpu.memory_space<vmem>>, vector<14x168xf32>,
    %c0_179 = arith.constant 0 : index
    %c34_180 = arith.constant 34 : index
    %c0_181 = arith.constant 0 : index
    %136 = vector.load %arg1[%c0_179, %c34_180, %c0_181] : memref<1x64x96xbf16, #tpu.memory_space<vmem>>, vector<1x14x96xbf16>
    %137 = vector.shape_cast %136 : vector<1x14x96xbf16> to vector<14x96xbf16>
    %c3_182 = arith.constant 3 : index
    %c0_183 = arith.constant 0 : index
    %c0_184 = arith.constant 0 : index
    %138 = vector.load %arg2[%c3_182, %c0_183, %c0_184] : memref<5x96x168xbf16, #tpu.memory_space<vmem>>, vector<1x96x168xbf16>
    %139 = vector.shape_cast %138 : vector<1x96x168xbf16> to vector<96x168xbf16>
    %cst_185 = arith.constant dense<0.000000e+00> : vector<14x168xf32>
    %140 = tpu.matmul %137, %139, %cst_185 {dimension_numbers = #tpu.dot_dimension_numbers<[1], [0], [0], [1], [0, 0, 1, 1], [], []>} : vector<14x96xbf16>, vector<96x168xbf16>, vector<14x168xf32> -> vector<14x168xf32>
    %c0_186 = arith.constant 0 : index
    %c0_187 = arith.constant 0 : index
    %141 = vector.load %arg16[%c0_186, %c0_187] : memref<14x168xf32, #tpu.memory_space<vmem>>, vector<14x168xf32>
    %142 = arith.addf %141, %140 : vector<14x168xf32>
    %c0_188 = arith.constant 0 : index
    %c0_189 = arith.constant 0 : index
    %143 = vector.load %arg16[%c0_188, %c0_189] : memref<14x168xf32, #tpu.memory_space<vmem>>, vector<14x168xf32>
    tpu.vector_store %arg16[%c0_188, %c0_189], %142 {strides = array<i32>} : memref<14x168xf32, #tpu.memory_space<vmem>>, vector<14x168xf32>,
    %c0_190 = arith.constant 0 : index
    %c50 = arith.constant 50 : index
    %c0_191 = arith.constant 0 : index
    %144 = vector.load %arg1[%c0_190, %c50, %c0_191] : memref<1x64x96xbf16, #tpu.memory_space<vmem>>, vector<1x14x96xbf16>
    %145 = vector.shape_cast %144 : vector<1x14x96xbf16> to vector<14x96xbf16>
    %c4_192 = arith.constant 4 : index
    %c0_193 = arith.constant 0 : index
    %c0_194 = arith.constant 0 : index
    %146 = vector.load %arg2[%c4_192, %c0_193, %c0_194] : memref<5x96x168xbf16, #tpu.memory_space<vmem>>, vector<1x96x168xbf16>
    %147 = vector.shape_cast %146 : vector<1x96x168xbf16> to vector<96x168xbf16>
    %cst_195 = arith.constant dense<0.000000e+00> : vector<14x168xf32>
    %148 = tpu.matmul %145, %147, %cst_195 {dimension_numbers = #tpu.dot_dimension_numbers<[1], [0], [0], [1], [0, 0, 1, 1], [], []>} : vector<14x96xbf16>, vector<96x168xbf16>, vector<14x168xf32> -> vector<14x168xf32>
    %c0_196 = arith.constant 0 : index
    %c0_197 = arith.constant 0 : index
    %149 = vector.load %arg16[%c0_196, %c0_197] : memref<14x168xf32, #tpu.memory_space<vmem>>, vector<14x168xf32>
    %150 = arith.addf %149, %148 : vector<14x168xf32>
    %c0_198 = arith.constant 0 : index
    %c0_199 = arith.constant 0 : index
    %151 = vector.load %arg16[%c0_198, %c0_199] : memref<14x168xf32, #tpu.memory_space<vmem>>, vector<14x168xf32>
    tpu.vector_store %arg16[%c0_198, %c0_199], %150 {strides = array<i32>} : memref<14x168xf32, #tpu.memory_space<vmem>>, vector<14x168xf32>,
    %c0_200 = arith.constant 0 : index
    %c0_201 = arith.constant 0 : index
    %152 = vector.load %arg3[%c0_200, %c0_201] : memref<1x84xf32, #tpu.memory_space<vmem>>, vector<1x84xf32>
    %c0_202 = arith.constant 0 : index
    %c0_203 = arith.constant 0 : index
    %153 = vector.load %arg13[%c0_202, %c0_203] : memref<14x168xf32, #tpu.memory_space<vmem>>, vector<14x168xf32>
    %154 = vector.extract_strided_slice %153 {offsets = [0, 0], sizes = [14, 84], strides = [1, 1]} : vector<14x168xf32> to vector<14x84xf32>
    %155 = vector.extract_strided_slice %153 {offsets = [0, 84], sizes = [14, 84], strides = [1, 1]} : vector<14x168xf32> to vector<14x84xf32>
    %156 = arith.maximumf %154, %155 : vector<14x84xf32>
    %c0_204 = arith.constant 0 : index
    %c0_205 = arith.constant 0 : index
    %157 = vector.load %arg14[%c0_204, %c0_205] : memref<14x168xf32, #tpu.memory_space<vmem>>, vector<14x168xf32>
    %158 = vector.extract_strided_slice %157 {offsets = [0, 0], sizes = [14, 84], strides = [1, 1]} : vector<14x168xf32> to vector<14x84xf32>
    %159 = vector.extract_strided_slice %157 {offsets = [0, 84], sizes = [14, 84], strides = [1, 1]} : vector<14x168xf32> to vector<14x84xf32>
    %160 = arith.maximumf %158, %159 : vector<14x84xf32>
    %161 = arith.maximumf %156, %160 : vector<14x84xf32>
    %162 = vector.broadcast %152 : vector<1x84xf32> to vector<14x84xf32>
    %163 = arith.addf %161, %162 : vector<14x84xf32>
    %cst_206 = arith.constant 0.000000e+00 : f32
    %164 = vector.broadcast %cst_206 : f32 to vector<14x84xf32>
    %165 = arith.maximumf %163, %164 : vector<14x84xf32>
    %c0_207 = arith.constant 0 : index
    %c0_208 = arith.constant 0 : index
    %166 = vector.load %arg15[%c0_207, %c0_208] : memref<14x168xf32, #tpu.memory_space<vmem>>, vector<14x168xf32>
    %167 = vector.extract_strided_slice %166 {offsets = [0, 0], sizes = [14, 84], strides = [1, 1]} : vector<14x168xf32> to vector<14x84xf32>
    %168 = vector.extract_strided_slice %166 {offsets = [0, 84], sizes = [14, 84], strides = [1, 1]} : vector<14x168xf32> to vector<14x84xf32>
    %169 = arith.maximumf %167, %168 : vector<14x84xf32>
    %c0_209 = arith.constant 0 : index
    %c0_210 = arith.constant 0 : index
    %170 = vector.load %arg16[%c0_209, %c0_210] : memref<14x168xf32, #tpu.memory_space<vmem>>, vector<14x168xf32>
    %171 = vector.extract_strided_slice %170 {offsets = [0, 0], sizes = [14, 84], strides = [1, 1]} : vector<14x168xf32> to vector<14x84xf32>
    %172 = vector.extract_strided_slice %170 {offsets = [0, 84], sizes = [14, 84], strides = [1, 1]} : vector<14x168xf32> to vector<14x84xf32>
    %173 = arith.maximumf %171, %172 : vector<14x84xf32>
    %174 = arith.maximumf %169, %173 : vector<14x84xf32>
    %175 = vector.broadcast %152 : vector<1x84xf32> to vector<14x84xf32>
    %176 = arith.addf %174, %175 : vector<14x84xf32>
    %cst_211 = arith.constant 0.000000e+00 : f32
    %177 = vector.broadcast %cst_211 : f32 to vector<14x84xf32>
    %178 = arith.maximumf %176, %177 : vector<14x84xf32>
    %179 = arith.truncf %165 : vector<14x84xf32> to vector<14x84xbf16>
    %180 = arith.truncf %178 : vector<14x84xf32> to vector<14x84xbf16>
    %181 = vector.extract_strided_slice %179 {offsets = [0, 0], sizes = [10, 84], strides = [1, 1]} : vector<14x84xbf16> to vector<10x84xbf16>
    %c0_212 = arith.constant 0 : index
    %c0_213 = arith.constant 0 : index
    %c0_214 = arith.constant 0 : index
    %182 = vector.load %arg4[%c0_212, %c0_213, %c0_214] : memref<5x84x160xbf16, #tpu.memory_space<vmem>>, vector<1x84x160xbf16>
    %183 = vector.shape_cast %182 : vector<1x84x160xbf16> to vector<84x160xbf16>
    %cst_215 = arith.constant dense<0.000000e+00> : vector<10x160xf32>
    %184 = tpu.matmul %181, %183, %cst_215 {dimension_numbers = #tpu.dot_dimension_numbers<[1], [0], [0], [1], [0, 0, 1, 1], [], []>} : vector<10x84xbf16>, vector<84x160xbf16>, vector<10x160xf32> -> vector<10x160xf32>
    %185 = vector.extract_strided_slice %180 {offsets = [0, 0], sizes = [10, 84], strides = [1, 1]} : vector<14x84xbf16> to vector<10x84xbf16>
    %c1_216 = arith.constant 1 : index
    %c0_217 = arith.constant 0 : index
    %c0_218 = arith.constant 0 : index
    %186 = vector.load %arg4[%c1_216, %c0_217, %c0_218] : memref<5x84x160xbf16, #tpu.memory_space<vmem>>, vector<1x84x160xbf16>
    %187 = vector.shape_cast %186 : vector<1x84x160xbf16> to vector<84x160xbf16>
    %cst_219 = arith.constant dense<0.000000e+00> : vector<10x160xf32>
    %188 = tpu.matmul %185, %187, %cst_219 {dimension_numbers = #tpu.dot_dimension_numbers<[1], [0], [0], [1], [0, 0, 1, 1], [], []>} : vector<10x84xbf16>, vector<84x160xbf16>, vector<10x160xf32> -> vector<10x160xf32>
    %189 = arith.addf %184, %188 : vector<10x160xf32>
    %190 = vector.extract_strided_slice %179 {offsets = [2, 0], sizes = [10, 84], strides = [1, 1]} : vector<14x84xbf16> to vector<10x84xbf16>
    %c2_220 = arith.constant 2 : index
    %c0_221 = arith.constant 0 : index
    %c0_222 = arith.constant 0 : index
    %191 = vector.load %arg4[%c2_220, %c0_221, %c0_222] : memref<5x84x160xbf16, #tpu.memory_space<vmem>>, vector<1x84x160xbf16>
    %192 = vector.shape_cast %191 : vector<1x84x160xbf16> to vector<84x160xbf16>
    %cst_223 = arith.constant dense<0.000000e+00> : vector<10x160xf32>
    %193 = tpu.matmul %190, %192, %cst_223 {dimension_numbers = #tpu.dot_dimension_numbers<[1], [0], [0], [1], [0, 0, 1, 1], [], []>} : vector<10x84xbf16>, vector<84x160xbf16>, vector<10x160xf32> -> vector<10x160xf32>
    %194 = arith.addf %189, %193 : vector<10x160xf32>
    %195 = vector.extract_strided_slice %180 {offsets = [2, 0], sizes = [10, 84], strides = [1, 1]} : vector<14x84xbf16> to vector<10x84xbf16>
    %c3_224 = arith.constant 3 : index
    %c0_225 = arith.constant 0 : index
    %c0_226 = arith.constant 0 : index
    %196 = vector.load %arg4[%c3_224, %c0_225, %c0_226] : memref<5x84x160xbf16, #tpu.memory_space<vmem>>, vector<1x84x160xbf16>
    %197 = vector.shape_cast %196 : vector<1x84x160xbf16> to vector<84x160xbf16>
    %cst_227 = arith.constant dense<0.000000e+00> : vector<10x160xf32>
    %198 = tpu.matmul %195, %197, %cst_227 {dimension_numbers = #tpu.dot_dimension_numbers<[1], [0], [0], [1], [0, 0, 1, 1], [], []>} : vector<10x84xbf16>, vector<84x160xbf16>, vector<10x160xf32> -> vector<10x160xf32>
    %199 = arith.addf %194, %198 : vector<10x160xf32>
    %200 = vector.extract_strided_slice %179 {offsets = [4, 0], sizes = [10, 84], strides = [1, 1]} : vector<14x84xbf16> to vector<10x84xbf16>
    %c4_228 = arith.constant 4 : index
    %c0_229 = arith.constant 0 : index
    %c0_230 = arith.constant 0 : index
    %201 = vector.load %arg4[%c4_228, %c0_229, %c0_230] : memref<5x84x160xbf16, #tpu.memory_space<vmem>>, vector<1x84x160xbf16>
    %202 = vector.shape_cast %201 : vector<1x84x160xbf16> to vector<84x160xbf16>
    %cst_231 = arith.constant dense<0.000000e+00> : vector<10x160xf32>
    %203 = tpu.matmul %200, %202, %cst_231 {dimension_numbers = #tpu.dot_dimension_numbers<[1], [0], [0], [1], [0, 0, 1, 1], [], []>} : vector<10x84xbf16>, vector<84x160xbf16>, vector<10x160xf32> -> vector<10x160xf32>
    %204 = arith.addf %199, %203 : vector<10x160xf32>
    %205 = vector.extract_strided_slice %204 {offsets = [0, 0], sizes = [10, 80], strides = [1, 1]} : vector<10x160xf32> to vector<10x80xf32>
    %206 = vector.extract_strided_slice %204 {offsets = [0, 80], sizes = [10, 80], strides = [1, 1]} : vector<10x160xf32> to vector<10x80xf32>
    %207 = arith.maximumf %205, %206 : vector<10x80xf32>
    %208 = vector.extract_strided_slice %180 {offsets = [0, 0], sizes = [10, 84], strides = [1, 1]} : vector<14x84xbf16> to vector<10x84xbf16>
    %c0_232 = arith.constant 0 : index
    %c0_233 = arith.constant 0 : index
    %c0_234 = arith.constant 0 : index
    %209 = vector.load %arg4[%c0_232, %c0_233, %c0_234] : memref<5x84x160xbf16, #tpu.memory_space<vmem>>, vector<1x84x160xbf16>
    %210 = vector.shape_cast %209 : vector<1x84x160xbf16> to vector<84x160xbf16>
    %cst_235 = arith.constant dense<0.000000e+00> : vector<10x160xf32>
    %211 = tpu.matmul %208, %210, %cst_235 {dimension_numbers = #tpu.dot_dimension_numbers<[1], [0], [0], [1], [0, 0, 1, 1], [], []>} : vector<10x84xbf16>, vector<84x160xbf16>, vector<10x160xf32> -> vector<10x160xf32>
    %212 = vector.extract_strided_slice %179 {offsets = [2, 0], sizes = [10, 84], strides = [1, 1]} : vector<14x84xbf16> to vector<10x84xbf16>
    %c1_236 = arith.constant 1 : index
    %c0_237 = arith.constant 0 : index
    %c0_238 = arith.constant 0 : index
    %213 = vector.load %arg4[%c1_236, %c0_237, %c0_238] : memref<5x84x160xbf16, #tpu.memory_space<vmem>>, vector<1x84x160xbf16>
    %214 = vector.shape_cast %213 : vector<1x84x160xbf16> to vector<84x160xbf16>
    %cst_239 = arith.constant dense<0.000000e+00> : vector<10x160xf32>
    %215 = tpu.matmul %212, %214, %cst_239 {dimension_numbers = #tpu.dot_dimension_numbers<[1], [0], [0], [1], [0, 0, 1, 1], [], []>} : vector<10x84xbf16>, vector<84x160xbf16>, vector<10x160xf32> -> vector<10x160xf32>
    %216 = arith.addf %211, %215 : vector<10x160xf32>
    %217 = vector.extract_strided_slice %180 {offsets = [2, 0], sizes = [10, 84], strides = [1, 1]} : vector<14x84xbf16> to vector<10x84xbf16>
    %c2_240 = arith.constant 2 : index
    %c0_241 = arith.constant 0 : index
    %c0_242 = arith.constant 0 : index
    %218 = vector.load %arg4[%c2_240, %c0_241, %c0_242] : memref<5x84x160xbf16, #tpu.memory_space<vmem>>, vector<1x84x160xbf16>
    %219 = vector.shape_cast %218 : vector<1x84x160xbf16> to vector<84x160xbf16>
    %cst_243 = arith.constant dense<0.000000e+00> : vector<10x160xf32>
    %220 = tpu.matmul %217, %219, %cst_243 {dimension_numbers = #tpu.dot_dimension_numbers<[1], [0], [0], [1], [0, 0, 1, 1], [], []>} : vector<10x84xbf16>, vector<84x160xbf16>, vector<10x160xf32> -> vector<10x160xf32>
    %221 = arith.addf %216, %220 : vector<10x160xf32>
    %222 = vector.extract_strided_slice %179 {offsets = [4, 0], sizes = [10, 84], strides = [1, 1]} : vector<14x84xbf16> to vector<10x84xbf16>
    %c3_244 = arith.constant 3 : index
    %c0_245 = arith.constant 0 : index
    %c0_246 = arith.constant 0 : index
    %223 = vector.load %arg4[%c3_244, %c0_245, %c0_246] : memref<5x84x160xbf16, #tpu.memory_space<vmem>>, vector<1x84x160xbf16>
    %224 = vector.shape_cast %223 : vector<1x84x160xbf16> to vector<84x160xbf16>
    %cst_247 = arith.constant dense<0.000000e+00> : vector<10x160xf32>
    %225 = tpu.matmul %222, %224, %cst_247 {dimension_numbers = #tpu.dot_dimension_numbers<[1], [0], [0], [1], [0, 0, 1, 1], [], []>} : vector<10x84xbf16>, vector<84x160xbf16>, vector<10x160xf32> -> vector<10x160xf32>
    %226 = arith.addf %221, %225 : vector<10x160xf32>
    %227 = vector.extract_strided_slice %180 {offsets = [4, 0], sizes = [10, 84], strides = [1, 1]} : vector<14x84xbf16> to vector<10x84xbf16>
    %c4_248 = arith.constant 4 : index
    %c0_249 = arith.constant 0 : index
    %c0_250 = arith.constant 0 : index
    %228 = vector.load %arg4[%c4_248, %c0_249, %c0_250] : memref<5x84x160xbf16, #tpu.memory_space<vmem>>, vector<1x84x160xbf16>
    %229 = vector.shape_cast %228 : vector<1x84x160xbf16> to vector<84x160xbf16>
    %cst_251 = arith.constant dense<0.000000e+00> : vector<10x160xf32>
    %230 = tpu.matmul %227, %229, %cst_251 {dimension_numbers = #tpu.dot_dimension_numbers<[1], [0], [0], [1], [0, 0, 1, 1], [], []>} : vector<10x84xbf16>, vector<84x160xbf16>, vector<10x160xf32> -> vector<10x160xf32>
    %231 = arith.addf %226, %230 : vector<10x160xf32>
    %232 = vector.extract_strided_slice %231 {offsets = [0, 0], sizes = [10, 80], strides = [1, 1]} : vector<10x160xf32> to vector<10x80xf32>
    %233 = vector.extract_strided_slice %231 {offsets = [0, 80], sizes = [10, 80], strides = [1, 1]} : vector<10x160xf32> to vector<10x80xf32>
    %234 = arith.maximumf %232, %233 : vector<10x80xf32>
    %235 = arith.maximumf %207, %234 : vector<10x80xf32>
    %c0_252 = arith.constant 0 : index
    %c0_253 = arith.constant 0 : index
    %236 = vector.load %arg5[%c0_252, %c0_253] : memref<1x80xf32, #tpu.memory_space<vmem>>, vector<1x80xf32>
    %237 = vector.broadcast %236 : vector<1x80xf32> to vector<10x80xf32>
    %238 = arith.addf %235, %237 : vector<10x80xf32>
    %cst_254 = arith.constant 0.000000e+00 : f32
    %239 = vector.broadcast %cst_254 : f32 to vector<10x80xf32>
    %240 = arith.maximumf %238, %239 : vector<10x80xf32>
    %241 = arith.truncf %240 : vector<10x80xf32> to vector<10x80xbf16>
    %242 = vector.extract_strided_slice %241 {offsets = [0, 0], sizes = [2, 80], strides = [1, 1]} : vector<10x80xbf16> to vector<2x80xbf16>
    %c0_255 = arith.constant 0 : index
    %c0_256 = arith.constant 0 : index
    %243 = vector.load %arg6[%c0_255, %c0_256] : memref<400x128xbf16, #tpu.memory_space<vmem>>, vector<80x128xbf16>
    %cst_257 = arith.constant dense<0.000000e+00> : vector<2x128xf32>
    %244 = tpu.matmul %242, %243, %cst_257 {dimension_numbers = #tpu.dot_dimension_numbers<[1], [0], [0], [1], [0, 0, 1, 1], [], []>} : vector<2x80xbf16>, vector<80x128xbf16>, vector<2x128xf32> -> vector<2x128xf32>
    %245 = vector.extract_strided_slice %241 {offsets = [2, 0], sizes = [2, 80], strides = [1, 1]} : vector<10x80xbf16> to vector<2x80xbf16>
    %c80 = arith.constant 80 : index
    %c0_258 = arith.constant 0 : index
    %246 = vector.load %arg6[%c80, %c0_258] : memref<400x128xbf16, #tpu.memory_space<vmem>>, vector<80x128xbf16>
    %cst_259 = arith.constant dense<0.000000e+00> : vector<2x128xf32>
    %247 = tpu.matmul %245, %246, %cst_259 {dimension_numbers = #tpu.dot_dimension_numbers<[1], [0], [0], [1], [0, 0, 1, 1], [], []>} : vector<2x80xbf16>, vector<80x128xbf16>, vector<2x128xf32> -> vector<2x128xf32>
    %248 = arith.addf %244, %247 : vector<2x128xf32>
    %249 = vector.extract_strided_slice %241 {offsets = [4, 0], sizes = [2, 80], strides = [1, 1]} : vector<10x80xbf16> to vector<2x80xbf16>
    %c160 = arith.constant 160 : index
    %c0_260 = arith.constant 0 : index
    %250 = vector.load %arg6[%c160, %c0_260] : memref<400x128xbf16, #tpu.memory_space<vmem>>, vector<80x128xbf16>
    %cst_261 = arith.constant dense<0.000000e+00> : vector<2x128xf32>
    %251 = tpu.matmul %249, %250, %cst_261 {dimension_numbers = #tpu.dot_dimension_numbers<[1], [0], [0], [1], [0, 0, 1, 1], [], []>} : vector<2x80xbf16>, vector<80x128xbf16>, vector<2x128xf32> -> vector<2x128xf32>
    %252 = arith.addf %248, %251 : vector<2x128xf32>
    %253 = vector.extract_strided_slice %241 {offsets = [6, 0], sizes = [2, 80], strides = [1, 1]} : vector<10x80xbf16> to vector<2x80xbf16>
    %c240 = arith.constant 240 : index
    %c0_262 = arith.constant 0 : index
    %254 = vector.load %arg6[%c240, %c0_262] : memref<400x128xbf16, #tpu.memory_space<vmem>>, vector<80x128xbf16>
    %cst_263 = arith.constant dense<0.000000e+00> : vector<2x128xf32>
    %255 = tpu.matmul %253, %254, %cst_263 {dimension_numbers = #tpu.dot_dimension_numbers<[1], [0], [0], [1], [0, 0, 1, 1], [], []>} : vector<2x80xbf16>, vector<80x128xbf16>, vector<2x128xf32> -> vector<2x128xf32>
    %256 = arith.addf %252, %255 : vector<2x128xf32>
    %257 = vector.extract_strided_slice %241 {offsets = [8, 0], sizes = [2, 80], strides = [1, 1]} : vector<10x80xbf16> to vector<2x80xbf16>
    %c320 = arith.constant 320 : index
    %c0_264 = arith.constant 0 : index
    %258 = vector.load %arg6[%c320, %c0_264] : memref<400x128xbf16, #tpu.memory_space<vmem>>, vector<80x128xbf16>
    %cst_265 = arith.constant dense<0.000000e+00> : vector<2x128xf32>
    %259 = tpu.matmul %257, %258, %cst_265 {dimension_numbers = #tpu.dot_dimension_numbers<[1], [0], [0], [1], [0, 0, 1, 1], [], []>} : vector<2x80xbf16>, vector<80x128xbf16>, vector<2x128xf32> -> vector<2x128xf32>
    %260 = arith.addf %256, %259 : vector<2x128xf32>
    %c0_266 = arith.constant 0 : index
    %c0_267 = arith.constant 0 : index
    %261 = vector.load %arg7[%c0_266, %c0_267] : memref<1x128xf32, #tpu.memory_space<vmem>>, vector<1x128xf32>
    %262 = vector.broadcast %261 : vector<1x128xf32> to vector<2x128xf32>
    %263 = arith.addf %260, %262 : vector<2x128xf32>
    %cst_268 = arith.constant 0.000000e+00 : f32
    %264 = vector.broadcast %cst_268 : f32 to vector<2x128xf32>
    %265 = arith.maximumf %263, %264 : vector<2x128xf32>
    %266 = arith.truncf %265 : vector<2x128xf32> to vector<2x128xbf16>
    %c0_269 = arith.constant 0 : index
    %c0_270 = arith.constant 0 : index
    %267 = vector.load %arg8[%c0_269, %c0_270] : memref<128x128xbf16, #tpu.memory_space<vmem>>, vector<128x128xbf16>
    %cst_271 = arith.constant dense<0.000000e+00> : vector<2x128xf32>
    %268 = tpu.matmul %266, %267, %cst_271 {dimension_numbers = #tpu.dot_dimension_numbers<[1], [0], [0], [1], [0, 0, 1, 1], [], []>} : vector<2x128xbf16>, vector<128x128xbf16>, vector<2x128xf32> -> vector<2x128xf32>
    %c0_272 = arith.constant 0 : index
    %c0_273 = arith.constant 0 : index
    %269 = vector.load %arg9[%c0_272, %c0_273] : memref<1x128xf32, #tpu.memory_space<vmem>>, vector<1x128xf32>
    %270 = vector.broadcast %269 : vector<1x128xf32> to vector<2x128xf32>
    %271 = arith.addf %268, %270 : vector<2x128xf32>
    %cst_274 = arith.constant 0.000000e+00 : f32
    %272 = vector.broadcast %cst_274 : f32 to vector<2x128xf32>
    %273 = arith.maximumf %271, %272 : vector<2x128xf32>
    %274 = arith.truncf %273 : vector<2x128xf32> to vector<2x128xbf16>
    %c0_275 = arith.constant 0 : index
    %c0_276 = arith.constant 0 : index
    %275 = vector.load %arg10[%c0_275, %c0_276] : memref<128x128xbf16, #tpu.memory_space<vmem>>, vector<128x128xbf16>
    %cst_277 = arith.constant dense<0.000000e+00> : vector<2x128xf32>
    %276 = tpu.matmul %274, %275, %cst_277 {dimension_numbers = #tpu.dot_dimension_numbers<[1], [0], [0], [1], [0, 0, 1, 1], [], []>} : vector<2x128xbf16>, vector<128x128xbf16>, vector<2x128xf32> -> vector<2x128xf32>
    %c0_278 = arith.constant 0 : index
    %c0_279 = arith.constant 0 : index
    %277 = vector.load %arg11[%c0_278, %c0_279] : memref<1x128xf32, #tpu.memory_space<vmem>>, vector<1x128xf32>
    %278 = vector.broadcast %277 : vector<1x128xf32> to vector<2x128xf32>
    %279 = arith.addf %276, %278 : vector<2x128xf32>
    %c0_280 = arith.constant 0 : index
    %c0_281 = arith.constant 0 : index
    %c0_282 = arith.constant 0 : index
    %280 = vector.load %arg12[%c0_280, %c0_281, %c0_282] : memref<1x2x128xf32, #tpu.memory_space<vmem>>, vector<1x2x128xf32>
    %281 = vector.shape_cast %280 : vector<1x2x128xf32> to vector<2x128xf32>
    %282 = vector.shape_cast %279 : vector<2x128xf32> to vector<1x2x128xf32>
    tpu.vector_store %arg12[%c0_280, %c0_281, %c0_282], %282 {strides = array<i32>} : memref<1x2x128xf32, #tpu.memory_space<vmem>>, vector<1x2x128xf32>,
    return
  }
  func.func @transform_0(%arg0: i32) -> (i32, i32, i32) {
    %c0_i32 = arith.constant 0 : i32
    %c0_i32_0 = arith.constant 0 : i32
    %c0_i32_1 = arith.constant 0 : i32
    return %arg0, %c0_i32, %c0_i32_0 : i32, i32, i32
  }
  func.func @transform_1(%arg0: i32) -> (i32, i32, i32) {
    %c0_i32 = arith.constant 0 : i32
    %c0_i32_0 = arith.constant 0 : i32
    %c0_i32_1 = arith.constant 0 : i32
    %c0_i32_2 = arith.constant 0 : i32
    return %c0_i32, %c0_i32_0, %c0_i32_1 : i32, i32, i32
  }
  func.func @transform_2(%arg0: i32) -> (i32, i32) {
    %c0_i32 = arith.constant 0 : i32
    %c0_i32_0 = arith.constant 0 : i32
    %c0_i32_1 = arith.constant 0 : i32
    return %c0_i32, %c0_i32_0 : i32, i32
  }
  func.func @transform_3(%arg0: i32) -> (i32, i32, i32) {
    %c0_i32 = arith.constant 0 : i32
    %c0_i32_0 = arith.constant 0 : i32
    %c0_i32_1 = arith.constant 0 : i32
    %c0_i32_2 = arith.constant 0 : i32
    return %c0_i32, %c0_i32_0, %c0_i32_1 : i32, i32, i32
  }
  func.func @transform_4(%arg0: i32) -> (i32, i32) {
    %c0_i32 = arith.constant 0 : i32
    %c0_i32_0 = arith.constant 0 : i32
    %c0_i32_1 = arith.constant 0 : i32
    return %c0_i32, %c0_i32_0 : i32, i32
  }
  func.func @transform_5(%arg0: i32) -> (i32, i32) {
    %c0_i32 = arith.constant 0 : i32
    %c0_i32_0 = arith.constant 0 : i32
    %c0_i32_1 = arith.constant 0 : i32
    return %c0_i32, %c0_i32_0 : i32, i32
  }
  func.func @transform_6(%arg0: i32) -> (i32, i32) {
    %c0_i32 = arith.constant 0 : i32
    %c0_i32_0 = arith.constant 0 : i32
    %c0_i32_1 = arith.constant 0 : i32
    return %c0_i32, %c0_i32_0 : i32, i32
  }
  func.func @transform_7(%arg0: i32) -> (i32, i32) {
    %c0_i32 = arith.constant 0 : i32
    %c0_i32_0 = arith.constant 0 : i32
    %c0_i32_1 = arith.constant 0 : i32
    return %c0_i32, %c0_i32_0 : i32, i32
  }
  func.func @transform_8(%arg0: i32) -> (i32, i32) {
    %c0_i32 = arith.constant 0 : i32
    %c0_i32_0 = arith.constant 0 : i32
    %c0_i32_1 = arith.constant 0 : i32
    return %c0_i32, %c0_i32_0 : i32, i32
  }
  func.func @transform_9(%arg0: i32) -> (i32, i32) {
    %c0_i32 = arith.constant 0 : i32
    %c0_i32_0 = arith.constant 0 : i32
    %c0_i32_1 = arith.constant 0 : i32
    return %c0_i32, %c0_i32_0 : i32, i32
  }
  func.func @transform_10(%arg0: i32) -> (i32, i32) {
    %c0_i32 = arith.constant 0 : i32
    %c0_i32_0 = arith.constant 0 : i32
    %c0_i32_1 = arith.constant 0 : i32
    return %c0_i32, %c0_i32_0 : i32, i32
  }
  func.func @transform_11(%arg0: i32) -> (i32, i32, i32) {
    %c0_i32 = arith.constant 0 : i32
    %c0_i32_0 = arith.constant 0 : i32
    %c0_i32_1 = arith.constant 0 : i32
    return %arg0, %c0_i32, %c0_i32_0 : i32, i32, i32
  }
}

</mosaic_0001>

<bundles_post_ra>
// kernel: convnet_forward.1
= control target key start
LH: loop header
LB: loop body
LE: loop exit
PB: predicated region body
PF: predicated region fallthrough
CT: control target
= control target key end

     0   :  { %v7033_v2 = vmov 0   ;;  %vm119_vm0 = vcmask 785408   ;;  %s7021_s0 = inlined_call_operand.vmem [shape: bf16[1,64,96], index: 0, kind: input, shape index: {}]   ;;  %s7022_s1 = inlined_call_operand.vmem [shape: bf16[5,96,168], index: 1, kind: input, shape index: {}]   ;;  %s7023_s2 = inlined_call_operand.vmem [shape: f32[1,84], index: 2, kind: input, shape index: {}]   ;;  %s7024_s3 = inlined_call_operand.vmem [shape: bf16[5,84,160], index: 3, kind: input, shape index: {}]   ;;  %s7025_s4 = inlined_call_operand.vmem [shape: f32[1,80], index: 4, kind: input, shape index: {}]   ;;  %s7026_s5 = inlined_call_operand.vmem [shape: bf16[400,128], index: 5, kind: input, shape index: {}]   ;;  %s7027_s6 = inlined_call_operand.vmem [shape: f32[1,128], index: 6, kind: input, shape index: {}]   ;;  %s7028_s7 = inlined_call_operand.vmem [shape: bf16[128,128], index: 7, kind: input, shape index: {}]   ;;  %s7029_s8 = inlined_call_operand.vmem [shape: f32[1,128], index: 8, kind: input, shape index: {}]   ;;  %s7030_s9 = inlined_call_operand.vmem [shape: bf16[128,128], index: 9, kind: input, shape index: {}]   ;;  %s7031_s10 = inlined_call_operand.vmem [shape: f32[1,128], index: 10, kind: input, shape index: {}]   ;;  %s7032_s11 = inlined_call_operand.hbm [shape: f32[1,2,128], index: 11, kind: output, shape index: {}]  }
   0x1   :  { %v5705_v0 = vld [vmem:[%s7022_s1 + $0x4] ss:$8 sps:$4 sm:$0xff]   ;;  %v5710_v1 = vld [vmem:[%s7022_s1] ss:$8 sps:$4 sm:$0xff]   ;;  %155 = vmatprep.mubr.bf16.mxu0 %v7033_v2  ;;  %287 = vmatprep.mubr.bf16.mxu1 %v7033_v2  ;;  %v5718_v3 = vld [vmem:[%s7022_s1 + $0x14] ss:$8 sps:$4 sm:$0xff]  }
   0x2   :  { %123 = vmatprep.subr.bf16.mxu0 %v5705_v0  ;;  %v5723_v4 = vld [vmem:[%s7022_s1 + $0x10] ss:$8 sps:$4 sm:$0xff]   ;;  %v5729_v5 = vld [vmem:[%s7022_s1 + $0x64] ss:$8 sps:$4 sm:$0xff]   ;;  %v5740_v7 = vld [vmem:[%s7022_s1 + $0x60] ss:$8 sps:$4 sm:$0xff]  }
   0x3   :  { %124 = vmatpush1.bf16.msra.mxu0 %v5710_v1  ;;  %v5735_v6 = vld [vmem:[%s7022_s1 + $0x24] ss:$8 sps:$4 sm:$0xff]   ;;  %255 = vmatprep.subr.bf16.mxu1 %v5729_v5  ;;  %v5747_v8 = vld [vmem:[%s7022_s1 + $0x74] ss:$8 sps:$4 sm:$0xff]   ;;  %v5753_v9 = vld [vmem:[%s7022_s1 + $0x20] ss:$8 sps:$4 sm:$0xff]  }
   0x4   :  { %125 = vmatprep.subr.bf16.mxu0 %v5718_v3  ;;  %256 = vmatpush1.bf16.msra.mxu1 %v5740_v7  ;;  %v5758_v10 = vld [vmem:[%s7022_s1 + $0x34] ss:$8 sps:$4 sm:$0xff]   ;;  %v5763_v11 = vld [vmem:[%s7022_s1 + $0x70] ss:$8 sps:$4 sm:$0xff]   ;;  %v5770_v12 = vld [vmem:[%s7022_s1 + $0x84] ss:$8 sps:$4 sm:$0xff]  }
   0x5   :  { %257 = vmatprep.subr.bf16.mxu1 %v5747_v8  ;;  %v5776_v13 = vld [vmem:[%s7022_s1 + $0x30] ss:$8 sps:$4 sm:$0xff]   ;;  %v5781_v14 = vld [vmem:[%s7022_s1 + $0x80] ss:$8 sps:$4 sm:$0xff]   ;;  %v5788_v15 = vld [vmem:[%s7022_s1 + $0x94] ss:$8 sps:$4 sm:$0xff]  }
   0x6   :  { %v5794_v16 = vld [vmem:[%s7022_s1 + $0x44] ss:$8 sps:$4 sm:$0xff]   ;;  %v5800_v17 = vld [vmem:[%s7022_s1 + $0x90] ss:$8 sps:$4 sm:$0xff]   ;;  %v5806_v18 = vld [vmem:[%s7022_s1 + $0x40] ss:$8 sps:$4 sm:$0xff]  }
   0x7   :  { %126 = vmatpush1.bf16.msra.mxu0 %v5723_v4  ;;  %v5812_v19 = vld [vmem:[%s7022_s1 + $0xa4] ss:$8 sps:$4 sm:$0xff]   ;;  %v5818_v20 = vld [vmem:[%s7022_s1 + $0x54] ss:$8 sps:$4 sm:$0xff]   ;;  %v5824_v21 = vld [vmem:[%s7022_s1 + $0xa0] ss:$8 sps:$4 sm:$0xff]  }
   0x8   :  { %127 = vmatprep.subr.bf16.mxu0 %v5735_v6  ;;  %258 = vmatpush1.bf16.msra.mxu1 %v5763_v11  ;;  %v5830_v22 = vld [vmem:[%s7022_s1 + $0x50] ss:$8 sps:$4 sm:$0xff]   ;;  %v5836_v23 = vld [vmem:[%s7022_s1 + $0xb4] ss:$8 sps:$4 sm:$0xff]   ;;  %v5318_v24 = vld [vmem:[%s7021_s0] sm:$0x7f]  }
   0x9   :  { %259 = vmatprep.subr.bf16.mxu1 %v5770_v12  ;;  %v5845_v25 = vld [vmem:[%s7022_s1 + $0xc4] ss:$8 sps:$4 sm:$0xff]   ;;  %v5850_v26 = vld [vmem:[%s7022_s1 + $0xc0] ss:$8 sps:$4 sm:$0xff]   ;;  %v5856_v27 = vld [vmem:[%s7022_s1 + $0xb0] ss:$8 sps:$4 sm:$0xff]  }
   0xa   :  { %v5863_v28 = vld [vmem:[%s7022_s1 + $0x124] ss:$8 sps:$4 sm:$0xff]   ;;  %v5869_v29 = vld [vmem:[%s7022_s1 + $0xd4] ss:$8 sps:$4 sm:$0xff]   ;;  %v5874_v30 = vld [vmem:[%s7022_s1 + $0xd0] ss:$8 sps:$4 sm:$0xff]  }
   0xb   :  { %128 = vmatpush1.bf16.msra.mxu0 %v5753_v9  ;;  %v5332_v31 = vld [vmem:[%s7021_s0 + $0x8] sm:$0x7f]   ;;  %v5891_v33 = vld [vmem:[%s7022_s1 + $0x134] ss:$8 sps:$4 sm:$0xff]   ;;  %v5910_v36 = vld [vmem:[%s7022_s1 + $0x130] ss:$8 sps:$4 sm:$0xff]  }
   0xc   :  { %129 = vmatprep.subr.bf16.mxu0 %v5758_v10  ;;  %260 = vmatpush1.bf16.msra.mxu1 %v5781_v14  ;;  %v5884_v32 = vld [vmem:[%s7022_s1 + $0x120] ss:$8 sps:$4 sm:$0xff]   ;;  %v5897_v34 = vld [vmem:[%s7022_s1 + $0xe4] ss:$8 sps:$4 sm:$0xff]   ;;  %v5924_v38 = vld [vmem:[%s7022_s1 + $0xf4] ss:$8 sps:$4 sm:$0xff]  }
   0xd   :  { %261 = vmatprep.subr.bf16.mxu1 %v5788_v15  ;;  %v5904_v35 = vld [vmem:[%s7022_s1 + $0xe0] ss:$8 sps:$4 sm:$0xff]   ;;  %v5918_v37 = vld [vmem:[%s7022_s1 + $0x144] ss:$8 sps:$4 sm:$0xff]   ;;  %v5929_v39 = vld [vmem:[%s7022_s1 + $0xf0] ss:$8 sps:$4 sm:$0xff]  }
   0xe   :  { %v5935_v40 = vld [vmem:[%s7022_s1 + $0x140] ss:$8 sps:$4 sm:$0xff]   ;;  %v5942_v41 = vld [vmem:[%s7022_s1 + $0x154] ss:$8 sps:$4 sm:$0xff]   ;;  %v5948_v42 = vld [vmem:[%s7022_s1 + $0x104] ss:$8 sps:$4 sm:$0xff]  }
   0xf   :  { %130 = vmatpush1.bf16.msra.mxu0 %v5776_v13  ;;  %v5954_v43 = vld [vmem:[%s7022_s1 + $0x150] ss:$8 sps:$4 sm:$0xff]   ;;  %v5960_v44 = vld [vmem:[%s7022_s1 + $0x100] ss:$8 sps:$4 sm:$0xff]   ;;  %v5966_v45 = vld [vmem:[%s7022_s1 + $0x164] ss:$8 sps:$4 sm:$0xff]  }
  0x10   :  { %131 = vmatprep.subr.bf16.mxu0 %v5794_v16  ;;  %262 = vmatpush1.bf16.msra.mxu1 %v5800_v17  ;;  %v5972_v46 = vld [vmem:[%s7022_s1 + $0x114] ss:$8 sps:$4 sm:$0xff]   ;;  %v5978_v47 = vld [vmem:[%s7022_s1 + $0x160] ss:$8 sps:$4 sm:$0xff]   ;;  %v5984_v48 = vld [vmem:[%s7022_s1 + $0x110] ss:$8 sps:$4 sm:$0xff]  }
  0x11   :  { %263 = vmatprep.subr.bf16.mxu1 %v5812_v19  ;;  %v5990_v49 = vld [vmem:[%s7022_s1 + $0x174] ss:$8 sps:$4 sm:$0xff]   ;;  %v5999_v51 = vld [vmem:[%s7022_s1 + $0x184] ss:$8 sps:$4 sm:$0xff]   ;;  %v6004_v52 = vld [vmem:[%s7022_s1 + $0x170] ss:$8 sps:$4 sm:$0xff]  }
  0x12   :  { %v5357_v50 = vld [vmem:[%s7021_s0 + $0x10] sm:$0x7f]   ;;  %v6011_v53 = vld [vmem:[%s7022_s1 + $0x180] ss:$8 sps:$4 sm:$0xff]   ;;  %v5367_v55 = vld [vmem:[%s7021_s0 + $0x18] sm:$0x7f]  }
  0x13   :  { %132 = vmatpush1.bf16.msra.mxu0 %v5806_v18  ;;  %v6018_v54 = vld [vmem:[%s7022_s1 + $0x194] ss:$8 sps:$4 sm:$0xff]   ;;  %v6029_v56 = vld [vmem:[%s7022_s1 + $0x190] ss:$8 sps:$4 sm:$0xff]   ;;  %v6036_v57 = vld [vmem:[%s7022_s1 + $0x1a4] ss:$8 sps:$4 sm:$0xff]  }
  0x14   :  { %133 = vmatprep.subr.bf16.mxu0 %v5818_v20  ;;  %264 = vmatpush1.bf16.msra.mxu1 %v5824_v21  ;;  %v6046_v58 = vld [vmem:[%s7022_s1 + $0x1a0] ss:$8 sps:$4 sm:$0xff]   ;;  %v6053_v59 = vld [vmem:[%s7022_s1 + $0x1b4] ss:$8 sps:$4 sm:$0xff]   ;;  %v6060_v60 = vld [vmem:[%s7022_s1 + $0x1b0] ss:$8 sps:$4 sm:$0xff]  }
  0x15   :  { %265 = vmatprep.subr.bf16.mxu1 %v5836_v23  ;;  %v6067_v61 = vld [vmem:[%s7022_s1 + $0x1c4] ss:$8 sps:$4 sm:$0xff]   ;;  %v6074_v62 = vld [vmem:[%s7022_s1 + $0x1c0] ss:$8 sps:$4 sm:$0xff]   ;;  %v6081_v63 = vld [vmem:[%s7022_s1 + $0x1d4] ss:$8 sps:$4 sm:$0xff]  }
  0x17   :  { %134 = vmatpush1.bf16.msra.mxu0 %v5830_v22 }
  0x18   :  { %393 = vmatprep.subr.bf16.mxu0 %v5845_v25  ;;  %266 = vmatpush1.bf16.msra.mxu1 %v5856_v27 }
  0x19   :  { %531 = vmatprep.subr.bf16.mxu1 %v5863_v28 }
  0x1a   :  { %4456 = vmatmul.mubr.msk.bf16.vlgmr.msra.gmra.mrb[0].mxu0 %vm119_vm0, %v5318_v24  ;;  %v5380_v24 = vld [vmem:[%s7021_s0] sm:$0xfe]  }
  0x1b   :  { %394 = vmatpush1.bf16.msra.mxu0 %v5850_v26  ;;  %425 = vmatprep.mubr.bf16.mxu0 %v7033_v2 }
  0x1c   :  { %395 = vmatprep.subr.bf16.mxu0 %v5869_v29  ;;  %4482 = vmatmul.mubr.msk.bf16.vlgmr.msra.gmra.mrb[0].mxu1 %vm119_vm0, %v5332_v31  ;;  %v6091_v31 = vld [vmem:[%s7022_s1 + $0x1d0] ss:$8 sps:$4 sm:$0xff]  }
  0x1d   :  { %532 = vmatpush1.bf16.msra.mxu1 %v5884_v32  ;;  %563 = vmatprep.mubr.bf16.mxu1 %v7033_v2 }
  0x1e   :  { %533 = vmatprep.subr.bf16.mxu1 %v5891_v33 }
  0x1f   :  { %396 = vmatpush1.bf16.msra.mxu0 %v5874_v30 }
  0x20   :  { %397 = vmatprep.subr.bf16.mxu0 %v5897_v34 }
  0x21   :  { %534 = vmatpush1.bf16.msra.mxu1 %v5910_v36 }
  0x22   :  { %535 = vmatprep.subr.bf16.mxu1 %v5918_v37 }
  0x23   :  { %398 = vmatpush1.bf16.msra.mxu0 %v5904_v35 }
  0x24   :  { %399 = vmatprep.subr.bf16.mxu0 %v5924_v38 }
  0x25   :  { %536 = vmatpush1.bf16.msra.mxu1 %v5935_v40 }
  0x26   :  { %537 = vmatprep.subr.bf16.mxu1 %v5942_v41 }
  0x27   :  { %400 = vmatpush1.bf16.msra.mxu0 %v5929_v39 }
  0x28   :  { %401 = vmatprep.subr.bf16.mxu0 %v5948_v42 }
  0x29   :  { %538 = vmatpush1.bf16.msra.mxu1 %v5954_v43 }
  0x2a   :  { %539 = vmatprep.subr.bf16.mxu1 %v5966_v45 }
  0x2b   :  { %402 = vmatpush1.bf16.msra.mxu0 %v5960_v44 }
  0x2c   :  { %403 = vmatprep.subr.bf16.mxu0 %v5972_v46 }
  0x2d   :  { %540 = vmatpush1.bf16.msra.mxu1 %v5978_v47 }
  0x2e   :  { %541 = vmatprep.subr.bf16.mxu1 %v5990_v49 }
  0x2f   :  { %404 = vmatpush1.bf16.msra.mxu0 %v5984_v48 }
  0x30   :  { %670 = vmatprep.subr.bf16.mxu0 %v5999_v51 }
  0x31   :  { %542 = vmatpush1.bf16.msra.mxu1 %v6004_v52 }
  0x32   :  { %4508 = vmatmul.mubr.msk.bf16.vlgmr.msra.gmra.mrb[4].mxu0 %vm119_vm0, %v5357_v50  ;;  %807 = vmatprep.subr.bf16.mxu1 %v5705_v0  ;;  %v606_v50 = vrot.slane %v5380_v24, 1  ;;  %v5382_v24 = vld [vmem:[%s7021_s0 + $0x10] sm:$0x7f]  }
  0x33   :  { %671 = vmatpush1.bf16.msra.mxu0 %v6011_v53  ;;  %702 = vmatprep.mubr.bf16.mxu0 %v7033_v2 }
  0x34   :  { %672 = vmatprep.subr.bf16.mxu0 %v6018_v54  ;;  %4534 = vmatmul.mubr.msk.bf16.vlgmr.msra.gmra.mrb[4].mxu1 %vm119_vm0, %v5367_v55  ;;  %v5381_v55 = vld [vmem:[%s7021_s0 + $0x8] sm:$0x7f]  }
  0x35   :  { %808 = vmatpush1.bf16.msra.mxu1 %v5710_v1  ;;  %839 = vmatprep.mubr.bf16.mxu1 %v7033_v2 }
  0x36   :  { %809 = vmatprep.subr.bf16.mxu1 %v5718_v3 }
  0x37   :  { %673 = vmatpush1.bf16.msra.mxu0 %v6029_v56 }
  0x38   :  { %674 = vmatprep.subr.bf16.mxu0 %v6036_v57 }
  0x39   :  { %810 = vmatpush1.bf16.msra.mxu1 %v5723_v4 }
  0x3a   :  { %811 = vmatprep.subr.bf16.mxu1 %v5735_v6 }
  0x3b   :  { %675 = vmatpush1.bf16.msra.mxu0 %v6046_v58 }
  0x3c   :  { %676 = vmatprep.subr.bf16.mxu0 %v6053_v59 }
  0x3d   :  { %812 = vmatpush1.bf16.msra.mxu1 %v5753_v9 }
  0x3e   :  { %813 = vmatprep.subr.bf16.mxu1 %v5758_v10 }
  0x3f   :  { %677 = vmatpush1.bf16.msra.mxu0 %v6060_v60 }
  0x40   :  { %678 = vmatprep.subr.bf16.mxu0 %v6067_v61 }
  0x41   :  { %814 = vmatpush1.bf16.msra.mxu1 %v5776_v13 }
  0x42   :  { %815 = vmatprep.subr.bf16.mxu1 %v5794_v16 }
  0x43   :  { %679 = vmatpush1.bf16.msra.mxu0 %v6074_v62 }
  0x44   :  { %680 = vmatprep.subr.bf16.mxu0 %v6081_v63 }
  0x45   :  { %816 = vmatpush1.bf16.msra.mxu1 %v5806_v18 }
  0x46   :  { %817 = vmatprep.subr.bf16.mxu1 %v5818_v20 }
  0x47   :  { %681 = vmatpush1.bf16.msra.mxu0 %v6091_v31 }
  0x48   :  { %936 = vmatprep.subr.bf16.mxu0 %v5729_v5 }
  0x49   :  { %818 = vmatpush1.bf16.msra.mxu1 %v5830_v22 }
  0x4a   :  { %4560 = vmatmul.mubr.msk.bf16.vlgmr.msra.gmra.mrb[8].mxu0 %vm119_vm0, %v606_v50  ;;  %1073 = vmatprep.subr.bf16.mxu1 %v5845_v25  ;;  %v5383_v50 = vld [vmem:[%s7021_s0 + $0x18] sm:$0x7f]  }
  0x4b   :  { %937 = vmatpush1.bf16.msra.mxu0 %v5740_v7  ;;  %968 = vmatprep.mubr.bf16.mxu0 %v7033_v2 }
  0x4c   :  { %938 = vmatprep.subr.bf16.mxu0 %v5747_v8  ;;  %4574 = vmatmul.mubr.msk.bf16.vlgmr.msra.gmra.mrb[8].mxu1 %vm119_vm0, %v5381_v55  ;;  %v5384_v55 = vld [vmem:[%s7021_s0] sm:$0xfe]  }
  0x4d   :  { %1074 = vmatpush1.bf16.msra.mxu1 %v5850_v26  ;;  %1105 = vmatprep.mubr.bf16.mxu1 %v7033_v2 }
  0x4e   :  { %1075 = vmatprep.subr.bf16.mxu1 %v5869_v29 }
  0x4f   :  { %939 = vmatpush1.bf16.msra.mxu0 %v5763_v11 }
  0x50   :  { %940 = vmatprep.subr.bf16.mxu0 %v5770_v12 }
  0x51   :  { %1076 = vmatpush1.bf16.msra.mxu1 %v5874_v30 }
  0x52   :  { %1077 = vmatprep.subr.bf16.mxu1 %v5897_v34 }
  0x53   :  { %941 = vmatpush1.bf16.msra.mxu0 %v5781_v14 }
  0x54   :  { %942 = vmatprep.subr.bf16.mxu0 %v5788_v15 }
  0x55   :  { %1078 = vmatpush1.bf16.msra.mxu1 %v5904_v35 }
  0x56   :  { %1079 = vmatprep.subr.bf16.mxu1 %v5924_v38 }
  0x57   :  { %943 = vmatpush1.bf16.msra.mxu0 %v5800_v17 }
  0x58   :  { %944 = vmatprep.subr.bf16.mxu0 %v5812_v19 }
  0x59   :  { %1080 = vmatpush1.bf16.msra.mxu1 %v5929_v39 }
  0x5a   :  { %1081 = vmatprep.subr.bf16.mxu1 %v5948_v42 }
  0x5b   :  { %945 = vmatpush1.bf16.msra.mxu0 %v5824_v21 }
  0x5c   :  { %946 = vmatprep.subr.bf16.mxu0 %v5836_v23 }
  0x5d   :  { %1082 = vmatpush1.bf16.msra.mxu1 %v5960_v44 }
  0x5e   :  { %1083 = vmatprep.subr.bf16.mxu1 %v5972_v46 }
  0x5f   :  { %947 = vmatpush1.bf16.msra.mxu0 %v5856_v27 }
  0x60   :  { %1211 = vmatprep.subr.bf16.mxu0 %v5863_v28 }
  0x61   :  { %1084 = vmatpush1.bf16.msra.mxu1 %v5984_v48 }
  0x62   :  { %4600 = vmatmul.mubr.msk.bf16.vlgmr.msra.gmra.mrb[12].mxu0 %vm119_vm0, %v5382_v24  ;;  %1349 = vmatprep.subr.bf16.mxu1 %v5999_v51  ;;  %v5385_v24 = vld [vmem:[%s7021_s0 + $0x8] sm:$0xfe]  }
  0x63   :  { %1212 = vmatpush1.bf16.msra.mxu0 %v5884_v32  ;;  %1243 = vmatprep.mubr.bf16.mxu0 %v7033_v2 }
  0x64   :  { %1213 = vmatprep.subr.bf16.mxu0 %v5891_v33  ;;  %4626 = vmatmul.mubr.msk.bf16.vlgmr.msra.gmra.mrb[12].mxu1 %vm119_vm0, %v5383_v50  ;;  %v1147_v50 = vrot.slane %v5384_v55, 1  ;;  %v7035_v55 = vmov 0  }
  0x65   :  { %1350 = vmatpush1.bf16.msra.mxu1 %v6011_v53  ;;  %1381 = vmatprep.mubr.bf16.mxu1 %v7033_v2  ;;  %v1285_v2 = vrot.slane %v5385_v24, 1 }
  0x66   :  { %1351 = vmatprep.subr.bf16.mxu1 %v6018_v54 }
  0x67   :  { %1214 = vmatpush1.bf16.msra.mxu0 %v5910_v36 }
  0x68   :  { %1215 = vmatprep.subr.bf16.mxu0 %v5918_v37 }
  0x69   :  { %1352 = vmatpush1.bf16.msra.mxu1 %v6029_v56 }
  0x6a   :  { %1353 = vmatprep.subr.bf16.mxu1 %v6036_v57 }
  0x6b   :  { %1216 = vmatpush1.bf16.msra.mxu0 %v5935_v40 }
  0x6c   :  { %1217 = vmatprep.subr.bf16.mxu0 %v5942_v41 }
  0x6d   :  { %1354 = vmatpush1.bf16.msra.mxu1 %v6046_v58 }
  0x6e   :  { %1355 = vmatprep.subr.bf16.mxu1 %v6053_v59 }
  0x6f   :  { %1218 = vmatpush1.bf16.msra.mxu0 %v5954_v43 }
  0x70   :  { %1219 = vmatprep.subr.bf16.mxu0 %v5966_v45 }
  0x71   :  { %1356 = vmatpush1.bf16.msra.mxu1 %v6060_v60 }
  0x72   :  { %1357 = vmatprep.subr.bf16.mxu1 %v6067_v61 }
  0x73   :  { %1220 = vmatpush1.bf16.msra.mxu0 %v5978_v47 }
  0x74   :  { %1221 = vmatprep.subr.bf16.mxu0 %v5990_v49 }
  0x75   :  { %1358 = vmatpush1.bf16.msra.mxu1 %v6074_v62 }
  0x76   :  { %1359 = vmatprep.subr.bf16.mxu1 %v6081_v63 }
  0x77   :  { %1222 = vmatpush1.bf16.msra.mxu0 %v6004_v52 }
  0x78   :  { %1486 = vmatprep.subr.bf16.mxu0 %v5705_v0  ;;  %v5386_v0 = vld [vmem:[%s7021_s0 + $0x10] sm:$0x7f]  }
  0x79   :  { %1360 = vmatpush1.bf16.msra.mxu1 %v6091_v31 }
  0x7a   :  { %4652 = vmatmul.mubr.msk.bf16.vlgmr.msra.gmra.mrb[16].mxu0 %vm119_vm0, %v1147_v50  ;;  %1615 = vmatprep.subr.bf16.mxu1 %v5729_v5 }
  0x7b   :  { %1487 = vmatpush1.bf16.msra.mxu0 %v5710_v1  ;;  %1518 = vmatprep.mubr.bf16.mxu0 %v7035_v55 }
  0x7c   :  { %1488 = vmatprep.subr.bf16.mxu0 %v5718_v3  ;;  %4678 = vmatmul.mubr.msk.bf16.vlgmr.msra.gmra.mrb[16].mxu1 %vm119_vm0, %v1285_v2 }
  0x7d   :  { %1616 = vmatpush1.bf16.msra.mxu1 %v5740_v7  ;;  %1647 = vmatprep.mubr.bf16.mxu1 %v7035_v55 }
  0x7e   :  { %1617 = vmatprep.subr.bf16.mxu1 %v5747_v8 }
  0x7f   :  { %1489 = vmatpush1.bf16.msra.mxu0 %v5723_v4 }
  0x80   :  { %1490 = vmatprep.subr.bf16.mxu0 %v5735_v6 }
  0x81   :  { %1618 = vmatpush1.bf16.msra.mxu1 %v5763_v11 }
  0x82   :  { %1619 = vmatprep.subr.bf16.mxu1 %v5770_v12 }
  0x83   :  { %1491 = vmatpush1.bf16.msra.mxu0 %v5753_v9 }
  0x84   :  { %1492 = vmatprep.subr.bf16.mxu0 %v5758_v10 }
  0x85   :  { %1620 = vmatpush1.bf16.msra.mxu1 %v5781_v14 }
  0x86   :  { %1621 = vmatprep.subr.bf16.mxu1 %v5788_v15 }
  0x87   :  { %1493 = vmatpush1.bf16.msra.mxu0 %v5776_v13 }
  0x88   :  { %1494 = vmatprep.subr.bf16.mxu0 %v5794_v16 }
  0x89   :  { %1622 = vmatpush1.bf16.msra.mxu1 %v5800_v17 }
  0x8a   :  { %1623 = vmatprep.subr.bf16.mxu1 %v5812_v19 }
  0x8b   :  { %1495 = vmatpush1.bf16.msra.mxu0 %v5806_v18 }
  0x8c   :  { %1496 = vmatprep.subr.bf16.mxu0 %v5818_v20 }
  0x8d   :  { %1624 = vmatpush1.bf16.msra.mxu1 %v5824_v21 }
  0x8e   :  { %1625 = vmatprep.subr.bf16.mxu1 %v5836_v23 }
  0x8f   :  { %1497 = vmatpush1.bf16.msra.mxu0 %v5830_v22 }
  0x90   :  { %1753 = vmatprep.subr.bf16.mxu0 %v5845_v25 }
  0x91   :  { %16 = vsyncpa [#allocation7], 0  ;;  %v5387_v1 = vld [vmem:[%s7021_s0 + $0x18] sm:$0x7f]   ;;  %1626 = vmatpush1.bf16.msra.mxu1 %v5856_v27  ;;  %v5388_v2 = vld [vmem:[%s7021_s0] sm:$0xfe]  }
  0x92   :  { %4692 = vmatmul.mubr.msk.bf16.vlgmr.msra.gmra.mrb[20].mxu0 %vm119_vm0, %v5386_v0  ;;  %1891 = vmatprep.subr.bf16.mxu1 %v5863_v28  ;;  %v5392_v3 = vld [vmem:[%s7021_s0 + $0x8] sm:$0xfe]   ;;  %v1689_v4 = vrot.slane %v5388_v2, 1  ;;  %v5395_v8 = vld [vmem:[%s7022_s1 + $0x14] ss:$8 sps:$4 sm:$0xff]   ;;  %vm167_vm1 = vcmask 326656  }
  0x93   :  { %1754 = vmatpush1.bf16.msra.mxu0 %v5850_v26  ;;  %1785 = vmatprep.mubr.bf16.mxu0 %v7035_v55  ;;  %v5391_v5 = vld [vmem:[%s7022_s1 + $0x4] ss:$8 sps:$4 sm:$0xff]   ;;  %v1827_v6 = vrot.slane %v5392_v3, 1  ;;  %v5389_v7 = vld [vmem:[%s7022_s1] ss:$8 sps:$4 sm:$0xff]   ;;  %vm170_vm2 = vcmask 324608  }
  0x94   :  { %1755 = vmatprep.subr.bf16.mxu0 %v5869_v29  ;;  %4718 = vmatmul.mubr.msk.bf16.vlgmr.msra.gmra.mrb[20].mxu1 %vm119_vm0, %v5387_v1  ;;  %v5393_v9 = vld [vmem:[%s7022_s1 + $0x10] ss:$8 sps:$4 sm:$0xff]   ;;  %v5398_v10 = vld [vmem:[%s7022_s1 + $0x24] ss:$8 sps:$4 sm:$0xff]   ;;  %v5396_v11 = vld [vmem:[%s7022_s1 + $0x20] ss:$8 sps:$4 sm:$0xff]  }
  0x95   :  { %1892 = vmatpush1.bf16.msra.mxu1 %v5884_v32  ;;  %1923 = vmatprep.mubr.bf16.mxu1 %v7035_v55  ;;  %v5401_v12 = vld [vmem:[%s7022_s1 + $0x34] ss:$8 sps:$4 sm:$0xff]   ;;  %v5399_v13 = vld [vmem:[%s7022_s1 + $0x30] ss:$8 sps:$4 sm:$0xff]   ;;  %v5404_v14 = vld [vmem:[%s7022_s1 + $0x44] ss:$8 sps:$4 sm:$0xff]  }
  0x96   :  { %1893 = vmatprep.subr.bf16.mxu1 %v5891_v33  ;;  %v5402_v15 = vld [vmem:[%s7022_s1 + $0x40] ss:$8 sps:$4 sm:$0xff]   ;;  %v5405_v16 = vld [vmem:[%s7021_s0 + $0x10] sm:$0xfe]   ;;  %v5408_v18 = vld [vmem:[%s7022_s1 + $0x64] ss:$8 sps:$4 sm:$0xff]  }
  0x97   :  { %1756 = vmatpush1.bf16.msra.mxu0 %v5874_v30  ;;  %v5411_v17 = vld [vmem:[%s7022_s1 + $0x54] ss:$8 sps:$4 sm:$0xff]   ;;  %v1965_v19 = vrot.slane %v5405_v16, 1  ;;  %v5409_v20 = vld [vmem:[%s7022_s1 + $0x50] ss:$8 sps:$4 sm:$0xff]   ;;  %vm2957_vm3 = vcmask 1041408  }
  0x98   :  { %1757 = vmatprep.subr.bf16.mxu0 %v5897_v34  ;;  %v5406_v21 = vld [vmem:[%s7022_s1 + $0x60] ss:$8 sps:$4 sm:$0xff]   ;;  %v5417_v22 = vld [vmem:[%s7022_s1 + $0xc4] ss:$8 sps:$4 sm:$0xff]   ;;  %v5414_v23 = vld [vmem:[%s7022_s1 + $0x74] ss:$8 sps:$4 sm:$0xff]  }
  0x99   :  { %1894 = vmatpush1.bf16.msra.mxu1 %v5910_v36  ;;  %v5418_v25 = vld [vmem:[%s7021_s0 + $0x18] sm:$0x7f]   ;;  %v5415_v26 = vld [vmem:[%s7022_s1 + $0xc0] ss:$8 sps:$4 sm:$0xff]   ;;  %v5421_v29 = vld [vmem:[%s7022_s1 + $0x84] ss:$8 sps:$4 sm:$0xff]  }
  0x9a   :  { %1895 = vmatprep.subr.bf16.mxu1 %v5918_v37  ;;  %v5412_v27 = vld [vmem:[%s7022_s1 + $0x70] ss:$8 sps:$4 sm:$0xff]   ;;  %v5424_v28 = vld [vmem:[%s7022_s1 + $0xd4] ss:$8 sps:$4 sm:$0xff]   ;;  %v5419_v32 = vld [vmem:[%s7022_s1 + $0x80] ss:$8 sps:$4 sm:$0xff]  }
  0x9b   :  { %1758 = vmatpush1.bf16.msra.mxu0 %v5904_v35  ;;  %v5422_v30 = vld [vmem:[%s7022_s1 + $0xd0] ss:$8 sps:$4 sm:$0xff]   ;;  %v5430_v33 = vld [vmem:[%s7022_s1 + $0xe4] ss:$8 sps:$4 sm:$0xff]   ;;  %v5427_v34 = vld [vmem:[%s7022_s1 + $0x94] ss:$8 sps:$4 sm:$0xff]  }
  0x9c   :  { %1759 = vmatprep.subr.bf16.mxu0 %v5924_v38  ;;  %v5428_v35 = vld [vmem:[%s7022_s1 + $0xe0] ss:$8 sps:$4 sm:$0xff]   ;;  %v5425_v36 = vld [vmem:[%s7022_s1 + $0x90] ss:$8 sps:$4 sm:$0xff]   ;;  %v5436_v37 = vld [vmem:[%s7022_s1 + $0xf4] ss:$8 sps:$4 sm:$0xff]  }
  0x9d   :  { %1896 = vmatpush1.bf16.msra.mxu1 %v5935_v40  ;;  %v5433_v38 = vld [vmem:[%s7022_s1 + $0xa4] ss:$8 sps:$4 sm:$0xff]   ;;  %v5431_v40 = vld [vmem:[%s7022_s1 + $0xa0] ss:$8 sps:$4 sm:$0xff]   ;;  %v5463_v50 = vld [vmem:[%s7022_s1 + $0x150] ss:$8 sps:$4 sm:$0xff]  }
  0x9e   :  { %1897 = vmatprep.subr.bf16.mxu1 %v5942_v41  ;;  %v5442_v41 = vld [vmem:[%s7022_s1 + $0x104] ss:$8 sps:$4 sm:$0xff]   ;;  %v5466_v24 = vld [vmem:[%s7022_s1 + $0x1a0] ss:$8 sps:$4 sm:$0xff]   ;;  %v5474_v0 = vld [vmem:[%s7022_s1 + $0x1b4] ss:$8 sps:$4 sm:$0xff]  }
  0x9f   :  { %1760 = vmatpush1.bf16.msra.mxu0 %v5929_v39  ;;  %v5434_v39 = vld [vmem:[%s7022_s1 + $0xf0] ss:$8 sps:$4 sm:$0xff]   ;;  %v5471_v1 = vld [vmem:[%s7022_s1 + $0x164] ss:$8 sps:$4 sm:$0xff]   ;;  %v5469_v3 = vld [vmem:[%s7022_s1 + $0x160] ss:$8 sps:$4 sm:$0xff]  }
  0xa0   :  { %1761 = vmatprep.subr.bf16.mxu0 %v5948_v42  ;;  %v5439_v42 = vld [vmem:[%s7022_s1 + $0xb4] ss:$8 sps:$4 sm:$0xff]   ;;  %v5472_v2 = vld [vmem:[%s7022_s1 + $0x1b0] ss:$8 sps:$4 sm:$0xff]   ;;  %vm2782_vm4 = vcmask 359424   ;;  %vm2953_vm5 = vcmask 687104  }
  0xa1   :  { %1898 = vmatpush1.bf16.msra.mxu1 %v5954_v43  ;;  %v5440_v43 = vld [vmem:[%s7022_s1 + $0x100] ss:$8 sps:$4 sm:$0xff]   ;;  %vm5640_vm6 = vmmov 0   ;;  %vm3500_vm7 = vcmask 392192   ;;  %vm3822_vm8 = vcmask 654336   ;;  %s5641_s27 = smov [#allocation6]  }
  0xa2   :  { %1899 = vmatprep.subr.bf16.mxu1 %v5966_v45  ;;  %v5437_v45 = vld [vmem:[%s7022_s1 + $0xb0] ss:$8 sps:$4 sm:$0xff]   ;;  %s4435_s28 = sshll.u32 %s5641_s27, 4  ;;  %s4436_s28 = int_to_ptr.vmem [resolvable:$true] %s4435_s28 }
  0xa3   :  { %1762 = vmatpush1.bf16.msra.mxu0 %v5960_v44  ;;  %v5443_v44 = vld [vmem:[%s7021_s0] sm:$0xfe]   ;;  %p5617_p1 = scmp.lt.s32.totalorder %s4436_s28, %s4436_s28 }
  0xa4   :  { %1763 = vmatprep.subr.bf16.mxu0 %v5972_v46  ;;  %v5449_v46 = vld [vmem:[%s7022_s1 + $0x114] ss:$8 sps:$4 sm:$0xff]  }
  0xa5   :  { %1900 = vmatpush1.bf16.msra.mxu1 %v5978_v47  ;;  %v5446_v47 = vld [vmem:[%s7022_s1 + $0x124] ss:$8 sps:$4 sm:$0xff]  }
  0xa6   :  { %1901 = vmatprep.subr.bf16.mxu1 %v5990_v49  ;;  %v2232_v49 = vrot.slane %v5443_v44, 1 }
  0xa7   :  { %1764 = vmatpush1.bf16.msra.mxu0 %v5984_v48  ;;  %v5456_v48 = vld [vmem:[%s7021_s0 + $0x8] sm:$0xfe]  }
  0xa8   :  { %2029 = vmatprep.subr.bf16.mxu0 %v5999_v51  ;;  %v5447_v51 = vld [vmem:[%s7022_s1 + $0x110] ss:$8 sps:$4 sm:$0xff]  }
  0xa9   :  { %1902 = vmatpush1.bf16.msra.mxu1 %v6004_v52  ;;  %v5444_v52 = vld [vmem:[%s7022_s1 + $0x120] ss:$8 sps:$4 sm:$0xff]  }
  0xaa   :  { %4744 = vmatmul.mubr.msk.bf16.vlgmr.msra.gmra.mrb[24].mxu0 %vm119_vm0, %v1689_v4  ;;  %2166 = vmatprep.subr.bf16.mxu1 %v5391_v5  ;;  %v5480_v4 = vld [vmem:[%s7022_s1 + $0x1c4] ss:$8 sps:$4 sm:$0xff]   ;;  %v5477_v5 = vld [vmem:[%s7022_s1 + $0x174] ss:$8 sps:$4 sm:$0xff]  }
  0xab   :  { %2030 = vmatpush1.bf16.msra.mxu0 %v6011_v53  ;;  %2061 = vmatprep.mubr.bf16.mxu0 %v7035_v55  ;;  %v5455_v53 = vld [vmem:[%s7022_s1 + $0x184] ss:$8 sps:$4 sm:$0xff]  }
  0xac   :  { %2031 = vmatprep.subr.bf16.mxu0 %v6018_v54  ;;  %4770 = vmatmul.mubr.msk.bf16.vlgmr.msra.gmra.mrb[24].mxu1 %vm119_vm0, %v1827_v6  ;;  %v5452_v54 = vld [vmem:[%s7022_s1 + $0x134] ss:$8 sps:$4 sm:$0xff]   ;;  %v5478_v6 = vld [vmem:[%s7022_s1 + $0x1c0] ss:$8 sps:$4 sm:$0xff]  }
  0xad   :  { %2167 = vmatpush1.bf16.msra.mxu1 %v5389_v7  ;;  %2198 = vmatprep.mubr.bf16.mxu1 %v7035_v55  ;;  %v5481_v7 = vld [vmem:[%s7021_s0 + $0x10] sm:$0xfe]  }
  0xae   :  { %2168 = vmatprep.subr.bf16.mxu1 %v5395_v8  ;;  %v5475_v8 = vld [vmem:[%s7022_s1 + $0x170] ss:$8 sps:$4 sm:$0xff]  }
  0xaf   :  { %2032 = vmatpush1.bf16.msra.mxu0 %v6029_v56  ;;  %v2370_v56 = vrot.slane %v5456_v48, 1 }
  0xb0   :  { %2033 = vmatprep.subr.bf16.mxu0 %v6036_v57  ;;  %v5453_v57 = vld [vmem:[%s7022_s1 + $0x180] ss:$8 sps:$4 sm:$0xff]  }
  0xb1   :  { %2169 = vmatpush1.bf16.msra.mxu1 %v5393_v9  ;;  %v5484_v9 = vld [vmem:[%s7022_s1 + $0x1d4] ss:$8 sps:$4 sm:$0xff]  }
  0xb2   :  { %2170 = vmatprep.subr.bf16.mxu1 %v5398_v10 }
  0xb3   :  { %2034 = vmatpush1.bf16.msra.mxu0 %v6046_v58  ;;  %v5450_v58 = vld [vmem:[%s7022_s1 + $0x130] ss:$8 sps:$4 sm:$0xff]  }
  0xb4   :  { %2035 = vmatprep.subr.bf16.mxu0 %v6053_v59  ;;  %v5462_v59 = vld [vmem:[%s7022_s1 + $0x194] ss:$8 sps:$4 sm:$0xff]  }
  0xb5   :  { %2171 = vmatpush1.bf16.msra.mxu1 %v5396_v11  ;;  %v5485_v11 = vld [vmem:[%s7021_s0 + $0x18] sm:$0xfe]   ;;  %s5637_s0 = smov 44  }
  0xb6   :  { %2172 = vmatprep.subr.bf16.mxu1 %v5401_v12 }
  0xb7   :  { %2036 = vmatpush1.bf16.msra.mxu0 %v6060_v60  ;;  %v5459_v60 = vld [vmem:[%s7022_s1 + $0x144] ss:$8 sps:$4 sm:$0xff]  }
  0xb8   :  { %2037 = vmatprep.subr.bf16.mxu0 %v6067_v61  ;;  %v5460_v61 = vld [vmem:[%s7022_s1 + $0x190] ss:$8 sps:$4 sm:$0xff]  }
  0xb9   :  { %2173 = vmatpush1.bf16.msra.mxu1 %v5399_v13  ;;  %v2508_v13 = vrot.slane %v5481_v7, 1 }
  0xba   :  { %2174 = vmatprep.subr.bf16.mxu1 %v5404_v14  ;;  %v5482_v14 = vld [vmem:[%s7022_s1 + $0x1d0] ss:$8 sps:$4 sm:$0xff]  }
  0xbb   :  { %2038 = vmatpush1.bf16.msra.mxu0 %v6074_v62  ;;  %v5457_v62 = vld [vmem:[%s7022_s1 + $0x140] ss:$8 sps:$4 sm:$0xff]  }
  0xbc   :  { %2039 = vmatprep.subr.bf16.mxu0 %v6081_v63  ;;  %v5468_v63 = vld [vmem:[%s7022_s1 + $0x1a4] ss:$8 sps:$4 sm:$0xff]  }
  0xbd   :  { %2175 = vmatpush1.bf16.msra.mxu1 %v5402_v15 }
  0xbe   :  { %2176 = vmatprep.subr.bf16.mxu1 %v5411_v17 }
  0xbf   :  { %2040 = vmatpush1.bf16.msra.mxu0 %v6091_v31  ;;  %v5465_v31 = vld [vmem:[%s7022_s1 + $0x154] ss:$8 sps:$4 sm:$0xff]  }
  0xc0   :  { %2296 = vmatprep.subr.bf16.mxu0 %v5408_v18 }
  0xc1   :  { %2177 = vmatpush1.bf16.msra.mxu1 %v5409_v20  ;;  %v2646_v20 = vrot.slane %v5485_v11, 1 }
  0xc2   :  { %4796 = vmatmul.mubr.msk.bf16.vlgmr.msra.gmra.mrb[28].mxu0 %vm119_vm0, %v1965_v19  ;;  %2434 = vmatprep.subr.bf16.mxu1 %v5417_v22 }
  0xc3   :  { %2297 = vmatpush1.bf16.msra.mxu0 %v5406_v21  ;;  %2328 = vmatprep.mubr.bf16.mxu0 %v7035_v55 }
  0xc4   :  { %2298 = vmatprep.subr.bf16.mxu0 %v5414_v23  ;;  %4810 = vmatmul.mubr.msk.bf16.vlgmr.msra.gmra.mrb[28].mxu1 %vm119_vm0, %v5418_v25 }
  0xc5   :  { %2435 = vmatpush1.bf16.msra.mxu1 %v5415_v26  ;;  %2466 = vmatprep.mubr.bf16.mxu1 %v7035_v55 }
  0xc6   :  { %2436 = vmatprep.subr.bf16.mxu1 %v5424_v28 }
  0xc7   :  { %2299 = vmatpush1.bf16.msra.mxu0 %v5412_v27 }
  0xc8   :  { %2300 = vmatprep.subr.bf16.mxu0 %v5421_v29 }
  0xc9   :  { %2437 = vmatpush1.bf16.msra.mxu1 %v5422_v30 }
  0xca   :  { %2438 = vmatprep.subr.bf16.mxu1 %v5430_v33 }
  0xcb   :  { %2301 = vmatpush1.bf16.msra.mxu0 %v5419_v32 }
  0xcc   :  { %2302 = vmatprep.subr.bf16.mxu0 %v5427_v34 }
  0xcd   :  { %2439 = vmatpush1.bf16.msra.mxu1 %v5428_v35 }
  0xce   :  { %2440 = vmatprep.subr.bf16.mxu1 %v5436_v37 }
  0xcf   :  { %2303 = vmatpush1.bf16.msra.mxu0 %v5425_v36 }
  0xd0   :  { %2304 = vmatprep.subr.bf16.mxu0 %v5433_v38 }
  0xd1   :  { %2441 = vmatpush1.bf16.msra.mxu1 %v5434_v39 }
  0xd2   :  { %2442 = vmatprep.subr.bf16.mxu1 %v5442_v41 }
  0xd3   :  { %2305 = vmatpush1.bf16.msra.mxu0 %v5431_v40 }
  0xd4   :  { %2306 = vmatprep.subr.bf16.mxu0 %v5439_v42 }
  0xd5   :  { %2443 = vmatpush1.bf16.msra.mxu1 %v5440_v43 }
  0xd6   :  { %2444 = vmatprep.subr.bf16.mxu1 %v5449_v46 }
  0xd7   :  { %2307 = vmatpush1.bf16.msra.mxu0 %v5437_v45 }
  0xd8   :  { %2572 = vmatprep.subr.bf16.mxu0 %v5446_v47 }
  0xd9   :  { %2445 = vmatpush1.bf16.msra.mxu1 %v5447_v51 }
  0xda   :  { %4836 = vmatmul.mubr.msk.bf16.vlgmr.msra.gmra.mrb[32].mxu0 %vm119_vm0, %v2232_v49  ;;  %2710 = vmatprep.subr.bf16.mxu1 %v5455_v53 }
  0xdb   :  { %2573 = vmatpush1.bf16.msra.mxu0 %v5444_v52  ;;  %2604 = vmatprep.mubr.bf16.mxu0 %v7035_v55 }
  0xdc   :  { %2574 = vmatprep.subr.bf16.mxu0 %v5452_v54  ;;  %4862 = vmatmul.mubr.msk.bf16.vlgmr.msra.gmra.mrb[32].mxu1 %vm119_vm0, %v2370_v56 }
  0xdd   :  { %2711 = vmatpush1.bf16.msra.mxu1 %v5453_v57  ;;  %2742 = vmatprep.mubr.bf16.mxu1 %v7035_v55 }
  0xde   :  { %2712 = vmatprep.subr.bf16.mxu1 %v5462_v59 }
  0xdf   :  { %2575 = vmatpush1.bf16.msra.mxu0 %v5450_v58 }
  0xe0   :  { %2576 = vmatprep.subr.bf16.mxu0 %v5459_v60 }
  0xe1   :  { %2713 = vmatpush1.bf16.msra.mxu1 %v5460_v61 }
  0xe2   :  { %2714 = vmatprep.subr.bf16.mxu1 %v5468_v63 }
  0xe3   :  { %2577 = vmatpush1.bf16.msra.mxu0 %v5457_v62 }
  0xe4   :  { %2578 = vmatprep.subr.bf16.mxu0 %v5465_v31 }
  0xe5   :  { %2715 = vmatpush1.bf16.msra.mxu1 %v5466_v24 }
  0xe6   :  { %2716 = vmatprep.subr.bf16.mxu1 %v5474_v0 }
  0xe7   :  { %2579 = vmatpush1.bf16.msra.mxu0 %v5463_v50 }
  0xe8   :  { %2580 = vmatprep.subr.bf16.mxu0 %v5471_v1 }
  0xe9   :  { %2717 = vmatpush1.bf16.msra.mxu1 %v5472_v2 }
  0xea   :  { %2718 = vmatprep.subr.bf16.mxu1 %v5480_v4 }
  0xeb   :  { %2581 = vmatpush1.bf16.msra.mxu0 %v5469_v3 }
  0xec   :  { %2582 = vmatprep.subr.bf16.mxu0 %v5477_v5 }
  0xed   :  { %v157_v10 = vpop.f32.mrb[0].mxu0  ;;  %2719 = vmatpush1.bf16.msra.mxu1 %v5478_v6 }
  0xee   :  { %v159_v12 = vpop.f32.mrb[1].mxu0  ;;  %2720 = vmatprep.subr.bf16.mxu1 %v5484_v9 }
  0xef   :  { %168 = vst.msk [vmem:[#allocation2 + $0x8] sm:$0xff] %vm167_vm1, %v159_v12  ;;  %v161_v15 = vpop.f32.mrb[2].mxu0  ;;  %2583 = vmatpush1.bf16.msra.mxu0 %v5475_v8  ;;  %v289_v17 = vpop.f32.mrb[0].mxu1 }
  0xf0   :  { %169 = vst [vmem:[#allocation2 + $0x10] sm:$0x3f] %v161_v15  ;;  %v163_v16 = vpop.f32.mrb[3].mxu0  ;;  %v302_v18 = vadd.f32 %v289_v17, %v157_v10  ;;  %v291_v19 = vpop.f32.mrb[1].mxu1 }
  0xf1   :  { %171 = vst.msk [vmem:[#allocation2 + $0x18] sm:$0x3f] %vm170_vm2, %v163_v16  ;;  %2721 = vmatpush1.bf16.msra.mxu1 %v5482_v14  ;;  %v293_v21 = vpop.f32.mrb[2].mxu1 }
  0xf2   :  { %4888 = vmatmul.mubr.msk.bf16.vlgmr.msra.gmra.mrb[36].mxu0 %vm119_vm0, %v2508_v13  ;;  %v295_v22 = vpop.f32.mrb[3].mxu1 }
  0xf3   :  { %2996 = vmatprep.mubr.bf16.mxu0 %v7035_v55 }
  0xf4   :  { %4914 = vmatmul.mubr.msk.bf16.vlgmr.msra.gmra.mrb[36].mxu1 %vm119_vm0, %v2646_v20 }
  0xf5   :  { %3539 = vmatprep.mubr.bf16.mxu1 %v7035_v55 }
  0xf6   :  { %v299_v23 = vld [vmem:[#allocation2 + $0x8] sm:$0xff] }
  0xf7   :  { %v303_v25 = vadd.f32 %v299_v23, %v291_v19  ;;  %v300_v26 = vld [vmem:[#allocation2 + $0x10] sm:$0x3f] }
  0xf8   :  { %v304_v27 = vadd.f32 %v300_v26, %v293_v21  ;;  %v301_v28 = vld [vmem:[#allocation2 + $0x18] sm:$0x3f] }
  0xf9   :  { %307 = vst.msk [vmem:[#allocation2 + $0x8] sm:$0xff] %vm167_vm1, %v303_v25  ;;  %v305_v29 = vadd.f32 %v301_v28, %v295_v22 }
  0xfa   :  { %308 = vst [vmem:[#allocation2 + $0x10] sm:$0x3f] %v304_v27 }
  0xfb   :  { %309 = vst.msk [vmem:[#allocation2 + $0x18] sm:$0x3f] %vm170_vm2, %v305_v29 }
 0x100   :  { %v437_v34 = vld [vmem:[#allocation2 + $0x8] sm:$0xff] }
 0x101   :  { %v438_v37 = vld [vmem:[#allocation2 + $0x10] sm:$0x3f] }
 0x102   :  { %v439_v40 = vld [vmem:[#allocation2 + $0x18] sm:$0x3f] }
 0x105   :  { %v427_v30 = vpop.f32.mrb[4].mxu0 }
 0x106   :  { %v440_v32 = vadd.f32 %v427_v30, %v302_v18  ;;  %v429_v33 = vpop.f32.mrb[5].mxu0 }
 0x107   :  { %v441_v35 = vadd.f32 %v437_v34, %v429_v33  ;;  %v431_v36 = vpop.f32.mrb[6].mxu0  ;;  %v565_v41 = vpop.f32.mrb[4].mxu1 }
 0x108   :  { %v442_v38 = vadd.f32 %v438_v37, %v431_v36  ;;  %v433_v39 = vpop.f32.mrb[7].mxu0  ;;  %v578_v43 = vadd.f32 %v565_v41, %v440_v32  ;;  %v567_v44 = vpop.f32.mrb[5].mxu1  ;;  %v5488_v37 = vld [vmem:[%s7024_s3 + $0x5c] ss:$8 sps:$4 sm:$0xff]  }
 0x109   :  { %445 = vst.msk [vmem:[#allocation2 + $0x8] sm:$0xff] %vm167_vm1, %v441_v35  ;;  %v443_v42 = vadd.f32 %v439_v40, %v433_v39  ;;  %v569_v45 = vpop.f32.mrb[6].mxu1  ;;  %3507 = vmatprep.subr.bf16.mxu1 %v5488_v37  ;;  %2964 = vmatprep.subr.bf16.mxu0 %v5488_v37 }
 0x10a   :  { %446 = vst [vmem:[#allocation2 + $0x10] sm:$0x3f] %v442_v38  ;;  %v571_v46 = vpop.f32.mrb[7].mxu1 }
 0x10b   :  { %447 = vst.msk [vmem:[#allocation2 + $0x18] sm:$0x3f] %vm170_vm2, %v443_v42  ;;  %v5486_v42 = vld [vmem:[%s7024_s3 + $0x58] ss:$8 sps:$4 sm:$0xff]  }
 0x10c   :  { %3508 = vmatpush1.bf16.msra.mxu1 %v5486_v42  ;;  %2965 = vmatpush1.bf16.msra.mxu0 %v5486_v42 }
 0x110   :  { %v575_v47 = vld [vmem:[#allocation2 + $0x8] sm:$0xff] }
 0x111   :  { %v579_v48 = vadd.f32 %v575_v47, %v567_v44  ;;  %v576_v49 = vld [vmem:[#allocation2 + $0x10] sm:$0x3f] }
 0x112   :  { %v580_v51 = vadd.f32 %v576_v49, %v569_v45  ;;  %v577_v52 = vld [vmem:[#allocation2 + $0x18] sm:$0x3f]  ;;  %v5489_v49 = vld [vmem:[%s7024_s3 + $0x68] ss:$8 sps:$4 sm:$0xff]  }
 0x113   :  { %583 = vst.msk [vmem:[#allocation2 + $0x8] sm:$0xff] %vm167_vm1, %v579_v48  ;;  %v581_v53 = vadd.f32 %v577_v52, %v571_v46  ;;  %v5491_v48 = vld [vmem:[%s7024_s3 + $0x6c] ss:$8 sps:$4 sm:$0xff]  }
 0x114   :  { %584 = vst [vmem:[#allocation2 + $0x10] sm:$0x3f] %v580_v51  ;;  %3509 = vmatprep.subr.bf16.mxu1 %v5491_v48  ;;  %2966 = vmatprep.subr.bf16.mxu0 %v5491_v48  ;;  %v5494_v51 = vld [vmem:[%s7024_s3 + $0x7c] ss:$8 sps:$4 sm:$0xff]  }
 0x115   :  { %585 = vst.msk [vmem:[#allocation2 + $0x18] sm:$0x3f] %vm170_vm2, %v581_v53  ;;  %3510 = vmatpush1.bf16.msra.mxu1 %v5489_v49  ;;  %2967 = vmatpush1.bf16.msra.mxu0 %v5489_v49  ;;  %v5492_v53 = vld [vmem:[%s7024_s3 + $0x78] ss:$8 sps:$4 sm:$0xff]  }
 0x116   :  { %3511 = vmatprep.subr.bf16.mxu1 %v5494_v51  ;;  %2968 = vmatprep.subr.bf16.mxu0 %v5494_v51 }
 0x119   :  { %3512 = vmatpush1.bf16.msra.mxu1 %v5492_v53  ;;  %2969 = vmatpush1.bf16.msra.mxu0 %v5492_v53 }
 0x11a   :  { %v714_v58 = vld [vmem:[#allocation2 + $0x8] sm:$0xff] }
 0x11b   :  { %v715_v61 = vld [vmem:[#allocation2 + $0x10] sm:$0x3f] }
 0x11c   :  { %v716_v31 = vld [vmem:[#allocation2 + $0x18] sm:$0x3f] }
 0x11d   :  { %v704_v54 = vpop.f32.mrb[8].mxu0 }
 0x11e   :  { %v6472_v56 = vadd.f32 %v704_v54, %v578_v43  ;;  %v706_v57 = vpop.f32.mrb[9].mxu0 }
 0x11f   :  { %v718_v59 = vadd.f32 %v714_v58, %v706_v57  ;;  %v708_v60 = vpop.f32.mrb[10].mxu0  ;;  %v841_v24 = vpop.f32.mrb[8].mxu1 }
 0x120   :  { %v719_v62 = vadd.f32 %v715_v61, %v708_v60  ;;  %v710_v63 = vpop.f32.mrb[11].mxu0  ;;  %2774 = vrot.lane.b32.xlu0 %v6472_v56, %s5637_s0  ;;  %v843_v0 = vpop.f32.mrb[9].mxu1  ;;  %v5497_v61 = vld [vmem:[%s7024_s3 + $0x8c] ss:$8 sps:$4 sm:$0xff]  }
 0x121   :  { %722 = vst.msk [vmem:[#allocation2 + $0x8] sm:$0xff] %vm167_vm1, %v718_v59  ;;  %v720_v50 = vadd.f32 %v716_v31, %v710_v63  ;;  %851 = vst.msk [vmem:[#allocation3 + $0x8] sm:$0xff] %vm167_vm1, %v843_v0  ;;  %v845_v1 = vpop.f32.mrb[10].mxu1  ;;  %3513 = vmatprep.subr.bf16.mxu1 %v5497_v61  ;;  %2970 = vmatprep.subr.bf16.mxu0 %v5497_v61  ;;  %v5500_v63 = vld [vmem:[%s7024_s3 + $0x9c] ss:$8 sps:$4 sm:$0xff]  }
 0x122   :  { %723 = vst [vmem:[#allocation2 + $0x10] sm:$0x3f] %v719_v62  ;;  %852 = vst [vmem:[#allocation3 + $0x10] sm:$0x3f] %v845_v1  ;;  %v847_v2 = vpop.f32.mrb[11].mxu1 }
 0x123   :  { %724 = vst.msk [vmem:[#allocation2 + $0x18] sm:$0x3f] %vm170_vm2, %v720_v50  ;;  %853 = vst.msk [vmem:[#allocation3 + $0x18] sm:$0x3f] %vm170_vm2, %v847_v2  ;;  %v5495_v62 = vld [vmem:[%s7024_s3 + $0x88] ss:$8 sps:$4 sm:$0xff]  }
 0x124   :  { %3514 = vmatpush1.bf16.msra.mxu1 %v5495_v62  ;;  %2971 = vmatpush1.bf16.msra.mxu0 %v5495_v62  ;;  %v5498_v31 = vld [vmem:[%s7024_s3 + $0x98] ss:$8 sps:$4 sm:$0xff]   ;;  %v4926_v50 = vld [vmem:[%s7024_s3 + $0xa8] sm:$0x33] }
 0x125   :  { %3515 = vmatprep.subr.bf16.mxu1 %v5500_v63  ;;  %2972 = vmatprep.subr.bf16.mxu0 %v5500_v63  ;;  %v4938_v1 = vcombine.high %v4926_v50, %v4926_v50  ;;  %v4937_v2 = vcombine.low %v4926_v50, %v4926_v50  ;;  %v5505_v62 = vld [vmem:[%s7024_s3 + $0x4] ss:$8 sps:$4 sm:$0xff]  }
 0x128   :  { %v2767_v3 = vld [vmem:[#allocation2 + $0x8] sm:$0xff]  ;;  %3516 = vmatpush1.bf16.msra.mxu1 %v5498_v31  ;;  %2973 = vmatpush1.bf16.msra.mxu0 %v5498_v31 }
 0x129   :  { %v6480_v4 = vld [vmem:[#allocation2 + $0x10] sm:$0x3f]  ;;  %2776 = vrot.lane.b32.xlu0 %v2767_v3, %s5637_s0  ;;  %v980_v9 = vld [vmem:[#allocation3 + $0x8] sm:$0xff]  ;;  %5030 = vmatprep.subr.msk.bf16.mxu1 %vm2957_vm3, %v4938_v1 }
 0x12a   :  { %2778 = vrot.lane.b32.xlu1 %v6480_v4, %s5637_s0  ;;  %v2769_v5 = vld [vmem:[#allocation2 + $0x18] sm:$0x3f]  ;;  %v981_v12 = vld [vmem:[#allocation3 + $0x10] sm:$0x3f]  ;;  %4939 = vmatprep.subr.msk.bf16.mxu0 %vm2957_vm3, %v4938_v1 }
 0x12b   :  { %v982_v15 = vld [vmem:[#allocation3 + $0x18] sm:$0x3f] }
 0x12e   :  { %2780 = vrot.lane.b32.xlu1 %v2769_v5, %s5637_s0  ;;  %v2959_v5 = vsel %vm2957_vm3, %v4937_v2, 0 }
 0x12f   :  { %3518 = vmatpush1.bf16.msra.mxu1 %v2959_v5  ;;  %2975 = vmatpush1.bf16.msra.mxu0 %v2959_v5 }
 0x130   :  { %3550 = vmatprep.subr.bf16.mxu1 %v5505_v62  ;;  %3071 = vmatprep.subr.bf16.mxu0 %v5505_v62 }
 0x135   :  { %v970_v6 = vpop.f32.mrb[12].mxu0 }
 0x136   :  { %v983_v7 = vadd.f32 %v970_v6, %v841_v24  ;;  %v972_v8 = vpop.f32.mrb[13].mxu0 }
 0x137   :  { %v984_v10 = vadd.f32 %v980_v9, %v972_v8  ;;  %v974_v11 = vpop.f32.mrb[14].mxu0  ;;  %v1107_v16 = vpop.f32.mrb[12].mxu1 }
 0x138   :  { %v985_v13 = vadd.f32 %v981_v12, %v974_v11  ;;  %v976_v14 = vpop.f32.mrb[15].mxu0  ;;  %v1120_v18 = vadd.f32 %v1107_v16, %v983_v7  ;;  %v1109_v19 = vpop.f32.mrb[13].mxu1 }
 0x139   :  { %988 = vst.msk [vmem:[#allocation3 + $0x8] sm:$0xff] %vm167_vm1, %v984_v10  ;;  %v986_v17 = vadd.f32 %v982_v15, %v976_v14  ;;  %v1111_v20 = vpop.f32.mrb[14].mxu1 }
 0x13a   :  { %989 = vst [vmem:[#allocation3 + $0x10] sm:$0x3f] %v985_v13  ;;  %v1113_v21 = vpop.f32.mrb[15].mxu1 }
 0x13b   :  { %990 = vst.msk [vmem:[#allocation3 + $0x18] sm:$0x3f] %vm170_vm2, %v986_v17 }
 0x140   :  { %v1117_v22 = vld [vmem:[#allocation3 + $0x8] sm:$0xff] }
 0x141   :  { %v1121_v23 = vadd.f32 %v1117_v22, %v1109_v19  ;;  %v1118_v25 = vld [vmem:[#allocation3 + $0x10] sm:$0x3f] }
 0x142   :  { %v1122_v26 = vadd.f32 %v1118_v25, %v1111_v20  ;;  %v1119_v27 = vld [vmem:[#allocation3 + $0x18] sm:$0x3f] }
 0x143   :  { %1125 = vst.msk [vmem:[#allocation3 + $0x8] sm:$0xff] %vm167_vm1, %v1121_v23  ;;  %v1123_v28 = vadd.f32 %v1119_v27, %v1113_v21 }
 0x144   :  { %1126 = vst [vmem:[#allocation3 + $0x10] sm:$0x3f] %v1122_v26 }
 0x145   :  { %1127 = vst.msk [vmem:[#allocation3 + $0x18] sm:$0x3f] %vm170_vm2, %v1123_v28 }
 0x14a   :  { %v1255_v33 = vld [vmem:[#allocation3 + $0x8] sm:$0xff] }
 0x14b   :  { %v1256_v36 = vld [vmem:[#allocation3 + $0x10] sm:$0x3f] }
 0x14c   :  { %v1257_v40 = vld [vmem:[#allocation3 + $0x18] sm:$0x3f] }
 0x14d   :  { %v1245_v29 = vpop.f32.mrb[16].mxu0 }
 0x14e   :  { %v1258_v30 = vadd.f32 %v1245_v29, %v1120_v18  ;;  %v1247_v32 = vpop.f32.mrb[17].mxu0 }
 0x14f   :  { %v1259_v34 = vadd.f32 %v1255_v33, %v1247_v32  ;;  %v1249_v35 = vpop.f32.mrb[18].mxu0  ;;  %v1383_v41 = vpop.f32.mrb[16].mxu1 }
 0x150   :  { %v1260_v38 = vadd.f32 %v1256_v36, %v1249_v35  ;;  %v1251_v39 = vpop.f32.mrb[19].mxu0  ;;  %v6497_v44 = vadd.f32 %v1383_v41, %v1258_v30  ;;  %v1385_v45 = vpop.f32.mrb[17].mxu1 }
 0x151   :  { %1263 = vst.msk [vmem:[#allocation3 + $0x8] sm:$0xff] %vm167_vm1, %v1259_v34  ;;  %v1261_v43 = vadd.f32 %v1257_v40, %v1251_v39  ;;  %v1387_v46 = vpop.f32.mrb[18].mxu1 }
 0x152   :  { %1264 = vst [vmem:[#allocation3 + $0x10] sm:$0x3f] %v1260_v38  ;;  %v1389_v47 = vpop.f32.mrb[19].mxu1  ;;  %2797 = vrot.lane.b32.xlu0 %v6497_v44, %s5637_s0 }
 0x153   :  { %1265 = vst.msk [vmem:[#allocation3 + $0x18] sm:$0x3f] %vm170_vm2, %v1261_v43 }
 0x158   :  { %v1393_v52 = vld [vmem:[#allocation3 + $0x8] sm:$0xff] }
 0x159   :  { %v1397_v54 = vadd.f32 %v1393_v52, %v1385_v45  ;;  %v1394_v57 = vld [vmem:[#allocation3 + $0x10] sm:$0x3f] }
 0x15a   :  { %v1398_v58 = vadd.f32 %v1394_v57, %v1387_v46  ;;  %v1395_v59 = vld [vmem:[#allocation3 + $0x18] sm:$0x3f] }
 0x15b   :  { %1401 = vst.msk [vmem:[#allocation3 + $0x8] sm:$0xff] %vm167_vm1, %v1397_v54  ;;  %v1399_v60 = vadd.f32 %v1395_v59, %v1389_v47 }
 0x15c   :  { %1402 = vst [vmem:[#allocation3 + $0x10] sm:$0x3f] %v1398_v58 }
 0x15d   :  { %1403 = vst.msk [vmem:[#allocation3 + $0x18] sm:$0x3f] %vm170_vm2, %v1399_v60 }
 0x162   :  { %v2790_v24 = vld [vmem:[#allocation3 + $0x8] sm:$0xff] }
 0x163   :  { %2799 = vrot.lane.b32.xlu1 %v2790_v24, %s5637_s0  ;;  %v6532_v0 = vld [vmem:[#allocation3 + $0x10] sm:$0x3f] }
 0x164   :  { %2801 = vrot.lane.b32.xlu0 %v6532_v0, %s5637_s0  ;;  %v2792_v7 = vld [vmem:[#allocation3 + $0x18] sm:$0x3f] }
 0x165   :  { %v1520_v3 = vpop.f32.mrb[20].mxu0 }
 0x166   :  { %v1522_v6 = vpop.f32.mrb[21].mxu0 }
 0x167   :  { %1530 = vst.msk [vmem:[#allocation4 + $0x8] sm:$0xff] %vm167_vm1, %v1522_v6  ;;  %v1524_v8 = vpop.f32.mrb[22].mxu0  ;;  %2803 = vrot.lane.b32.xlu1 %v2792_v7, %s5637_s0  ;;  %v1649_v10 = vpop.f32.mrb[20].mxu1 }
 0x168   :  { %1531 = vst [vmem:[#allocation4 + $0x10] sm:$0x3f] %v1524_v8  ;;  %v1526_v9 = vpop.f32.mrb[23].mxu0  ;;  %v1662_v11 = vadd.f32 %v1649_v10, %v1520_v3  ;;  %v1651_v12 = vpop.f32.mrb[21].mxu1 }
 0x169   :  { %1532 = vst.msk [vmem:[#allocation4 + $0x18] sm:$0x3f] %vm170_vm2, %v1526_v9  ;;  %v1653_v13 = vpop.f32.mrb[22].mxu1 }
 0x16a   :  { %v1655_v14 = vpop.f32.mrb[23].mxu1 }
 0x16e   :  { %v1659_v15 = vld [vmem:[#allocation4 + $0x8] sm:$0xff] }
 0x16f   :  { %v1663_v16 = vadd.f32 %v1659_v15, %v1651_v12  ;;  %v1660_v17 = vld [vmem:[#allocation4 + $0x10] sm:$0x3f] }
 0x170   :  { %v1664_v18 = vadd.f32 %v1660_v17, %v1653_v13  ;;  %v1661_v19 = vld [vmem:[#allocation4 + $0x18] sm:$0x3f] }
 0x171   :  { %1667 = vst.msk [vmem:[#allocation4 + $0x8] sm:$0xff] %vm167_vm1, %v1663_v16  ;;  %v1665_v20 = vadd.f32 %v1661_v19, %v1655_v14 }
 0x172   :  { %1668 = vst [vmem:[#allocation4 + $0x10] sm:$0x3f] %v1664_v18 }
 0x173   :  { %1669 = vst.msk [vmem:[#allocation4 + $0x18] sm:$0x3f] %vm170_vm2, %v1665_v20 }
 0x178   :  { %v1797_v25 = vld [vmem:[#allocation4 + $0x8] sm:$0xff] }
 0x179   :  { %v1798_v28 = vld [vmem:[#allocation4 + $0x10] sm:$0x3f] }
 0x17a   :  { %v1799_v32 = vld [vmem:[#allocation4 + $0x18] sm:$0x3f] }
 0x17d   :  { %v1787_v21 = vpop.f32.mrb[24].mxu0 }
 0x17e   :  { %v1800_v22 = vadd.f32 %v1787_v21, %v1662_v11  ;;  %v1789_v23 = vpop.f32.mrb[25].mxu0 }
 0x17f   :  { %v1801_v26 = vadd.f32 %v1797_v25, %v1789_v23  ;;  %v1791_v27 = vpop.f32.mrb[26].mxu0  ;;  %v1925_v33 = vpop.f32.mrb[24].mxu1 }
 0x180   :  { %v1802_v29 = vadd.f32 %v1798_v28, %v1791_v27  ;;  %v1793_v30 = vpop.f32.mrb[27].mxu0  ;;  %v1938_v35 = vadd.f32 %v1925_v33, %v1800_v22  ;;  %v1927_v36 = vpop.f32.mrb[25].mxu1 }
 0x181   :  { %1805 = vst.msk [vmem:[#allocation4 + $0x8] sm:$0xff] %vm167_vm1, %v1801_v26  ;;  %v1803_v34 = vadd.f32 %v1799_v32, %v1793_v30  ;;  %v1929_v37 = vpop.f32.mrb[26].mxu1 }
 0x182   :  { %1806 = vst [vmem:[#allocation4 + $0x10] sm:$0x3f] %v1802_v29  ;;  %v1931_v38 = vpop.f32.mrb[27].mxu1 }
 0x183   :  { %1807 = vst.msk [vmem:[#allocation4 + $0x18] sm:$0x3f] %vm170_vm2, %v1803_v34 }
 0x188   :  { %v1935_v39 = vld [vmem:[#allocation4 + $0x8] sm:$0xff] }
 0x189   :  { %v1939_v40 = vadd.f32 %v1935_v39, %v1927_v36  ;;  %v1936_v41 = vld [vmem:[#allocation4 + $0x10] sm:$0x3f] }
 0x18a   :  { %v1940_v42 = vadd.f32 %v1936_v41, %v1929_v37  ;;  %v1937_v43 = vld [vmem:[#allocation4 + $0x18] sm:$0x3f] }
 0x18b   :  { %1943 = vst.msk [vmem:[#allocation4 + $0x8] sm:$0xff] %vm167_vm1, %v1939_v40  ;;  %v1941_v45 = vadd.f32 %v1937_v43, %v1931_v38 }
 0x18c   :  { %1944 = vst [vmem:[#allocation4 + $0x10] sm:$0x3f] %v1940_v42 }
 0x18d   :  { %1945 = vst.msk [vmem:[#allocation4 + $0x18] sm:$0x3f] %vm170_vm2, %v1941_v45 }
 0x192   :  { %v2073_v49 = vld [vmem:[#allocation4 + $0x8] sm:$0xff]  ;;  %v2775_v45 = vpop.permute.xlu0 %2774 }
 0x193   :  { %v2074_v53 = vld [vmem:[#allocation4 + $0x10] sm:$0x3f] }
 0x194   :  { %v2075_v58 = vld [vmem:[#allocation4 + $0x18] sm:$0x3f] }
 0x195   :  { %v2063_v46 = vpop.f32.mrb[28].mxu0 }
 0x196   :  { %v6548_v47 = vadd.f32 %v2063_v46, %v1938_v35  ;;  %v2065_v48 = vpop.f32.mrb[29].mxu0 }
 0x197   :  { %v2077_v51 = vadd.f32 %v2073_v49, %v2065_v48  ;;  %v2067_v52 = vpop.f32.mrb[30].mxu0  ;;  %v2200_v59 = vpop.f32.mrb[28].mxu1 }
 0x198   :  { %v2078_v54 = vadd.f32 %v2074_v53, %v2067_v52  ;;  %v2069_v57 = vpop.f32.mrb[31].mxu0  ;;  %2831 = vrot.lane.b32.xlu0 %v6548_v47, %s5637_s0  ;;  %v2202_v61 = vpop.f32.mrb[29].mxu1 }
 0x199   :  { %2081 = vst.msk [vmem:[#allocation4 + $0x8] sm:$0xff] %vm167_vm1, %v2077_v51  ;;  %v2079_v60 = vadd.f32 %v2075_v58, %v2069_v57  ;;  %2210 = vst.msk [vmem:[#allocation5 + $0x8] sm:$0xff] %vm167_vm1, %v2202_v61  ;;  %v2204_v63 = vpop.f32.mrb[30].mxu1 }
 0x19a   :  { %2082 = vst [vmem:[#allocation4 + $0x10] sm:$0x3f] %v2078_v54  ;;  %2211 = vst [vmem:[#allocation5 + $0x10] sm:$0x3f] %v2204_v63  ;;  %v2206_v31 = vpop.f32.mrb[31].mxu1 }
 0x19b   :  { %2083 = vst.msk [vmem:[#allocation4 + $0x18] sm:$0x3f] %vm170_vm2, %v2079_v60  ;;  %2212 = vst.msk [vmem:[#allocation5 + $0x18] sm:$0x3f] %vm170_vm2, %v2206_v31  ;;  %v2777_v48 = vpop.permute.xlu0 %2776 }
 0x19c   :  { %v2779_v42 = vpop.permute.xlu1 %2778  ;;  %v2783_v58 = vsel %vm2782_vm4, %v2775_v45, %v2777_v48 }
 0x19d   :  { %v2787_v62 = vmax.f32 %v6472_v56, %v2783_v58  ;;  %v5525_v58 = vld [vmem:[%s7024_s3 + $0xc4] ss:$8 sps:$4 sm:$0xff]  }
 0x1a0   :  { %v2824_v24 = vld [vmem:[#allocation4 + $0x8] sm:$0xff]  ;;  %v2781_v49 = vpop.permute.xlu1 %2780 }
 0x1a1   :  { %2833 = vrot.lane.b32.xlu1 %v2824_v24, %s5637_s0  ;;  %v6560_v50 = vld [vmem:[#allocation4 + $0x10] sm:$0x3f]  ;;  %v2340_v6 = vld [vmem:[#allocation5 + $0x8] sm:$0xff]  ;;  %v2784_v31 = vsel %vm2782_vm4, %v2779_v42, %v2781_v49 }
 0x1a2   :  { %2835 = vrot.lane.b32.xlu0 %v6560_v50, %s5637_s0  ;;  %v2826_v1 = vld [vmem:[#allocation4 + $0x18] sm:$0x3f]  ;;  %v2341_v9 = vld [vmem:[#allocation5 + $0x10] sm:$0x3f] }
 0x1a3   :  { %v2342_v12 = vld [vmem:[#allocation5 + $0x18] sm:$0x3f] }
 0x1a5   :  { %2837 = vrot.lane.b32.xlu1 %v2826_v1, %s5637_s0 }
 0x1ad   :  { %v2330_v2 = vpop.f32.mrb[32].mxu0 }
 0x1ae   :  { %v2343_v3 = vadd.f32 %v2330_v2, %v2200_v59  ;;  %v2332_v5 = vpop.f32.mrb[33].mxu0 }
 0x1af   :  { %v2344_v7 = vadd.f32 %v2340_v6, %v2332_v5  ;;  %v2334_v8 = vpop.f32.mrb[34].mxu0  ;;  %v2468_v13 = vpop.f32.mrb[32].mxu1 }
 0x1b0   :  { %v2345_v10 = vadd.f32 %v2341_v9, %v2334_v8  ;;  %v2336_v11 = vpop.f32.mrb[35].mxu0  ;;  %v2481_v15 = vadd.f32 %v2468_v13, %v2343_v3  ;;  %v2470_v16 = vpop.f32.mrb[33].mxu1  ;;  %v6585_v3 = vld [vmem:[%s7023_s2] ss:$0 sm:$0xff] }
 0x1b1   :  { %2348 = vst.msk [vmem:[#allocation5 + $0x8] sm:$0xff] %vm167_vm1, %v2344_v7  ;;  %v2346_v14 = vadd.f32 %v2342_v12, %v2336_v11  ;;  %v2472_v17 = vpop.f32.mrb[34].mxu1  ;;  %v2788_v7 = vmax.f32 %v6480_v4, %v2784_v31  ;;  %v5503_v4 = vld [vmem:[%s7024_s3] ss:$8 sps:$4 sm:$0xff]  }
 0x1b2   :  { %2349 = vst [vmem:[#allocation5 + $0x10] sm:$0x3f] %v2345_v10  ;;  %v2474_v18 = vpop.f32.mrb[35].mxu1  ;;  %v4965_v31 = vld [vmem:[%s7024_s3 + $0x100] sm:$0x33] }
 0x1b3   :  { %2350 = vst.msk [vmem:[#allocation5 + $0x18] sm:$0x3f] %vm170_vm2, %v2346_v14 }
 0x1b8   :  { %v2478_v19 = vld [vmem:[#allocation5 + $0x8] sm:$0xff] }
 0x1b9   :  { %v2482_v20 = vadd.f32 %v2478_v19, %v2470_v16  ;;  %v2479_v21 = vld [vmem:[#allocation5 + $0x10] sm:$0x3f] }
 0x1ba   :  { %v2483_v22 = vadd.f32 %v2479_v21, %v2472_v17  ;;  %v2480_v23 = vld [vmem:[#allocation5 + $0x18] sm:$0x3f]  ;;  %v5511_v17 = vld [vmem:[%s7024_s3 + $0x24] ss:$8 sps:$4 sm:$0xff]  }
 0x1bb   :  { %2486 = vst.msk [vmem:[#allocation5 + $0x8] sm:$0xff] %vm167_vm1, %v2482_v20  ;;  %v2484_v25 = vadd.f32 %v2480_v23, %v2474_v18  ;;  %v5506_v16 = vld [vmem:[%s7024_s3 + $0x10] ss:$8 sps:$4 sm:$0xff]   ;;  %v5509_v18 = vld [vmem:[%s7024_s3 + $0x20] ss:$8 sps:$4 sm:$0xff]  }
 0x1bc   :  { %2487 = vst [vmem:[#allocation5 + $0x10] sm:$0x3f] %v2483_v22  ;;  %v5514_v19 = vld [vmem:[%s7024_s3 + $0x34] ss:$8 sps:$4 sm:$0xff]   ;;  %v5512_v20 = vld [vmem:[%s7024_s3 + $0x30] ss:$8 sps:$4 sm:$0xff]  }
 0x1bd   :  { %2488 = vst.msk [vmem:[#allocation5 + $0x18] sm:$0x3f] %vm170_vm2, %v2484_v25  ;;  %v6626_v21 = vld [vmem:[%s7024_s3 + $0x44] ss:$8 sps:$4 sm:$0xff]   ;;  %v2885_v22 = vld [vmem:[%s7024_s3 + $0x50] sm:$0x33] }
 0x1be   :  { %v6634_v23 = vld [vmem:[%s7024_s3 + $0x40] ss:$8 sps:$4 sm:$0xff]   ;;  %v6637_v25 = vcombine.high %v2885_v22, %v2885_v22 }
 0x1c2   :  { %v2616_v29 = vld [vmem:[#allocation5 + $0x8] sm:$0xff] }
 0x1c3   :  { %v2617_v33 = vld [vmem:[#allocation5 + $0x10] sm:$0x3f] }
 0x1c4   :  { %v2618_v36 = vld [vmem:[#allocation5 + $0x18] sm:$0x3f]  ;;  %v2798_v59 = vpop.permute.xlu0 %2797 }
 0x1c5   :  { %v2606_v26 = vpop.f32.mrb[36].mxu0 }
 0x1c6   :  { %v2619_v27 = vadd.f32 %v2606_v26, %v2481_v15  ;;  %v2608_v28 = vpop.f32.mrb[37].mxu0  ;;  %v5508_v15 = vld [vmem:[%s7024_s3 + $0x14] ss:$8 sps:$4 sm:$0xff]   ;;  %v4951_v26 = vcombine.low %v2885_v22, %v2885_v22  ;;  %v5557_v22 = vld [vmem:[%s7024_s3 + $0x170] ss:$8 sps:$4 sm:$0xff]  }
 0x1c7   :  { %v2620_v30 = vadd.f32 %v2616_v29, %v2608_v28  ;;  %v2610_v32 = vpop.f32.mrb[38].mxu0  ;;  %v2744_v37 = vpop.f32.mrb[36].mxu1  ;;  %v6648_v28 = vld [vmem:[%s7024_s3 + $0xb4] ss:$8 sps:$4 sm:$0xff]  }
 0x1c8   :  { %v2621_v34 = vadd.f32 %v2617_v33, %v2610_v32  ;;  %v2612_v35 = vpop.f32.mrb[39].mxu0  ;;  %v6570_v39 = vadd.f32 %v2744_v37, %v2619_v27  ;;  %v2746_v40 = vpop.f32.mrb[37].mxu1  ;;  %v6643_v27 = vsel %vm2957_vm3, %v4951_v26, 0  ;;  %v5568_v26 = vld [vmem:[%s7024_s3 + $0x1a4] ss:$8 sps:$4 sm:$0xff]  }
 0x1c9   :  { %2624 = vst.msk [vmem:[#allocation5 + $0x8] sm:$0xff] %vm167_vm1, %v2620_v30  ;;  %v2622_v38 = vadd.f32 %v2618_v36, %v2612_v35  ;;  %v2748_v41 = vpop.f32.mrb[38].mxu1 }
 0x1ca   :  { %2625 = vst [vmem:[#allocation5 + $0x10] sm:$0x3f] %v2621_v34  ;;  %v2750_v43 = vpop.f32.mrb[39].mxu1  ;;  %2853 = vrot.lane.b32.xlu0 %v6570_v39, %s5637_s0 }
 0x1cb   :  { %2626 = vst.msk [vmem:[#allocation5 + $0x18] sm:$0x3f] %vm170_vm2, %v2622_v38 }
 0x1d0   :  { %v2754_v46 = vld [vmem:[#allocation5 + $0x8] sm:$0xff] }
 0x1d1   :  { %v2758_v51 = vadd.f32 %v2754_v46, %v2746_v40  ;;  %v2755_v52 = vld [vmem:[#allocation5 + $0x10] sm:$0x3f] }
 0x1d2   :  { %v2759_v53 = vadd.f32 %v2755_v52, %v2748_v41  ;;  %v2756_v54 = vld [vmem:[#allocation5 + $0x18] sm:$0x3f] }
 0x1d3   :  { %2762 = vst.msk [vmem:[#allocation5 + $0x8] sm:$0xff] %vm167_vm1, %v2758_v51  ;;  %v2760_v57 = vadd.f32 %v2756_v54, %v2750_v43 }
 0x1d4   :  { %2763 = vst [vmem:[#allocation5 + $0x10] sm:$0x3f] %v2759_v53 }
 0x1d5   :  { %2764 = vst.msk [vmem:[#allocation5 + $0x18] sm:$0x3f] %vm170_vm2, %v2760_v57  ;;  %v2800_v60 = vpop.permute.xlu1 %2799 }
 0x1d6   :  { %v2805_v61 = vsel %vm2782_vm4, %v2798_v59, %v2800_v60  ;;  %v2802_v1 = vpop.permute.xlu0 %2801  ;;  %v5528_v59 = vld [vmem:[%s7024_s3 + $0xd4] ss:$8 sps:$4 sm:$0xff]   ;;  %v5526_v60 = vld [vmem:[%s7024_s3 + $0xd0] ss:$8 sps:$4 sm:$0xff]  }
 0x1d7   :  { %v2809_v63 = vmax.f32 %v6497_v44, %v2805_v61  ;;  %v5531_v61 = vld [vmem:[%s7024_s3 + $0xe4] ss:$8 sps:$4 sm:$0xff]  }
 0x1d9   :  { %v2811_v24 = vmax.f32 %v2787_v62, %v2809_v63  ;;  %v2804_v2 = vpop.permute.xlu1 %2803  ;;  %v5529_v62 = vld [vmem:[%s7024_s3 + $0xe0] ss:$8 sps:$4 sm:$0xff]   ;;  %v5534_v63 = vld [vmem:[%s7024_s3 + $0xf4] ss:$8 sps:$4 sm:$0xff]  }
 0x1da   :  { %v2806_v5 = vsel %vm2782_vm4, %v2802_v1, %v2804_v2  ;;  %v2846_v6 = vld [vmem:[#allocation5 + $0x8] sm:$0xff]  ;;  %v4977_v1 = vcombine.high %v4965_v31, %v4965_v31  ;;  %v4976_v2 = vcombine.low %v4965_v31, %v4965_v31 }
 0x1db   :  { %v2810_v8 = vmax.f32 %v6532_v0, %v2806_v5  ;;  %2855 = vrot.lane.b32.xlu1 %v2846_v6, %s5637_s0  ;;  %v2847_v56 = vld [vmem:[#allocation5 + $0x10] sm:$0x3f]  ;;  %v2819_v44 = vadd.f32 %v6585_v3, %v2811_v24 }
 0x1dc   :  { %2857 = vrot.lane.b32.xlu0 %v2847_v56, %s5637_s0  ;;  %v2848_v10 = vld [vmem:[#allocation5 + $0x18] sm:$0x3f]  ;;  %v5539_v5 = vld [vmem:[%s7024_s3 + $0x10c] ss:$8 sps:$4 sm:$0xff]   ;;  %v5537_v6 = vld [vmem:[%s7024_s3 + $0x108] ss:$8 sps:$4 sm:$0xff]  }
 0x1dd   :  { %v2812_v9 = vmax.f32 %v2788_v7, %v2810_v8  ;;  %v2821_v12 = vmax.f32 %v2819_v44, 0.0  ;;  %v5532_v24 = vld [vmem:[%s7024_s3 + $0xf0] ss:$8 sps:$4 sm:$0xff]   ;;  %v5542_v8 = vld [vmem:[%s7024_s3 + $0x11c] ss:$8 sps:$4 sm:$0xff]  }
 0x1de   :  { %v5545_v44 = vld [vmem:[%s7024_s3 + $0x12c] ss:$8 sps:$4 sm:$0xff]  }
 0x1df   :  { %v2820_v11 = vadd.f32 %v6585_v3, %v2812_v9  ;;  %2859 = vrot.lane.b32.xlu1 %v2848_v10, %s5637_s0  ;;  %v5543_v9 = vld [vmem:[%s7024_s3 + $0x128] ss:$8 sps:$4 sm:$0xff]   ;;  %v5548_v10 = vld [vmem:[%s7024_s3 + $0x13c] ss:$8 sps:$4 sm:$0xff]  }
 0x1e1   :  { %v2822_v13 = vmax.f32 %v2820_v11, 0.0  ;;  %v5546_v11 = vld [vmem:[%s7024_s3 + $0x138] ss:$8 sps:$4 sm:$0xff]  }
 0x1e3   :  { %v6595_v14 = vpack.c.bf16 %v2822_v13, %v2821_v12  ;;  %v5551_v12 = vld [vmem:[%s7024_s3 + $0x14c] ss:$8 sps:$4 sm:$0xff]   ;;  %v4990_v13 = vld [vmem:[%s7024_s3 + $0x158] sm:$0x33] }
 0x1e5   :  { %v3127_v0 = vrot.slane %v6595_v14, 1 }
 0x1e7   :  { %5031 = vmatmul.mubr.msk.bf16.vlgmr.msra.gmra.mrb[40].mxu1 %vm2953_vm5, %v3127_v0 }
 0x1e8   :  { %3551 = vmatpush1.bf16.msra.mxu1 %v5503_v4  ;;  %3582 = vmatprep.mubr.bf16.mxu1 %v7035_v55 }
 0x1e9   :  { %3552 = vmatprep.subr.bf16.mxu1 %v5508_v15 }
 0x1ec   :  { %3553 = vmatpush1.bf16.msra.mxu1 %v5506_v16 }
 0x1ed   :  { %3554 = vmatprep.subr.bf16.mxu1 %v5511_v17 }
 0x1f0   :  { %3555 = vmatpush1.bf16.msra.mxu1 %v5509_v18 }
 0x1f1   :  { %3556 = vmatprep.subr.bf16.mxu1 %v5514_v19 }
 0x1f4   :  { %3557 = vmatpush1.bf16.msra.mxu1 %v5512_v20 }
 0x1f5   :  { %3558 = vmatprep.subr.bf16.mxu1 %v6626_v21 }
 0x1f8   :  { %3559 = vmatpush1.bf16.msra.mxu1 %v6634_v23 }
 0x1f9   :  { %5032 = vmatprep.subr.msk.bf16.mxu1 %vm2957_vm3, %v6637_v25 }
 0x1fc   :  { %3561 = vmatpush1.bf16.msra.mxu1 %v6643_v27 }
 0x1fd   :  { %3593 = vmatprep.subr.bf16.mxu1 %v6648_v28 }
 0x20a   :  { %v2832_v30 = vpop.permute.xlu0 %2831 }
 0x213   :  { %v2834_v29 = vpop.permute.xlu1 %2833 }
 0x214   :  { %v2836_v32 = vpop.permute.xlu0 %2835  ;;  %v2839_v34 = vsel %vm2782_vm4, %v2832_v30, %v2834_v29 }
 0x215   :  { %v2843_v38 = vmax.f32 %v6548_v47, %v2839_v34  ;;  %v5520_v47 = vld [vmem:[%s7024_s3 + $0xb0] ss:$8 sps:$4 sm:$0xff]   ;;  %v5638_v34 = vmov 0.0  }
 0x217   :  { %v2838_v33 = vpop.permute.xlu1 %2837 }
 0x218   :  { %v2840_v41 = vsel %vm2782_vm4, %v2836_v32, %v2838_v33 }
 0x219   :  { %v2844_v48 = vmax.f32 %v6560_v50, %v2840_v41  ;;  %v5523_v50 = vld [vmem:[%s7024_s3 + $0xc0] ss:$8 sps:$4 sm:$0xff]  }
 0x21a   :  { %v5573_v41 = vld [vmem:[%s7026_s5 + $0x8] sm:$0xff]  }
 0x23c   :  { %v2854_v35 = vpop.permute.xlu0 %2853 }
 0x24d   :  { %v2856_v36 = vpop.permute.xlu1 %2855 }
 0x24e   :  { %v2861_v37 = vsel %vm2782_vm4, %v2854_v35, %v2856_v36  ;;  %v2858_v43 = vpop.permute.xlu0 %2857 }
 0x24f   :  { %v2865_v40 = vmax.f32 %v6570_v39, %v2861_v37 }
 0x251   :  { %v2867_v42 = vmax.f32 %v2843_v38, %v2865_v40  ;;  %v2860_v45 = vpop.permute.xlu1 %2859  ;;  %v5571_v38 = vld [vmem:[%s7026_s5] sm:$0xff]   ;;  %v5572_v40 = vld [vmem:[%s7026_s5 + $0x28] sm:$0xff]  }
 0x252   :  { %v2862_v46 = vsel %vm2782_vm4, %v2858_v43, %v2860_v45  ;;  %v5575_v43 = vld [vmem:[%s7026_s5 + $0x10] sm:$0xff]   ;;  %v5576_v45 = vld [vmem:[%s7026_s5 + $0x38] sm:$0xff]  }
 0x253   :  { %v2866_v49 = vmax.f32 %v2847_v56, %v2862_v46  ;;  %v2869_v51 = vadd.f32 %v6585_v3, %v2867_v42  ;;  %v5540_v56 = vld [vmem:[%s7024_s3 + $0x118] ss:$8 sps:$4 sm:$0xff]   ;;  %v5574_v42 = vld [vmem:[%s7026_s5 + $0x30] sm:$0xff]  }
 0x254   :  { %v5577_v46 = vld [vmem:[%s7026_s5 + $0x18] sm:$0xff]  }
 0x255   :  { %v2868_v52 = vmax.f32 %v2844_v48, %v2866_v49  ;;  %v2871_v54 = vmax.f32 %v2869_v51, 0.0  ;;  %v5578_v51 = vld [vmem:[%s7026_s5 + $0x40] sm:$0xff]  }
 0x257   :  { %v2870_v53 = vadd.f32 %v6585_v3, %v2868_v52  ;;  %v3187_v3 = vsel %vm2957_vm3, %v4976_v2, 0 }
 0x259   :  { %v2872_v57 = vmax.f32 %v2870_v53, 0.0 }
 0x25b   :  { %v6664_v39 = vpack.c.bf16 %v2872_v57, %v2871_v54  ;;  %v5579_v54 = vld [vmem:[%s7026_s5 + $0x20] sm:$0xff]   ;;  %v5580_v57 = vld [vmem:[%s7026_s5 + $0x48] sm:$0xff]  }
 0x25d   :  { %4940 = vmatmul.mubr.msk.bf16.vlgmr.msra.gmra.mrb[40].mxu0 %vm2953_vm5, %v6664_v39  ;;  %5033 = vmatmul.mubr.msk.bf16.vlgmr.msra.gmra.mrb[40].mxu1 %vm2953_vm5, %v6664_v39  ;;  %v3252_v7 = vrot.slane %v6664_v39, 1  ;;  %v3687_v33 = vrot.slane %v6664_v39, 2 }
 0x25e   :  { %3072 = vmatpush1.bf16.msra.mxu0 %v5503_v4  ;;  %3594 = vmatpush1.bf16.msra.mxu1 %v5520_v47  ;;  %v5549_v4 = vld [vmem:[%s7024_s3 + $0x148] ss:$8 sps:$4 sm:$0xff]  }
 0x25f   :  { %3073 = vmatprep.subr.bf16.mxu0 %v5508_v15  ;;  %3595 = vmatprep.subr.bf16.mxu1 %v5525_v58  ;;  %v5002_v15 = vcombine.high %v4990_v13, %v4990_v13 }
 0x260   :  { %3103 = vmatprep.mubr.bf16.mxu0 %v7035_v55  ;;  %3625 = vmatprep.mubr.bf16.mxu1 %v7035_v55 }
 0x262   :  { %3074 = vmatpush1.bf16.msra.mxu0 %v5506_v16  ;;  %3596 = vmatpush1.bf16.msra.mxu1 %v5523_v50  ;;  %v5001_v16 = vcombine.low %v4990_v13, %v4990_v13 }
 0x263   :  { %3075 = vmatprep.subr.bf16.mxu0 %v5511_v17  ;;  %3597 = vmatprep.subr.bf16.mxu1 %v5528_v59 }
 0x264   :  { %v3312_v17 = vsel %vm2957_vm3, %v5001_v16, 0  ;;  %v5583_v16 = vld [vmem:[%s7026_s5 + $0x80] sm:$0xff]  }
 0x266   :  { %3076 = vmatpush1.bf16.msra.mxu0 %v5509_v18  ;;  %3598 = vmatpush1.bf16.msra.mxu1 %v5526_v60  ;;  %v5556_v18 = vld [vmem:[%s7024_s3 + $0x164] ss:$8 sps:$4 sm:$0xff]  }
 0x267   :  { %3077 = vmatprep.subr.bf16.mxu0 %v5514_v19  ;;  %3599 = vmatprep.subr.bf16.mxu1 %v5531_v61  ;;  %v5554_v19 = vld [vmem:[%s7024_s3 + $0x160] ss:$8 sps:$4 sm:$0xff]  }
 0x26a   :  { %3078 = vmatpush1.bf16.msra.mxu0 %v5512_v20  ;;  %3600 = vmatpush1.bf16.msra.mxu1 %v5529_v62  ;;  %v3376_v20 = vrot.slane %v6595_v14, 2 }
 0x26b   :  { %3079 = vmatprep.subr.bf16.mxu0 %v6626_v21  ;;  %3601 = vmatprep.subr.bf16.mxu1 %v5534_v63  ;;  %v5559_v21 = vld [vmem:[%s7024_s3 + $0x174] ss:$8 sps:$4 sm:$0xff]  }
 0x26e   :  { %3080 = vmatpush1.bf16.msra.mxu0 %v6634_v23  ;;  %3602 = vmatpush1.bf16.msra.mxu1 %v5532_v24  ;;  %v5562_v23 = vld [vmem:[%s7024_s3 + $0x184] ss:$8 sps:$4 sm:$0xff]  }
 0x26f   :  { %4953 = vmatprep.subr.msk.bf16.mxu0 %vm2957_vm3, %v6637_v25  ;;  %5034 = vmatprep.subr.msk.bf16.mxu1 %vm2957_vm3, %v4977_v1  ;;  %v5563_v25 = vld [vmem:[%s7024_s3 + $0x190] ss:$8 sps:$4 sm:$0xff]  }
 0x272   :  { %3082 = vmatpush1.bf16.msra.mxu0 %v6643_v27  ;;  %3604 = vmatpush1.bf16.msra.mxu1 %v3187_v3  ;;  %v5015_v27 = vld [vmem:[%s7024_s3 + $0x1b0] sm:$0x33] }
 0x273   :  { %3192 = vmatprep.subr.bf16.mxu0 %v6648_v28  ;;  %3640 = vmatprep.subr.bf16.mxu1 %v5539_v5  ;;  %v5566_v28 = vld [vmem:[%s7024_s3 + $0x1a0] ss:$8 sps:$4 sm:$0xff]   ;;  %v5027_v29 = vcombine.high %v5015_v27, %v5015_v27  ;;  %v5026_v30 = vcombine.low %v5015_v27, %v5015_v27  ;;  %v5593_v27 = vld [vmem:[%s7026_s5 + $0xb0] sm:$0xff]  }
 0x275   :  { %4954 = vmatmul.mubr.msk.bf16.vlgmr.msra.gmra.mrb[40].mxu0 %vm2953_vm5, %v6595_v14  ;;  %5035 = vmatmul.mubr.msk.bf16.vlgmr.msra.gmra.mrb[40].mxu1 %vm2953_vm5, %v3252_v7  ;;  %v5560_v14 = vld [vmem:[%s7024_s3 + $0x180] ss:$8 sps:$4 sm:$0xff]   ;;  %v3436_v32 = vsel %vm2957_vm3, %v5026_v30, 0 }
 0x276   :  { %3193 = vmatpush1.bf16.msra.mxu0 %v5520_v47  ;;  %3641 = vmatpush1.bf16.msra.mxu1 %v5537_v6 }
 0x277   :  { %3194 = vmatprep.subr.bf16.mxu0 %v5525_v58  ;;  %3642 = vmatprep.subr.bf16.mxu1 %v5542_v8 }
 0x278   :  { %3224 = vmatprep.mubr.bf16.mxu0 %v7035_v55  ;;  %3672 = vmatprep.mubr.bf16.mxu1 %v7035_v55 }
 0x27a   :  { %3195 = vmatpush1.bf16.msra.mxu0 %v5523_v50  ;;  %3643 = vmatpush1.bf16.msra.mxu1 %v5540_v56 }
 0x27b   :  { %3196 = vmatprep.subr.bf16.mxu0 %v5528_v59  ;;  %3644 = vmatprep.subr.bf16.mxu1 %v5545_v44 }
 0x27e   :  { %3197 = vmatpush1.bf16.msra.mxu0 %v5526_v60  ;;  %3645 = vmatpush1.bf16.msra.mxu1 %v5543_v9 }
 0x27f   :  { %3198 = vmatprep.subr.bf16.mxu0 %v5531_v61  ;;  %3646 = vmatprep.subr.bf16.mxu1 %v5548_v10 }
 0x282   :  { %3199 = vmatpush1.bf16.msra.mxu0 %v5529_v62  ;;  %3647 = vmatpush1.bf16.msra.mxu1 %v5546_v11 }
 0x283   :  { %3200 = vmatprep.subr.bf16.mxu0 %v5534_v63  ;;  %3648 = vmatprep.subr.bf16.mxu1 %v5551_v12 }
 0x286   :  { %3201 = vmatpush1.bf16.msra.mxu0 %v5532_v24  ;;  %3649 = vmatpush1.bf16.msra.mxu1 %v5549_v4 }
 0x287   :  { %4978 = vmatprep.subr.msk.bf16.mxu0 %vm2957_vm3, %v4977_v1  ;;  %5036 = vmatprep.subr.msk.bf16.mxu1 %vm2957_vm3, %v5002_v15 }
 0x28a   :  { %3203 = vmatpush1.bf16.msra.mxu0 %v3187_v3  ;;  %3651 = vmatpush1.bf16.msra.mxu1 %v3312_v17 }
 0x28b   :  { %3317 = vmatprep.subr.bf16.mxu0 %v5539_v5  ;;  %3691 = vmatprep.subr.bf16.mxu1 %v5556_v18  ;;  %v5040_v5 = vld [vmem:[%s7025_s4] ss:$0 sm:$0xff] }
 0x28d   :  { %4979 = vmatmul.mubr.msk.bf16.vlgmr.msra.gmra.mrb[40].mxu0 %vm2953_vm5, %v3127_v0  ;;  %5037 = vmatmul.mubr.msk.bf16.vlgmr.msra.gmra.mrb[40].mxu1 %vm2953_vm5, %v3376_v20  ;;  %v5565_v0 = vld [vmem:[%s7024_s3 + $0x194] ss:$8 sps:$4 sm:$0xff]   ;;  %s5639_s3 = smov 48  }
 0x28e   :  { %3318 = vmatpush1.bf16.msra.mxu0 %v5537_v6  ;;  %3692 = vmatpush1.bf16.msra.mxu1 %v5554_v19 }
 0x28f   :  { %3319 = vmatprep.subr.bf16.mxu0 %v5542_v8  ;;  %3693 = vmatprep.subr.bf16.mxu1 %v5559_v21 }
 0x290   :  { %3349 = vmatprep.mubr.bf16.mxu0 %v7035_v55  ;;  %3723 = vmatprep.mubr.bf16.mxu1 %v7035_v55 }
 0x292   :  { %3320 = vmatpush1.bf16.msra.mxu0 %v5540_v56  ;;  %3694 = vmatpush1.bf16.msra.mxu1 %v5557_v22 }
 0x293   :  { %3321 = vmatprep.subr.bf16.mxu0 %v5545_v44  ;;  %3695 = vmatprep.subr.bf16.mxu1 %v5562_v23 }
 0x296   :  { %3322 = vmatpush1.bf16.msra.mxu0 %v5543_v9  ;;  %3696 = vmatpush1.bf16.msra.mxu1 %v5560_v14 }
 0x297   :  { %3323 = vmatprep.subr.bf16.mxu0 %v5548_v10  ;;  %3697 = vmatprep.subr.bf16.mxu1 %v5565_v0 }
 0x29a   :  { %3324 = vmatpush1.bf16.msra.mxu0 %v5546_v11  ;;  %3698 = vmatpush1.bf16.msra.mxu1 %v5563_v25 }
 0x29b   :  { %3325 = vmatprep.subr.bf16.mxu0 %v5551_v12  ;;  %3699 = vmatprep.subr.bf16.mxu1 %v5568_v26  ;;  %v5581_v12 = vld [vmem:[%s7026_s5 + $0x78] sm:$0xff]  }
 0x29e   :  { %3326 = vmatpush1.bf16.msra.mxu0 %v5549_v4  ;;  %3700 = vmatpush1.bf16.msra.mxu1 %v5566_v28  ;;  %v5582_v4 = vld [vmem:[%s7026_s5 + $0x50] sm:$0xff]  }
 0x29f   :  { %5003 = vmatprep.subr.msk.bf16.mxu0 %vm2957_vm3, %v5002_v15  ;;  %5038 = vmatprep.subr.msk.bf16.mxu1 %vm2957_vm3, %v5027_v29 }
 0x2a2   :  { %3328 = vmatpush1.bf16.msra.mxu0 %v3312_v17  ;;  %3702 = vmatpush1.bf16.msra.mxu1 %v3436_v32  ;;  %v5584_v17 = vld [vmem:[%s7026_s5 + $0x58] sm:$0xff]  }
 0x2a3   :  { %3441 = vmatprep.subr.bf16.mxu0 %v5556_v18  ;;  %5152 = vmatprep.subr.bf16.mxu1 %v5638_v34  ;;  %v5585_v18 = vld [vmem:[%s7026_s5 + $0x88] sm:$0xff]  }
 0x2a5   :  { %5004 = vmatmul.mubr.msk.bf16.vlgmr.msra.gmra.mrb[40].mxu0 %vm2953_vm5, %v3252_v7  ;;  %5039 = vmatmul.mubr.msk.bf16.vlgmr.msra.gmra.mrb[40].mxu1 %vm2953_vm5, %v3687_v33  ;;  %v5597_v33 = vld [vmem:[%s7028_s7 + $0x8] sm:$0xff]  }
 0x2a6   :  { %3442 = vmatpush1.bf16.msra.mxu0 %v5554_v19  ;;  %3473 = vmatprep.mubr.bf16.mxu0 %v7035_v55  ;;  %v5586_v19 = vld [vmem:[%s7026_s5 + $0x60] sm:$0xff]  }
 0x2a7   :  { %3443 = vmatprep.subr.bf16.mxu0 %v5559_v21  ;;  %5153 = vmatpush3.bf16.msra.mxu1 %v5571_v38  ;;  %v5588_v21 = vld [vmem:[%s7026_s5 + $0x68] sm:$0xff]   ;;  %v5602_v38 = vld [vmem:[%s7028_s7 + $0x30] sm:$0xff]  }
 0x2a8   :  { %5154 = vmatprep.subr.bf16.mxu1 %v5638_v34  ;;  %5162 = vmatprep.mubr.msk.bf16.mxu1 %vm5640_vm6, %v5638_v34 }
 0x2aa   :  { %3444 = vmatpush1.bf16.msra.mxu0 %v5557_v22  ;;  %v5589_v22 = vld [vmem:[%s7026_s5 + $0x98] sm:$0xff]  }
 0x2ab   :  { %3445 = vmatprep.subr.bf16.mxu0 %v5562_v23  ;;  %5155 = vmatpush3.bf16.msra.mxu1 %v5573_v41  ;;  %v5590_v23 = vld [vmem:[%s7026_s5 + $0x70] sm:$0xff]   ;;  %v5604_v41 = vld [vmem:[%s7030_s9] sm:$0xff]  }
 0x2ac   :  { %5156 = vmatprep.subr.bf16.mxu1 %v5638_v34 }
 0x2ae   :  { %3446 = vmatpush1.bf16.msra.mxu0 %v5560_v14 }
 0x2af   :  { %3447 = vmatprep.subr.bf16.mxu0 %v5565_v0  ;;  %5157 = vmatpush3.bf16.msra.mxu1 %v5575_v43  ;;  %v5591_v0 = vld [vmem:[%s7026_s5 + $0xa0] sm:$0xff]   ;;  %v5606_v43 = vld [vmem:[%s7030_s9 + $0x10] sm:$0xff]  }
 0x2b0   :  { %5158 = vmatprep.subr.bf16.mxu1 %v5638_v34 }
 0x2b2   :  { %3448 = vmatpush1.bf16.msra.mxu0 %v5563_v25 }
 0x2b3   :  { %3449 = vmatprep.subr.bf16.mxu0 %v5568_v26  ;;  %5159 = vmatpush3.bf16.msra.mxu1 %v5577_v46  ;;  %v5592_v26 = vld [vmem:[%s7026_s5 + $0xa8] sm:$0xff]   ;;  %v5608_v46 = vld [vmem:[%s7030_s9 + $0x20] sm:$0xff]  }
 0x2b4   :  { %5160 = vmatprep.subr.bf16.mxu1 %v5638_v34 }
 0x2b6   :  { %3450 = vmatpush1.bf16.msra.mxu0 %v5566_v28  ;;  %v5594_v28 = vld [vmem:[%s7026_s5 + $0xb8] sm:$0xff]  }
 0x2b7   :  { %5028 = vmatprep.subr.msk.bf16.mxu0 %vm2957_vm3, %v5027_v29  ;;  %5161 = vmatpush3.bf16.msra.mxu1 %v5579_v54  ;;  %v5595_v29 = vld [vmem:[%s7026_s5 + $0xc0] sm:$0xff]  }
 0x2b8   :  { %5180 = vmatprep.subr.bf16.mxu1 %v5638_v34 }
 0x2ba   :  { %3452 = vmatpush1.bf16.msra.mxu0 %v3436_v32  ;;  %v5596_v32 = vld [vmem:[%s7028_s7] sm:$0xff]  }
 0x2bb   :  { %5138 = vmatprep.subr.bf16.mxu0 %v5638_v34 }
 0x2bd   :  { %5029 = vmatmul.mubr.msk.bf16.vlgmr.msra.gmra.mrb[40].mxu0 %vm2953_vm5, %v3376_v20  ;;  %v5587_v20 = vld [vmem:[%s7026_s5 + $0x90] sm:$0xff]  }
 0x2be   :  { %5139 = vmatpush3.bf16.msra.mxu0 %v5572_v40  ;;  %5148 = vmatprep.mubr.msk.bf16.mxu0 %vm5640_vm6, %v5638_v34  ;;  %v5603_v40 = vld [vmem:[%s7028_s7 + $0x38] sm:$0xff]  }
 0x2bf   :  { %5140 = vmatprep.subr.bf16.mxu0 %v5638_v34 }
 0x2c2   :  { %5141 = vmatpush3.bf16.msra.mxu0 %v5574_v42  ;;  %v5605_v42 = vld [vmem:[%s7030_s9 + $0x8] sm:$0xff]  }
 0x2c3   :  { %5142 = vmatprep.subr.bf16.mxu0 %v5638_v34 }
 0x2c6   :  { %5143 = vmatpush3.bf16.msra.mxu0 %v5576_v45  ;;  %v5607_v45 = vld [vmem:[%s7030_s9 + $0x18] sm:$0xff]  }
 0x2c7   :  { %5144 = vmatprep.subr.bf16.mxu0 %v5638_v34 }
 0x2ca   :  { %5145 = vmatpush3.bf16.msra.mxu0 %v5578_v51 }
 0x2cb   :  { %5146 = vmatprep.subr.bf16.mxu0 %v5638_v34 }
 0x2ce   :  { %5147 = vmatpush3.bf16.msra.mxu0 %v5580_v57 }
 0x2cf   :  { %5166 = vmatprep.subr.bf16.mxu0 %v5638_v34 }
 0x378   :  { %v3725_v35 = vpop.f32.mrb[40].mxu1 }
 0x379   :  { %3742 = vrot.lane.b32.xlu0 %v3725_v35, %s5639_s3  ;;  %v3727_v55 = vpop.f32.mrb[41].mxu1 }
 0x37a   :  { %3744 = vrot.lane.b32.xlu1 %v3727_v55, %s5639_s3  ;;  %v6806_v36 = vpop.f32.mrb[42].mxu1  ;;  %v5599_v55 = vld [vmem:[%s7028_s7 + $0x18] sm:$0xff]  }
 0x37b   :  { %v3731_v37 = vpop.f32.mrb[43].mxu1 }
 0x390   :  { %v3475_v48 = vpop.f32.mrb[40].mxu0 }
 0x391   :  { %3492 = vrot.lane.b32.xlu0 %v3475_v48, %s5639_s3  ;;  %v3477_v49 = vpop.f32.mrb[41].mxu0 }
 0x392   :  { %3494 = vrot.lane.b32.xlu1 %v3477_v49, %s5639_s3  ;;  %v3479_v52 = vpop.f32.mrb[42].mxu0 }
 0x393   :  { %v3481_v53 = vpop.f32.mrb[43].mxu0 }
 0x395   :  { %3496 = vrot.lane.b32.xlu0 %v3479_v52, %s5639_s3 }
 0x396   :  { %3498 = vrot.lane.b32.xlu1 %v3481_v53, %s5639_s3 }
 0x399   :  { %3746 = vrot.lane.b32.xlu0 %v6806_v36, %s5639_s3 }
 0x39a   :  { %3748 = vrot.lane.b32.xlu1 %v3731_v37, %s5639_s3  ;;  %v5601_v37 = vld [vmem:[%s7028_s7 + $0x28] sm:$0xff]  }
 0x3eb   :  { %v3743_v47 = vpop.permute.xlu0 %3742 }
 0x3ec   :  { %v3745_v39 = vpop.permute.xlu1 %3744 }
 0x3ed   :  { %v3750_v58 = vsel %vm3500_vm7, %v3743_v47, %v3745_v39 }
 0x3ee   :  { %v3754_v61 = vmax.f32 %v3725_v35, %v3750_v58  ;;  %v5598_v35 = vld [vmem:[%s7028_s7 + $0x10] sm:$0xff]  }
 0x403   :  { %v3493_v50 = vpop.permute.xlu0 %3492 }
 0x404   :  { %v3495_v59 = vpop.permute.xlu1 %3494 }
 0x405   :  { %v3501_v60 = vsel %vm3500_vm7, %v3493_v50, %v3495_v59 }
 0x406   :  { %v3505_v62 = vmax.f32 %v3475_v48, %v3501_v60  ;;  %v5609_v48 = vld [vmem:[%s7030_s9 + $0x28] sm:$0xff]  }
 0x407   :  { %v3497_v63 = vpop.permute.xlu0 %3496 }
 0x408   :  { %v3756_v31 = vmax.f32 %v3505_v62, %v3754_v61  ;;  %v3499_v24 = vpop.permute.xlu1 %3498 }
 0x409   :  { %v3502_v1 = vsel %vm3500_vm7, %v3497_v63, %v3499_v24 }
 0x40a   :  { %v3506_v7 = vmax.f32 %v3479_v52, %v3502_v1  ;;  %v3765_v56 = vadd.f32 %v5040_v5, %v3756_v31 }
 0x40b   :  { %v3747_v2 = vpop.permute.xlu0 %3746 }
 0x40c   :  { %v3749_v3 = vpop.permute.xlu1 %3748  ;;  %v3767_v10 = vmax.f32 %v3765_v56, 0.0 }
 0x40d   :  { %v3751_v6 = vsel %vm3500_vm7, %v3747_v2, %v3749_v3 }
 0x40e   :  { %v3755_v8 = vmax.f32 %v6806_v36, %v3751_v6  ;;  %v5600_v36 = vld [vmem:[%s7028_s7 + $0x20] sm:$0xff]  }
 0x410   :  { %v3757_v44 = vmax.f32 %v3506_v7, %v3755_v8 }
 0x412   :  { %v3766_v9 = vadd.f32 %v5040_v5, %v3757_v44  ;;  %v5071_v5 = vld [vmem:[%s7027_s6] ss:$0 sm:$0xff] }
 0x414   :  { %v3768_v11 = vmax.f32 %v3766_v9, 0.0 }
 0x416   :  { %v3769_v13 = vpack.c.bf16 %v3768_v11, %v3767_v10  ;;  %v5610_v11 = vld [vmem:[%s7030_s9 + $0x30] sm:$0xff]  }
 0x418   :  { %5163 = vmatmul.mubr.msk.bf16.vlgmr.msra.gmra.mrb[44].mxu1 %vm3822_vm8, %v3769_v13  ;;  %v3791_v15 = vrot.slane %v3769_v13, 1  ;;  %v4034_v14 = vrot.slane %v3769_v13, 3  ;;  %v3949_v25 = vrot.slane %v3769_v13, 2  ;;  %v4119_v30 = vrot.slane %v3769_v13, 4  ;;  %v5072_v13 = vld [vmem:[%s7029_s8] ss:$0 sm:$0xff] }
 0x419   :  { %5181 = vmatpush3.bf16.msra.mxu1 %v5581_v12  ;;  %5190 = vmatprep.mubr.msk.bf16.mxu1 %vm5640_vm6, %v5638_v34  ;;  %v5611_v12 = vld [vmem:[%s7030_s9 + $0x38] sm:$0xff]   ;;  %s5612_s8 = scalar_lea.vmem %s4436_s28, 32 }
 0x41a   :  { %5149 = vmatmul.mubr.msk.bf16.vlgmr.msra.gmra.mrb[44].mxu0 %vm3822_vm8, %v3791_v15  ;;  %5182 = vmatprep.subr.bf16.mxu1 %v5638_v34  ;;  %p5613_p0 = scmp.ne.s32.totalorder %s4436_s28, %s5612_s8  ;;  %p5618_p2 = scmp.lt.s32.totalorder %s5612_s8, %s5612_s8 }
 0x41b   :  { %5167 = vmatpush3.bf16.msra.mxu0 %v5582_v4  ;;  %5176 = vmatprep.mubr.msk.bf16.mxu0 %vm5640_vm6, %v5638_v34 }
 0x41c   :  { %5168 = vmatprep.subr.bf16.mxu0 %v5638_v34  ;;  %p5619_p3 = por %p5618_p2, %p5617_p1 }
 0x41d   :  { %5183 = vmatpush3.bf16.msra.mxu1 %v5583_v16 }
 0x41e   :  { %5184 = vmatprep.subr.bf16.mxu1 %v5638_v34  ;;  %p5620_p4 = pnand %p5619_p3, %p5613_p0 }
 0x41f   :  { %5169 = vmatpush3.bf16.msra.mxu0 %v5584_v17 }
 0x420   :  { %5170 = vmatprep.subr.bf16.mxu0 %v5638_v34 }
 0x421   :  { %5185 = vmatpush3.bf16.msra.mxu1 %v5585_v18 }
 0x422   :  { %5186 = vmatprep.subr.bf16.mxu1 %v5638_v34 }
 0x423   :  { %5171 = vmatpush3.bf16.msra.mxu0 %v5586_v19 }
 0x424   :  { %5172 = vmatprep.subr.bf16.mxu0 %v5638_v34 }
 0x425   :  { %5187 = vmatpush3.bf16.msra.mxu1 %v5587_v20 }
 0x426   :  { %5188 = vmatprep.subr.bf16.mxu1 %v5638_v34 }
 0x427   :  { %5173 = vmatpush3.bf16.msra.mxu0 %v5588_v21 }
 0x428   :  { %5174 = vmatprep.subr.bf16.mxu0 %v5638_v34 }
 0x429   :  { %5189 = vmatpush3.bf16.msra.mxu1 %v5589_v22 }
 0x42a   :  { %5208 = vmatprep.subr.bf16.mxu1 %v5638_v34 }
 0x42b   :  { %5175 = vmatpush3.bf16.msra.mxu0 %v5590_v23 }
 0x42c   :  { %5191 = vmatmul.mubr.msk.bf16.vlgmr.msra.gmra.mrb[48].mxu1 %vm3822_vm8, %v4034_v14  ;;  %5194 = vmatprep.subr.bf16.mxu0 %v5638_v34 }
 0x42d   :  { %5224 = vmatprep.mubr.msk.bf16.mxu1 %vm5640_vm6, %v5638_v34  ;;  %5209 = vmatpush3.bf16.msra.mxu1 %v5596_v32 }
 0x42e   :  { %5177 = vmatmul.mubr.msk.bf16.vlgmr.msra.gmra.mrb[48].mxu0 %vm3822_vm8, %v3949_v25  ;;  %5210 = vmatprep.subr.bf16.mxu1 %v5638_v34 }
 0x42f   :  { %5195 = vmatpush3.bf16.msra.mxu0 %v5591_v0  ;;  %5204 = vmatprep.mubr.msk.bf16.mxu0 %vm5640_vm6, %v5638_v34 }
 0x430   :  { %5196 = vmatprep.subr.bf16.mxu0 %v5638_v34 }
 0x431   :  { %5211 = vmatpush3.bf16.msra.mxu1 %v5597_v33 }
 0x432   :  { %5212 = vmatprep.subr.bf16.mxu1 %v5638_v34 }
 0x433   :  { %5197 = vmatpush3.bf16.msra.mxu0 %v5592_v26 }
 0x434   :  { %5198 = vmatprep.subr.bf16.mxu0 %v5638_v34 }
 0x435   :  { %5213 = vmatpush3.bf16.msra.mxu1 %v5598_v35 }
 0x436   :  { %5214 = vmatprep.subr.bf16.mxu1 %v5638_v34 }
 0x437   :  { %5199 = vmatpush3.bf16.msra.mxu0 %v5593_v27 }
 0x438   :  { %5200 = vmatprep.subr.bf16.mxu0 %v5638_v34 }
 0x439   :  { %5215 = vmatpush3.bf16.msra.mxu1 %v5599_v55 }
 0x43a   :  { %5216 = vmatprep.subr.bf16.mxu1 %v5638_v34 }
 0x43b   :  { %5201 = vmatpush3.bf16.msra.mxu0 %v5594_v28 }
 0x43c   :  { %5202 = vmatprep.subr.bf16.mxu0 %v5638_v34 }
 0x43d   :  { %5217 = vmatpush3.bf16.msra.mxu1 %v5600_v36 }
 0x43e   :  { %5218 = vmatprep.subr.bf16.mxu1 %v5638_v34 }
 0x43f   :  { %5203 = vmatpush3.bf16.msra.mxu0 %v5595_v29 }
 0x440   :  { %5228 = vmatprep.subr.bf16.mxu0 %v5638_v34 }
 0x441   :  { %5219 = vmatpush3.bf16.msra.mxu1 %v5601_v37 }
 0x442   :  { %5205 = vmatmul.mubr.msk.bf16.vlgmr.msra.gmra.mrb[52].mxu0 %vm3822_vm8, %v4119_v30  ;;  %5220 = vmatprep.subr.bf16.mxu1 %v5638_v34 }
 0x443   :  { %5244 = vmatprep.mubr.msk.bf16.mxu0 %vm5640_vm6, %v5638_v34  ;;  %5229 = vmatpush3.bf16.msra.mxu0 %v5604_v41 }
 0x444   :  { %5230 = vmatprep.subr.bf16.mxu0 %v5638_v34 }
 0x445   :  { %5221 = vmatpush3.bf16.msra.mxu1 %v5602_v38 }
 0x446   :  { %5222 = vmatprep.subr.bf16.mxu1 %v5638_v34 }
 0x447   :  { %5231 = vmatpush3.bf16.msra.mxu0 %v5605_v42 }
 0x448   :  { %5232 = vmatprep.subr.bf16.mxu0 %v5638_v34 }
 0x449   :  { %5223 = vmatpush3.bf16.msra.mxu1 %v5603_v40 }
 0x44b   :  { %5233 = vmatpush3.bf16.msra.mxu0 %v5606_v43 }
 0x44c   :  { %5234 = vmatprep.subr.bf16.mxu0 %v5638_v34 }
 0x44f   :  { %5235 = vmatpush3.bf16.msra.mxu0 %v5607_v45 }
 0x450   :  { %5236 = vmatprep.subr.bf16.mxu0 %v5638_v34 }
 0x453   :  { %5237 = vmatpush3.bf16.msra.mxu0 %v5608_v46 }
 0x454   :  { %5238 = vmatprep.subr.bf16.mxu0 %v5638_v34 }
 0x457   :  { %5239 = vmatpush3.bf16.msra.mxu0 %v5609_v48 }
 0x458   :  { %5240 = vmatprep.subr.bf16.mxu0 %v5638_v34 }
 0x45b   :  { %5241 = vmatpush3.bf16.msra.mxu0 %v5610_v11 }
 0x45c   :  { %5242 = vmatprep.subr.bf16.mxu0 %v5638_v34  ;;  %v5081_v34 = vld [vmem:[%s7031_s10] ss:$0 sm:$0xff] }
 0x45f   :  { %5243 = vmatpush3.bf16.msra.mxu0 %v5611_v12 }
 0x4eb   :  { %v3933_v49 = vpop.f32.mrb[44].mxu1 }
 0x4ec   :  { %v5164_v51 = vpop.f32.mrb[45].mxu1 }
 0x4ed   :  { %v3860_v52 = vpop.f32.mrb[44].mxu0  ;;  %v3936_v53 = vpop.f32.mrb[46].mxu1 }
 0x4ee   :  { %v3934_v54 = vadd.f32 %v3933_v49, %v3860_v52  ;;  %v5150_v57 = vpop.f32.mrb[45].mxu0  ;;  %v5165_v47 = vpop.f32.mrb[47].mxu1 }
 0x4ef   :  { %v3863_v39 = vpop.f32.mrb[46].mxu0 }
 0x4f0   :  { %v5151_v58 = vpop.f32.mrb[47].mxu0 }
 0x4ff   :  { %v4102_v50 = vpop.f32.mrb[48].mxu1 }
 0x500   :  { %v5192_v59 = vpop.f32.mrb[49].mxu1 }
 0x501   :  { %v4017_v60 = vpop.f32.mrb[48].mxu0  ;;  %v4105_v61 = vpop.f32.mrb[50].mxu1 }
 0x502   :  { %v4023_v62 = vadd.f32 %v4017_v60, %v3934_v54  ;;  %v5178_v63 = vpop.f32.mrb[49].mxu0  ;;  %v5193_v31 = vpop.f32.mrb[51].mxu1 }
 0x503   :  { %v4020_v24 = vpop.f32.mrb[50].mxu0 }
 0x504   :  { %v5179_v1 = vpop.f32.mrb[51].mxu0  ;;  %v4108_v2 = vadd.f32 %v4102_v50, %v4023_v62 }
 0x515   :  { %v4187_v3 = vpop.f32.mrb[52].mxu0 }
 0x516   :  { %v4193_v6 = vadd.f32 %v4187_v3, %v4108_v2  ;;  %v5206_v7 = vpop.f32.mrb[53].mxu0 }
 0x517   :  { %v4190_v8 = vpop.f32.mrb[54].mxu0 }
 0x518   :  { %v4201_v56 = vadd.f32 %v5071_v5, %v4193_v6  ;;  %v5207_v44 = vpop.f32.mrb[55].mxu0 }
 0x51a   :  { %v4202_v9 = vmax.f32 %v4201_v56, 0.0 }
 0x51c   :  { %v4203_v10 = vpack.c.bf16 %v4202_v9, %v4202_v9 }
 0x51e   :  { %5225 = vmatmul.mubr.bf16.vlgmr.msra.gmra.mrb[52].mxu1 %v4203_v10 }
 0x5f1   :  { %v4309_v4 = vpop.f32.mrb[52].mxu1 }
 0x5f2   :  { %v4310_v15 = vadd.f32 %v5072_v13, %v4309_v4  ;;  %v5226_v16 = vpop.f32.mrb[53].mxu1 }
 0x5f3   :  { %v4312_v17 = vpop.f32.mrb[54].mxu1 }
 0x5f4   :  { %v4315_v18 = vmax.f32 %v4310_v15, 0.0  ;;  %v5227_v19 = vpop.f32.mrb[55].mxu1 }
 0x5f6   :  { %v4316_v20 = vpack.c.bf16 %v4315_v18, %v4315_v18 }
 0x5f8   :  { %5245 = vmatmul.mubr.bf16.vlgmr.msra.gmra.mrb[56].mxu0 %v4316_v20 }
 0x6cb   :  { %v4422_v21 = vpop.f32.mrb[56].mxu0 }
 0x6cc   :  { %v4423_v22 = vadd.f32 %v5081_v34, %v4422_v21  ;;  %v5246_v23 = vpop.f32.mrb[57].mxu0 }
 0x6cd   :  { %v4425_v14 = vpop.f32.mrb[58].mxu0 }
 0x6ce   :  { %4428 = vst [vmem:[#allocation6] sm:$0x3] %v4423_v22  ;;  %v5247_v0 = vpop.f32.mrb[59].mxu0 }
 0x6cf   :  { %5623 = shalt.err (!%p5620_p4)
}
 0x6d0   :  { %s5624_s10 = scalar_lea.hbm %s7032_s11, 32 }
 0x6d1   :  { %p5625_p5 = scmp.ne.s32.totalorder %s7032_s11, %s5624_s10  ;;  %p5628_p6 = scmp.lt.u32.totalorder %s5624_s10, %s7032_s11 }
 0x6d3   :  { %p5630_p7 = pnand %p5628_p6, %p5625_p5 }
 0x6d5   :  { %5633 = shalt.err (!%p5630_p7)
}
 0x6d6   :  { %4438 = dma.vmem_to_hbm [thread:$0]  %s4436_s28, 32, %s7032_s11, [#allocation7]  }
 0x6d7   :  { %5634 = dma.done.wait [#allocation7], 32  }
 0x6d8   :  { %5635 = vsyncadd [#allocation7], 4294967264 }
 0x6d9   :  { %4442 = vsyncpa [#allocation7], 1 }

</bundles_post_ra>
